<compile_context>
chip_gen: v7x
topology: tpu7x:2x2x1
jax: 0.10.0
libtpu: 0.0.40
codegen_flags: <defaults>
</compile_context>

<pallas_src>
import functools
import math

import jax
import jax.numpy as jnp
import numpy as np
from jax import lax
from jax.experimental import pallas as pl
from jax.experimental.pallas import tpu as pltpu


def autopad(k, p=None):
    if p is None:
        p = k // 2 if isinstance(k, int) else [x // 2 for x in k]
    return p


def _tpu_tuning():
    """Per-generation tile/VMEM knobs (conservative defaults if unknown)."""
    kind = ""
    try:
        kind = jax.devices()[0].device_kind.lower()
    except Exception:
        pass
    if "v2" in kind or "v3" in kind:
        return dict(max_co=128, tile_budget=2 << 20, vmem_limit=12 << 20)
    if "v5 lite" in kind or "v5e" in kind or "v5lite" in kind:
        # 4x128^2 MXU, small default scoped VMEM -> 128-wide Cout tiles.
        return dict(max_co=128, tile_budget=4 << 20, vmem_limit=64 << 20)
    if "v7" in kind:
        # 64 MiB physical VMEM per TC -> keep totals well under it.
        return dict(max_co=256, tile_budget=7 << 20, vmem_limit=48 << 20)
    # v4 / v6e and default (128 MiB physical VMEM).
    return dict(max_co=256, tile_budget=10 << 20, vmem_limit=96 << 20)


def _conv_bn_silu_kernel(x_ref, w_ref, scale_ref, bias_ref, o_ref, acc_ref, *,
                         kh, kw, stride, tile_oh, ow, cin, tile_co):
    """One (batch, cout-tile, row-tile) grid step: k*k tap matmuls + BN + SiLU.

    x_ref:     (tile_ih, Wp, Cin)      input rows for this tile (native dtype)
    w_ref:     (kh*kw, Cin, TILE_CO)   conv taps (activation dtype)
    scale_ref: (1, TILE_CO)            folded BN scale, f32
    bias_ref:  (1, TILE_CO)            folded BN bias, f32
    o_ref:     (tile_oh, OW, TILE_CO)  output tile
    acc_ref:   (tile_oh*OW, TILE_CO)   f32 VMEM accumulator (scratch)
    """
    m = tile_oh * ow
    row_span = (tile_oh - 1) * stride + 1
    col_span = (ow - 1) * stride + 1

    # TODO(synk): fold kw (im2col) into the contraction so K = kw*Cin rather
    # than K = Cin, for better systolic-array depth utilization on small Cin.
    first = True
    for i in range(kh):
        for j in range(kw):
            if stride == 1:
                patch = x_ref[pl.ds(i, tile_oh), pl.ds(j, ow), :]
            else:
                patch = x_ref[pl.ds(i, row_span), pl.ds(j, col_span), :]
                patch = patch[::stride, ::stride, :]
            patch = patch.reshape(m, cin)
            contrib = jnp.dot(patch, w_ref[i * kw + j],
                              preferred_element_type=jnp.float32)
            if first:
                acc_ref[...] = contrib
                first = False
            else:
                acc_ref[...] += contrib

    # Fused inference-mode BatchNorm (per-channel affine) + SiLU.
    y = acc_ref[...] * scale_ref[...] + bias_ref[...]
    y = y * jax.nn.sigmoid(y)                          # SiLU (sigmoid -> EUP)
    o_ref[...] = y.reshape(tile_oh, ow, tile_co).astype(o_ref.dtype)


def _choose_tile_oh(oh, stride, k, wp, cin, ow, tile_co, itemsize, budget):
    """Largest row tile whose double-buffered in/out + f32 accumulator fit."""
    def vmem_bytes(t):
        tile_ih = (t - 1) * stride + k
        return (2 * tile_ih * wp * cin * itemsize        # input, double-buffered
                + 2 * t * ow * tile_co * itemsize        # output, double-buffered
                + t * ow * tile_co * 4)                  # f32 accumulator
    best = 1
    for cand in range(1, oh + 1):
        if vmem_bytes(cand) > budget:
            break
        best = cand
    # Prefer an exact divisor of OH that is at least half as large (avoids a
    # zero-padded remainder tile); otherwise keep the larger tile + remainder.
    for cand in range(best, 0, -1):
        if oh % cand == 0 and cand * 2 >= best:
            return cand
    return best


def conv_bn_silu_forward(x, weight, gamma, beta, running_mean, running_var,
                         *, k=1, s=1, p=None, g=1, eps=1e-5):
    """Forward of Conv: SiLU(BN(Conv2d(x, weight, bias=False))).  x is NCHW."""
    # TODO(synk): grouped conv (g > 1) and non-SiLU `act` modules not implemented.
    if g != 1:
        raise NotImplementedError("grouped conv (g > 1) not implemented")

    B, C1, H, W = x.shape
    C2 = weight.shape[0]
    kh = kw = k
    pad = autopad(k, p)

    oh = (H + 2 * pad - kh) // s + 1
    ow = (W + 2 * pad - kw) // s + 1
    wp = W + 2 * pad

    tune = _tpu_tuning()
    itemsize = jnp.dtype(x.dtype).itemsize

    # Cout tiling: lane-dense (>=128-wide) weight/output blocks when possible
    # and a bounded per-step weight slab (matters most on v7x's 64 MiB VMEM).
    if C2 % tune["max_co"] == 0:
        tile_co = tune["max_co"]
    elif C2 % 128 == 0:
        tile_co = 128
    else:
        tile_co = C2   # TODO(synk): pad Cout to 128 for fully lane-dense stores.
    n_co = C2 // tile_co

    tile_oh = _choose_tile_oh(oh, s, kh, wp, C1, ow, tile_co, itemsize,
                              tune["tile_budget"])
    n_t = -(-oh // tile_oh)                 # ceil div -> remainder tile allowed
    ohp = n_t * tile_oh
    tile_ih = (tile_oh - 1) * s + kh

    # NCHW -> NHWC (channels on lanes) + spatial zero pad in one fused producer;
    # extra bottom rows cover the (zero-padded) remainder row tile.
    hp_needed = (ohp - 1) * s + kh
    extra_bot = max(0, hp_needed - (H + 2 * pad))
    xp = jnp.pad(jnp.transpose(x, (0, 2, 3, 1)),
                 ((0, 0), (pad, pad + extra_bot), (pad, pad), (0, 0)))

    if kh == s and kw == s:
        # Window stride == window size (1x1 s=1, patchify convs): row tiles do
        # not overlap, so the padded input feeds BlockSpec auto-pipelining
        # directly with zero redundant HBM traffic.
        x_in = xp                                       # (B, Hp, Wp, C1)
        x_spec = pl.BlockSpec((None, tile_ih, wp, C1),
                              lambda b, co, t: (b, t, 0, 0))
    else:
        # Overlapping (halo) row windows are not expressible as a Blocked
        # BlockSpec; materialize halo-duplicated tiles once.  With large
        # tile_oh the duplicated halo is only (k-s)/tile_ih of the input.
        # TODO(synk): replace with a manual double-buffered halo DMA
        # (memory_space=pl.ANY + pltpu.make_async_copy) to drop the extra
        # HBM round trip entirely.
        x_in = jnp.stack(
            [lax.slice_in_dim(xp, t * tile_oh * s, t * tile_oh * s + tile_ih,
                              axis=1)
             for t in range(n_t)], axis=1)              # (B, n_t, tile_ih, Wp, C1)
        x_spec = pl.BlockSpec((None, None, tile_ih, wp, C1),
                              lambda b, co, t: (b, t, 0, 0, 0))

    # (Cout, Cin, kh, kw) -> (kh*kw, Cin, Cout), kept in the activation dtype so
    # bf16 inputs use the fast MXU path; accumulation is f32 via
    # preferred_element_type inside the kernel.
    w_taps = jnp.transpose(weight, (2, 3, 1, 0)).reshape(kh * kw, C1, C2)
    w_taps = w_taps.astype(x.dtype)

    # Fold BatchNorm (inference mode, running stats) into per-channel scale/bias.
    inv_std = 1.0 / jnp.sqrt(running_var.astype(jnp.float32) + eps)
    scale = (gamma.astype(jnp.float32) * inv_std).reshape(1, C2)
    bias = (beta.astype(jnp.float32)
            - running_mean.astype(jnp.float32) * gamma.astype(jnp.float32)
            * inv_std).reshape(1, C2)

    flops = 2 * B * ohp * ow * C2 * C1 * kh * kw + 5 * B * ohp * ow * C2
    bytes_accessed = int(x_in.size * itemsize
                         + B * ohp * ow * C2 * itemsize
                         + w_taps.size * jnp.dtype(w_taps.dtype).itemsize
                         + 4 * C2 * 4)

    kernel = functools.partial(
        _conv_bn_silu_kernel, kh=kh, kw=kw, stride=s,
        tile_oh=tile_oh, ow=ow, cin=C1, tile_co=tile_co)

    out_nhwc = pl.pallas_call(
        kernel,
        out_shape=jax.ShapeDtypeStruct((B, ohp, ow, C2), x.dtype),
        grid_spec=pltpu.PrefetchScalarGridSpec(
            num_scalar_prefetch=0,
            # t is the fastest axis: the (kh*kw, Cin, TILE_CO) weight block and
            # scale/bias stay resident in VMEM across all row tiles.
            grid=(B, n_co, n_t),
            in_specs=[
                x_spec,
                pl.BlockSpec((kh * kw, C1, tile_co),
                             lambda b, co, t: (0, 0, co)),
                pl.BlockSpec((1, tile_co), lambda b, co, t: (0, co)),
                pl.BlockSpec((1, tile_co), lambda b, co, t: (0, co)),
            ],
            out_specs=pl.BlockSpec((None, tile_oh, ow, tile_co),
                                   lambda b, co, t: (b, t, 0, co)),
            scratch_shapes=[pltpu.VMEM((tile_oh * ow, tile_co), jnp.float32)],
        ),
        compiler_params=pltpu.CompilerParams(
            dimension_semantics=("parallel", "parallel", "parallel"),
            vmem_limit_bytes=tune["vmem_limit"]),
        cost_estimate=pl.CostEstimate(
            flops=flops,
            transcendentals=B * ohp * ow * C2,
            bytes_accessed=bytes_accessed),
    )(x_in, w_taps, scale, bias)

    if ohp != oh:
        out_nhwc = out_nhwc[:, :oh]
    # TODO(synk): keep activations NHWC across the whole model to drop this
    # transpose (and the NCHW->NHWC one on the input).
    return jnp.transpose(out_nhwc, (0, 3, 1, 2))       # back to NCHW


def conv_bn_silu_reference(x, weight, gamma, beta, running_mean, running_var,
                           *, k=1, s=1, p=None, g=1, eps=1e-5):
    """Pure-JAX reference mirroring the PyTorch Conv.forward (eval-mode BN)."""
    pad = autopad(k, p)
    y = lax.conv_general_dilated(
        x.astype(jnp.float32), weight.astype(jnp.float32),
        window_strides=(s, s), padding=[(pad, pad), (pad, pad)],
        dimension_numbers=("NCHW", "OIHW", "NCHW"),
        feature_group_count=g)
    scale = gamma / jnp.sqrt(running_var + eps)
    bias = beta - running_mean * scale
    y = y * scale[None, :, None, None] + bias[None, :, None, None]
    y = y * jax.nn.sigmoid(y)
    return y.astype(x.dtype)


if __name__ == "__main__":
    key = jax.random.PRNGKey(0)
    B, C1, C2, H, W = 2, 4, 8, 16, 16

    # Exercise both input paths: 3x3/s1 (halo row tiles) and 1x1/s1 (direct).
    for (k_size, stride) in ((3, 1), (1, 1)):
        key, k_x, k_w, k_g, k_b, k_m, k_v = jax.random.split(key, 7)

        x = jax.random.normal(k_x, (B, C1, H, W), dtype=jnp.float32)

        # Conv2d default init: U(-1/sqrt(fan_in), 1/sqrt(fan_in)).
        fan_in = C1 * k_size * k_size
        bound = 1.0 / math.sqrt(fan_in)
        weight = jax.random.uniform(k_w, (C2, C1, k_size, k_size),
                                    dtype=jnp.float32, minval=-bound,
                                    maxval=bound)

        gamma = jax.random.uniform(k_g, (C2,), dtype=jnp.float32,
                                   minval=0.5, maxval=1.5)
        beta = 0.1 * jax.random.normal(k_b, (C2,), dtype=jnp.float32)
        running_mean = 0.1 * jax.random.normal(k_m, (C2,), dtype=jnp.float32)
        running_var = jax.random.uniform(k_v, (C2,), dtype=jnp.float32,
                                         minval=0.5, maxval=1.5)

        out = conv_bn_silu_forward(x, weight, gamma, beta, running_mean,
                                   running_var, k=k_size, s=stride)
        out = jax.block_until_ready(out)

        ref = conv_bn_silu_reference(x, weight, gamma, beta, running_mean,
                                     running_var, k=k_size, s=stride)
        np.testing.assert_allclose(np.asarray(out), np.asarray(ref),
                                   rtol=1e-4, atol=1e-4)

    print("KERNEL_OK")
</pallas_src>

<mosaic_0001>
module attributes {stable_mosaic.version = 11 : i64} {
  func.func @_conv_bn_silu_kernel(%arg0: i32, %arg1: i32, %arg2: i32, %arg3: memref<1x1x18x18x4xf32, #tpu.memory_space<vmem>>, %arg4: memref<9x4x8xf32, #tpu.memory_space<vmem>>, %arg5: memref<1x8xf32, #tpu.memory_space<vmem>>, %arg6: memref<1x8xf32, #tpu.memory_space<vmem>>, %arg7: memref<1x16x16x8xf32, #tpu.memory_space<vmem>>, %arg8: memref<256x8xf32, #tpu.memory_space<vmem>>) attributes {dimension_semantics = [#tpu.dimension_semantics<parallel>, #tpu.dimension_semantics<parallel>, #tpu.dimension_semantics<parallel>], iteration_bounds = array<i64: 2, 1, 1>, scalar_prefetch = 0 : i64, scratch_operands = 1 : i64, tpu.core_type = #tpu.core_type<tc>, window_params = [{transform_indices = @transform_0, window_bounds = array<i64: 1, 1, 18, 18, 4>}, {transform_indices = @transform_1, window_bounds = array<i64: 9, 4, 8>}, {transform_indices = @transform_2, window_bounds = array<i64: 1, 8>}, {transform_indices = @transform_3, window_bounds = array<i64: 1, 8>}, {transform_indices = @transform_4, window_bounds = array<i64: 1, 16, 16, 8>}]} {
    %c0 = arith.constant 0 : index
    %c0_0 = arith.constant 0 : index
    %c0_1 = arith.constant 0 : index
    %c0_2 = arith.constant 0 : index
    %c0_3 = arith.constant 0 : index
    %0 = vector.load %arg3[%c0, %c0_0, %c0_1, %c0_2, %c0_3] : memref<1x1x18x18x4xf32, #tpu.memory_space<vmem>>, vector<1x1x16x16x4xf32>
    %1 = vector.shape_cast %0 : vector<1x1x16x16x4xf32> to vector<16x16x4xf32>
    %2 = vector.shape_cast %1 : vector<16x16x4xf32> to vector<256x4xf32>
    %c0_4 = arith.constant 0 : index
    %c0_5 = arith.constant 0 : index
    %c0_6 = arith.constant 0 : index
    %3 = vector.load %arg4[%c0_4, %c0_5, %c0_6] : memref<9x4x8xf32, #tpu.memory_space<vmem>>, vector<1x4x8xf32>
    %4 = vector.shape_cast %3 : vector<1x4x8xf32> to vector<4x8xf32>
    %cst = arith.constant dense<0.000000e+00> : vector<256x8xf32>
    %5 = tpu.matmul %2, %4, %cst {dimension_numbers = #tpu.dot_dimension_numbers<[1], [0], [0], [1], [0, 0, 1, 1], [], []>} : vector<256x4xf32>, vector<4x8xf32>, vector<256x8xf32> -> vector<256x8xf32>
    %c0_7 = arith.constant 0 : index
    %c0_8 = arith.constant 0 : index
    %6 = vector.load %arg8[%c0_7, %c0_8] : memref<256x8xf32, #tpu.memory_space<vmem>>, vector<256x8xf32>
    tpu.vector_store %arg8[%c0_7, %c0_8], %5 {strides = array<i32>} : memref<256x8xf32, #tpu.memory_space<vmem>>, vector<256x8xf32>,
    %c0_9 = arith.constant 0 : index
    %c0_10 = arith.constant 0 : index
    %c0_11 = arith.constant 0 : index
    %c1 = arith.constant 1 : index
    %c0_12 = arith.constant 0 : index
    %7 = vector.load %arg3[%c0_9, %c0_10, %c0_11, %c1, %c0_12] : memref<1x1x18x18x4xf32, #tpu.memory_space<vmem>>, vector<1x1x16x16x4xf32>
    %8 = vector.shape_cast %7 : vector<1x1x16x16x4xf32> to vector<16x16x4xf32>
    %9 = vector.shape_cast %8 : vector<16x16x4xf32> to vector<256x4xf32>
    %c1_13 = arith.constant 1 : index
    %c0_14 = arith.constant 0 : index
    %c0_15 = arith.constant 0 : index
    %10 = vector.load %arg4[%c1_13, %c0_14, %c0_15] : memref<9x4x8xf32, #tpu.memory_space<vmem>>, vector<1x4x8xf32>
    %11 = vector.shape_cast %10 : vector<1x4x8xf32> to vector<4x8xf32>
    %cst_16 = arith.constant dense<0.000000e+00> : vector<256x8xf32>
    %12 = tpu.matmul %9, %11, %cst_16 {dimension_numbers = #tpu.dot_dimension_numbers<[1], [0], [0], [1], [0, 0, 1, 1], [], []>} : vector<256x4xf32>, vector<4x8xf32>, vector<256x8xf32> -> vector<256x8xf32>
    %c0_17 = arith.constant 0 : index
    %c0_18 = arith.constant 0 : index
    %13 = vector.load %arg8[%c0_17, %c0_18] : memref<256x8xf32, #tpu.memory_space<vmem>>, vector<256x8xf32>
    %14 = arith.addf %13, %12 : vector<256x8xf32>
    %c0_19 = arith.constant 0 : index
    %c0_20 = arith.constant 0 : index
    %15 = vector.load %arg8[%c0_19, %c0_20] : memref<256x8xf32, #tpu.memory_space<vmem>>, vector<256x8xf32>
    tpu.vector_store %arg8[%c0_19, %c0_20], %14 {strides = array<i32>} : memref<256x8xf32, #tpu.memory_space<vmem>>, vector<256x8xf32>,
    %c0_21 = arith.constant 0 : index
    %c0_22 = arith.constant 0 : index
    %c0_23 = arith.constant 0 : index
    %c2 = arith.constant 2 : index
    %c0_24 = arith.constant 0 : index
    %16 = vector.load %arg3[%c0_21, %c0_22, %c0_23, %c2, %c0_24] : memref<1x1x18x18x4xf32, #tpu.memory_space<vmem>>, vector<1x1x16x16x4xf32>
    %17 = vector.shape_cast %16 : vector<1x1x16x16x4xf32> to vector<16x16x4xf32>
    %18 = vector.shape_cast %17 : vector<16x16x4xf32> to vector<256x4xf32>
    %c2_25 = arith.constant 2 : index
    %c0_26 = arith.constant 0 : index
    %c0_27 = arith.constant 0 : index
    %19 = vector.load %arg4[%c2_25, %c0_26, %c0_27] : memref<9x4x8xf32, #tpu.memory_space<vmem>>, vector<1x4x8xf32>
    %20 = vector.shape_cast %19 : vector<1x4x8xf32> to vector<4x8xf32>
    %cst_28 = arith.constant dense<0.000000e+00> : vector<256x8xf32>
    %21 = tpu.matmul %18, %20, %cst_28 {dimension_numbers = #tpu.dot_dimension_numbers<[1], [0], [0], [1], [0, 0, 1, 1], [], []>} : vector<256x4xf32>, vector<4x8xf32>, vector<256x8xf32> -> vector<256x8xf32>
    %c0_29 = arith.constant 0 : index
    %c0_30 = arith.constant 0 : index
    %22 = vector.load %arg8[%c0_29, %c0_30] : memref<256x8xf32, #tpu.memory_space<vmem>>, vector<256x8xf32>
    %23 = arith.addf %22, %21 : vector<256x8xf32>
    %c0_31 = arith.constant 0 : index
    %c0_32 = arith.constant 0 : index
    %24 = vector.load %arg8[%c0_31, %c0_32] : memref<256x8xf32, #tpu.memory_space<vmem>>, vector<256x8xf32>
    tpu.vector_store %arg8[%c0_31, %c0_32], %23 {strides = array<i32>} : memref<256x8xf32, #tpu.memory_space<vmem>>, vector<256x8xf32>,
    %c0_33 = arith.constant 0 : index
    %c0_34 = arith.constant 0 : index
    %c1_35 = arith.constant 1 : index
    %c0_36 = arith.constant 0 : index
    %c0_37 = arith.constant 0 : index
    %25 = vector.load %arg3[%c0_33, %c0_34, %c1_35, %c0_36, %c0_37] : memref<1x1x18x18x4xf32, #tpu.memory_space<vmem>>, vector<1x1x16x16x4xf32>
    %26 = vector.shape_cast %25 : vector<1x1x16x16x4xf32> to vector<16x16x4xf32>
    %27 = vector.shape_cast %26 : vector<16x16x4xf32> to vector<256x4xf32>
    %c3 = arith.constant 3 : index
    %c0_38 = arith.constant 0 : index
    %c0_39 = arith.constant 0 : index
    %28 = vector.load %arg4[%c3, %c0_38, %c0_39] : memref<9x4x8xf32, #tpu.memory_space<vmem>>, vector<1x4x8xf32>
    %29 = vector.shape_cast %28 : vector<1x4x8xf32> to vector<4x8xf32>
    %cst_40 = arith.constant dense<0.000000e+00> : vector<256x8xf32>
    %30 = tpu.matmul %27, %29, %cst_40 {dimension_numbers = #tpu.dot_dimension_numbers<[1], [0], [0], [1], [0, 0, 1, 1], [], []>} : vector<256x4xf32>, vector<4x8xf32>, vector<256x8xf32> -> vector<256x8xf32>
    %c0_41 = arith.constant 0 : index
    %c0_42 = arith.constant 0 : index
    %31 = vector.load %arg8[%c0_41, %c0_42] : memref<256x8xf32, #tpu.memory_space<vmem>>, vector<256x8xf32>
    %32 = arith.addf %31, %30 : vector<256x8xf32>
    %c0_43 = arith.constant 0 : index
    %c0_44 = arith.constant 0 : index
    %33 = vector.load %arg8[%c0_43, %c0_44] : memref<256x8xf32, #tpu.memory_space<vmem>>, vector<256x8xf32>
    tpu.vector_store %arg8[%c0_43, %c0_44], %32 {strides = array<i32>} : memref<256x8xf32, #tpu.memory_space<vmem>>, vector<256x8xf32>,
    %c0_45 = arith.constant 0 : index
    %c0_46 = arith.constant 0 : index
    %c1_47 = arith.constant 1 : index
    %c1_48 = arith.constant 1 : index
    %c0_49 = arith.constant 0 : index
    %34 = vector.load %arg3[%c0_45, %c0_46, %c1_47, %c1_48, %c0_49] : memref<1x1x18x18x4xf32, #tpu.memory_space<vmem>>, vector<1x1x16x16x4xf32>
    %35 = vector.shape_cast %34 : vector<1x1x16x16x4xf32> to vector<16x16x4xf32>
    %36 = vector.shape_cast %35 : vector<16x16x4xf32> to vector<256x4xf32>
    %c4 = arith.constant 4 : index
    %c0_50 = arith.constant 0 : index
    %c0_51 = arith.constant 0 : index
    %37 = vector.load %arg4[%c4, %c0_50, %c0_51] : memref<9x4x8xf32, #tpu.memory_space<vmem>>, vector<1x4x8xf32>
    %38 = vector.shape_cast %37 : vector<1x4x8xf32> to vector<4x8xf32>
    %cst_52 = arith.constant dense<0.000000e+00> : vector<256x8xf32>
    %39 = tpu.matmul %36, %38, %cst_52 {dimension_numbers = #tpu.dot_dimension_numbers<[1], [0], [0], [1], [0, 0, 1, 1], [], []>} : vector<256x4xf32>, vector<4x8xf32>, vector<256x8xf32> -> vector<256x8xf32>
    %c0_53 = arith.constant 0 : index
    %c0_54 = arith.constant 0 : index
    %40 = vector.load %arg8[%c0_53, %c0_54] : memref<256x8xf32, #tpu.memory_space<vmem>>, vector<256x8xf32>
    %41 = arith.addf %40, %39 : vector<256x8xf32>
    %c0_55 = arith.constant 0 : index
    %c0_56 = arith.constant 0 : index
    %42 = vector.load %arg8[%c0_55, %c0_56] : memref<256x8xf32, #tpu.memory_space<vmem>>, vector<256x8xf32>
    tpu.vector_store %arg8[%c0_55, %c0_56], %41 {strides = array<i32>} : memref<256x8xf32, #tpu.memory_space<vmem>>, vector<256x8xf32>,
    %c0_57 = arith.constant 0 : index
    %c0_58 = arith.constant 0 : index
    %c1_59 = arith.constant 1 : index
    %c2_60 = arith.constant 2 : index
    %c0_61 = arith.constant 0 : index
    %43 = vector.load %arg3[%c0_57, %c0_58, %c1_59, %c2_60, %c0_61] : memref<1x1x18x18x4xf32, #tpu.memory_space<vmem>>, vector<1x1x16x16x4xf32>
    %44 = vector.shape_cast %43 : vector<1x1x16x16x4xf32> to vector<16x16x4xf32>
    %45 = vector.shape_cast %44 : vector<16x16x4xf32> to vector<256x4xf32>
    %c5 = arith.constant 5 : index
    %c0_62 = arith.constant 0 : index
    %c0_63 = arith.constant 0 : index
    %46 = vector.load %arg4[%c5, %c0_62, %c0_63] : memref<9x4x8xf32, #tpu.memory_space<vmem>>, vector<1x4x8xf32>
    %47 = vector.shape_cast %46 : vector<1x4x8xf32> to vector<4x8xf32>
    %cst_64 = arith.constant dense<0.000000e+00> : vector<256x8xf32>
    %48 = tpu.matmul %45, %47, %cst_64 {dimension_numbers = #tpu.dot_dimension_numbers<[1], [0], [0], [1], [0, 0, 1, 1], [], []>} : vector<256x4xf32>, vector<4x8xf32>, vector<256x8xf32> -> vector<256x8xf32>
    %c0_65 = arith.constant 0 : index
    %c0_66 = arith.constant 0 : index
    %49 = vector.load %arg8[%c0_65, %c0_66] : memref<256x8xf32, #tpu.memory_space<vmem>>, vector<256x8xf32>
    %50 = arith.addf %49, %48 : vector<256x8xf32>
    %c0_67 = arith.constant 0 : index
    %c0_68 = arith.constant 0 : index
    %51 = vector.load %arg8[%c0_67, %c0_68] : memref<256x8xf32, #tpu.memory_space<vmem>>, vector<256x8xf32>
    tpu.vector_store %arg8[%c0_67, %c0_68], %50 {strides = array<i32>} : memref<256x8xf32, #tpu.memory_space<vmem>>, vector<256x8xf32>,
    %c0_69 = arith.constant 0 : index
    %c0_70 = arith.constant 0 : index
    %c2_71 = arith.constant 2 : index
    %c0_72 = arith.constant 0 : index
    %c0_73 = arith.constant 0 : index
    %52 = vector.load %arg3[%c0_69, %c0_70, %c2_71, %c0_72, %c0_73] : memref<1x1x18x18x4xf32, #tpu.memory_space<vmem>>, vector<1x1x16x16x4xf32>
    %53 = vector.shape_cast %52 : vector<1x1x16x16x4xf32> to vector<16x16x4xf32>
    %54 = vector.shape_cast %53 : vector<16x16x4xf32> to vector<256x4xf32>
    %c6 = arith.constant 6 : index
    %c0_74 = arith.constant 0 : index
    %c0_75 = arith.constant 0 : index
    %55 = vector.load %arg4[%c6, %c0_74, %c0_75] : memref<9x4x8xf32, #tpu.memory_space<vmem>>, vector<1x4x8xf32>
    %56 = vector.shape_cast %55 : vector<1x4x8xf32> to vector<4x8xf32>
    %cst_76 = arith.constant dense<0.000000e+00> : vector<256x8xf32>
    %57 = tpu.matmul %54, %56, %cst_76 {dimension_numbers = #tpu.dot_dimension_numbers<[1], [0], [0], [1], [0, 0, 1, 1], [], []>} : vector<256x4xf32>, vector<4x8xf32>, vector<256x8xf32> -> vector<256x8xf32>
    %c0_77 = arith.constant 0 : index
    %c0_78 = arith.constant 0 : index
    %58 = vector.load %arg8[%c0_77, %c0_78] : memref<256x8xf32, #tpu.memory_space<vmem>>, vector<256x8xf32>
    %59 = arith.addf %58, %57 : vector<256x8xf32>
    %c0_79 = arith.constant 0 : index
    %c0_80 = arith.constant 0 : index
    %60 = vector.load %arg8[%c0_79, %c0_80] : memref<256x8xf32, #tpu.memory_space<vmem>>, vector<256x8xf32>
    tpu.vector_store %arg8[%c0_79, %c0_80], %59 {strides = array<i32>} : memref<256x8xf32, #tpu.memory_space<vmem>>, vector<256x8xf32>,
    %c0_81 = arith.constant 0 : index
    %c0_82 = arith.constant 0 : index
    %c2_83 = arith.constant 2 : index
    %c1_84 = arith.constant 1 : index
    %c0_85 = arith.constant 0 : index
    %61 = vector.load %arg3[%c0_81, %c0_82, %c2_83, %c1_84, %c0_85] : memref<1x1x18x18x4xf32, #tpu.memory_space<vmem>>, vector<1x1x16x16x4xf32>
    %62 = vector.shape_cast %61 : vector<1x1x16x16x4xf32> to vector<16x16x4xf32>
    %63 = vector.shape_cast %62 : vector<16x16x4xf32> to vector<256x4xf32>
    %c7 = arith.constant 7 : index
    %c0_86 = arith.constant 0 : index
    %c0_87 = arith.constant 0 : index
    %64 = vector.load %arg4[%c7, %c0_86, %c0_87] : memref<9x4x8xf32, #tpu.memory_space<vmem>>, vector<1x4x8xf32>
    %65 = vector.shape_cast %64 : vector<1x4x8xf32> to vector<4x8xf32>
    %cst_88 = arith.constant dense<0.000000e+00> : vector<256x8xf32>
    %66 = tpu.matmul %63, %65, %cst_88 {dimension_numbers = #tpu.dot_dimension_numbers<[1], [0], [0], [1], [0, 0, 1, 1], [], []>} : vector<256x4xf32>, vector<4x8xf32>, vector<256x8xf32> -> vector<256x8xf32>
    %c0_89 = arith.constant 0 : index
    %c0_90 = arith.constant 0 : index
    %67 = vector.load %arg8[%c0_89, %c0_90] : memref<256x8xf32, #tpu.memory_space<vmem>>, vector<256x8xf32>
    %68 = arith.addf %67, %66 : vector<256x8xf32>
    %c0_91 = arith.constant 0 : index
    %c0_92 = arith.constant 0 : index
    %69 = vector.load %arg8[%c0_91, %c0_92] : memref<256x8xf32, #tpu.memory_space<vmem>>, vector<256x8xf32>
    tpu.vector_store %arg8[%c0_91, %c0_92], %68 {strides = array<i32>} : memref<256x8xf32, #tpu.memory_space<vmem>>, vector<256x8xf32>,
    %c0_93 = arith.constant 0 : index
    %c0_94 = arith.constant 0 : index
    %c2_95 = arith.constant 2 : index
    %c2_96 = arith.constant 2 : index
    %c0_97 = arith.constant 0 : index
    %70 = vector.load %arg3[%c0_93, %c0_94, %c2_95, %c2_96, %c0_97] : memref<1x1x18x18x4xf32, #tpu.memory_space<vmem>>, vector<1x1x16x16x4xf32>
    %71 = vector.shape_cast %70 : vector<1x1x16x16x4xf32> to vector<16x16x4xf32>
    %72 = vector.shape_cast %71 : vector<16x16x4xf32> to vector<256x4xf32>
    %c8 = arith.constant 8 : index
    %c0_98 = arith.constant 0 : index
    %c0_99 = arith.constant 0 : index
    %73 = vector.load %arg4[%c8, %c0_98, %c0_99] : memref<9x4x8xf32, #tpu.memory_space<vmem>>, vector<1x4x8xf32>
    %74 = vector.shape_cast %73 : vector<1x4x8xf32> to vector<4x8xf32>
    %cst_100 = arith.constant dense<0.000000e+00> : vector<256x8xf32>
    %75 = tpu.matmul %72, %74, %cst_100 {dimension_numbers = #tpu.dot_dimension_numbers<[1], [0], [0], [1], [0, 0, 1, 1], [], []>} : vector<256x4xf32>, vector<4x8xf32>, vector<256x8xf32> -> vector<256x8xf32>
    %c0_101 = arith.constant 0 : index
    %c0_102 = arith.constant 0 : index
    %76 = vector.load %arg8[%c0_101, %c0_102] : memref<256x8xf32, #tpu.memory_space<vmem>>, vector<256x8xf32>
    %77 = arith.addf %76, %75 : vector<256x8xf32>
    %c0_103 = arith.constant 0 : index
    %c0_104 = arith.constant 0 : index
    %78 = vector.load %arg8[%c0_103, %c0_104] : memref<256x8xf32, #tpu.memory_space<vmem>>, vector<256x8xf32>
    tpu.vector_store %arg8[%c0_103, %c0_104], %77 {strides = array<i32>} : memref<256x8xf32, #tpu.memory_space<vmem>>, vector<256x8xf32>,
    %c0_105 = arith.constant 0 : index
    %c0_106 = arith.constant 0 : index
    %79 = vector.load %arg8[%c0_105, %c0_106] : memref<256x8xf32, #tpu.memory_space<vmem>>, vector<256x8xf32>
    %c0_107 = arith.constant 0 : index
    %c0_108 = arith.constant 0 : index
    %80 = vector.load %arg5[%c0_107, %c0_108] : memref<1x8xf32, #tpu.memory_space<vmem>>, vector<1x8xf32>
    %81 = vector.broadcast %80 : vector<1x8xf32> to vector<256x8xf32>
    %82 = arith.mulf %79, %81 : vector<256x8xf32>
    %c0_109 = arith.constant 0 : index
    %c0_110 = arith.constant 0 : index
    %83 = vector.load %arg6[%c0_109, %c0_110] : memref<1x8xf32, #tpu.memory_space<vmem>>, vector<1x8xf32>
    %84 = vector.broadcast %83 : vector<1x8xf32> to vector<256x8xf32>
    %85 = arith.addf %82, %84 : vector<256x8xf32>
    %86 = arith.negf %85 : vector<256x8xf32>
    %87 = math.exp %86 : vector<256x8xf32>
    %cst_111 = arith.constant 1.000000e+00 : f32
    %88 = vector.broadcast %cst_111 : f32 to vector<256x8xf32>
    %89 = arith.addf %88, %87 : vector<256x8xf32>
    %90 = arith.divf %88, %89 : vector<256x8xf32>
    %91 = arith.mulf %85, %90 : vector<256x8xf32>
    %92 = vector.shape_cast %91 : vector<256x8xf32> to vector<16x16x8xf32>
    %c0_112 = arith.constant 0 : index
    %c0_113 = arith.constant 0 : index
    %c0_114 = arith.constant 0 : index
    %c0_115 = arith.constant 0 : index
    %93 = vector.load %arg7[%c0_112, %c0_113, %c0_114, %c0_115] : memref<1x16x16x8xf32, #tpu.memory_space<vmem>>, vector<1x16x16x8xf32>
    %94 = vector.shape_cast %93 : vector<1x16x16x8xf32> to vector<16x16x8xf32>
    %95 = vector.shape_cast %92 : vector<16x16x8xf32> to vector<1x16x16x8xf32>
    tpu.vector_store %arg7[%c0_112, %c0_113, %c0_114, %c0_115], %95 {strides = array<i32>} : memref<1x16x16x8xf32, #tpu.memory_space<vmem>>, vector<1x16x16x8xf32>,
    return
  }
  func.func @transform_0(%arg0: i32, %arg1: i32, %arg2: i32) -> (i32, i32, i32, i32, i32) {
    %c0_i32 = arith.constant 0 : i32
    %c0_i32_0 = arith.constant 0 : i32
    %c0_i32_1 = arith.constant 0 : i32
    %c0_i32_2 = arith.constant 0 : i32
    return %arg0, %arg2, %c0_i32, %c0_i32_0, %c0_i32_1 : i32, i32, i32, i32, i32
  }
  func.func @transform_1(%arg0: i32, %arg1: i32, %arg2: i32) -> (i32, i32, i32) {
    %c0_i32 = arith.constant 0 : i32
    %c0_i32_0 = arith.constant 0 : i32
    %c0_i32_1 = arith.constant 0 : i32
    return %c0_i32, %c0_i32_0, %arg1 : i32, i32, i32
  }
  func.func @transform_2(%arg0: i32, %arg1: i32, %arg2: i32) -> (i32, i32) {
    %c0_i32 = arith.constant 0 : i32
    %c0_i32_0 = arith.constant 0 : i32
    return %c0_i32, %arg1 : i32, i32
  }
  func.func @transform_3(%arg0: i32, %arg1: i32, %arg2: i32) -> (i32, i32) {
    %c0_i32 = arith.constant 0 : i32
    %c0_i32_0 = arith.constant 0 : i32
    return %c0_i32, %arg1 : i32, i32
  }
  func.func @transform_4(%arg0: i32, %arg1: i32, %arg2: i32) -> (i32, i32, i32, i32) {
    %c0_i32 = arith.constant 0 : i32
    %c0_i32_0 = arith.constant 0 : i32
    return %arg0, %arg2, %c0_i32, %arg1 : i32, i32, i32, i32
  }
}

</mosaic_0001>

<bundles_post_ra>
// kernel: tpu_custom_call.1
= control target key start
LH: loop header
LB: loop body
LE: loop exit
PB: predicated region body
PF: predicated region fallthrough
CT: control target
= control target key end

     0   :  { %9 = vsyncpa [#allocation4], 0  ;;  %s8381_s0 = inlined_call_operand.hbm [shape: f32[2,1,18,18,4], index: 0, kind: input, shape index: {}]   ;;  %s8382_s1 = inlined_call_operand.hbm [shape: f32[9,4,8], index: 1, kind: input, shape index: {}]   ;;  %s8383_s2 = inlined_call_operand.hbm [shape: f32[1,8], index: 2, kind: input, shape index: {}]   ;;  %s8384_s3 = inlined_call_operand.hbm [shape: f32[1,8], index: 3, kind: input, shape index: {}]   ;;  %s8385_s4 = inlined_call_operand.hbm [shape: f32[2,16,16,8], index: 4, kind: output, shape index: {}]  }
   0x1   :  { %11 = vsyncpa [#allocation4 + $0x1], 0 }
   0x2   :  { %12 = vsyncpa [#allocation7], 0 }
   0x3   :  { %13 = vsyncpa [#allocation10], 0 }
   0x4   :  { %14 = vsyncpa [#allocation5], 0 }
   0x5   :  { %16 = vsyncpa [#allocation5 + $0x1], 0  ;;  %s6604_s15 = smov 0   ;;  %s6606_s16 = smov 0  }
   0x6   :  { %s6608_s17 = smov 0   ;;  %s6610_s18 = smov 0  }
   0x7   :  { %s6612_s19 = smov 0   ;;  %s6614_s20 = smov 0  }
   0x8 LB: > { %s4841_s21 = sadd.s32 4294967295, %s6566_s20   ;;  %s4842_s22 = sadd.s32 4294967294, %s6566_s20   ;;  %s6566_s20 = sphi %s6614_s20, %s22_s20   ;;  %s6562_s19 = sphi %s6612_s19, %s8517_s19   ;;  %s6558_s18 = sphi %s6610_s18, %s8516_s18   ;;  %s6554_s17 = sphi %s6608_s17, %s8515_s17   ;;  %s6550_s16 = sphi %s6606_s16, %s8514_s16   ;;  %s6546_s15 = sphi %s6604_s15, %s8513_s15  }
   0x9   : > { %p63_p0 = scmp.ne.s32.totalorder %s6550_s16, %s6546_s15  ;;  %p6638_p1 = scmp.eq.s32.totalorder %s4841_s21, 0 }
   0xa   : > { %p6642_p2 = scmp.eq.s32.totalorder %s4841_s21, 1  ;;  %p175_p3 = scmp.eq.s32.totalorder %s4842_s22, 1 }
   0xb   : > { %s8438_s23 = scalar_select %p6638_p1, 1, 0 }
   0xc   : > { %s8439_s24 = scalar_select %p6642_p2, 1, 0 }
   0xd   : > { %p6648_p4 = por %p6638_p1, %p63_p0  ;;  %p4843_p5 = scmp.ge.s32.totalorder %s6566_s20, 1 }
   0xe   : > { %p6653_p6 = por %p175_p3, %p63_p0  ;;  %p182_p7 = scmp.lt.s32.totalorder %s6566_s20, 3 }
   0xf   : > { %s8440_s25 = scalar_select %p6648_p4, 1, 0 }
  0x10   : > { %s8441_s26 = scalar_select %p6653_p6, 1, 0 }
  0x11   : > { %p6658_p8 = pnand %p4843_p5, %p182_p7  ;;  %s6568_s28 = smov [#allocation6]  }
  0x12   : > { %8442 = sst [smem:[#allocation16_spill]] %s8441_s26  ;;  %s196_s29 = sshll.u32 %s6568_s28, 4  ;;  %s6662_s29 = int_to_ptr.vmem [resolvable:$true] %s196_s29 }
  0x13   : > { %s8443_s27 = scalar_select %p6658_p8, 1, 0 }
  0x14   : > { %p6151_p9 = pneg %p6658_p8  ;;  %s6569_s5 = smov [#allocation8]  }
  0x15   : > { %s212_s6 = sshll.u32 %s6569_s5, 4  ;;  %s6570_s7 = smov [#allocation9]   ;;  %s6673_s6 = int_to_ptr.vmem [resolvable:$true] %s212_s6 }
  0x16   : > { %p6669_p11 = pnand %p6151_p9, %p6638_p1  ;;  %s6675_s8 = sshll.u32 %s6570_s7, 4  ;;  %s226_s8 = int_to_ptr.vmem [resolvable:$true] %s6675_s8 }
  0x17   : > { %s6362_s11 = scalar_lea.hbm %s8382_s1, 576 }
  0x18   : > { %p6363_p12 = scmp.ne.s32.totalorder %s8382_s1, %s6362_s11  ;;  %p6685_p13 = pneg %p6669_p11 }
  0x19   : > { %p6369_p5 = scmp.lt.u32.totalorder %s6362_s11, %s8382_s1 }
  0x1a   : > { %p6365_p0 = pnand %p6685_p13, %p6363_p12 }
  0x1c   : > { %p6366_p3 = pneg %p6365_p0 }
  0x1e   : > { %p6371_p7 = pnand %p6369_p5, %p6366_p3 }
  0x20   : > { %6374 = shalt.err (!%p6371_p7)
}
  0x21   : > { %s6375_s28 = scalar_lea.vmem %s6662_s29, 576  ;;  %p6383_p1 = scmp.lt.s32.totalorder %s6662_s29, %s6662_s29 }
  0x22   : > { %p6376_p9 = scmp.ne.s32.totalorder %s6662_s29, %s6375_s28  ;;  %p6384_p4 = scmp.lt.s32.totalorder %s6375_s28, %s6375_s28 }
  0x24   : > { %p6378_p10 = pnand %p6376_p9, %p6685_p13  ;;  %p6385_p12 = por %p6384_p4, %p6383_p1 }
  0x26   : > { %p6379_p6 = pneg %p6378_p10 }
  0x28   : > { %p6386_p0 = pnand %p6385_p12, %p6379_p6 }
  0x2a   : > { %6389 = shalt.err (!%p6386_p0)
}
  0x2b   : > { %s6571_s5 = smov 64   ;;  %s6572_s7 = smov 4  }
  0x2c   : > { %6154 = dma.hbm_to_vmem [thread:$0]  (!%p6669_p11), %s8382_s1, 576, %s6662_s29, [#allocation7], %s6571_s5, %s6571_s5, %s6572_s7  }
  0x2d   : > { %s6390_s13 = scalar_lea.hbm %s8383_s2, 16 }
  0x2e   : > { %p6391_p1 = scmp.ne.s32.totalorder %s8383_s2, %s6390_s13  ;;  %p6397_p10 = scmp.lt.u32.totalorder %s6390_s13, %s8383_s2 }
  0x30   : > { %p6393_p4 = pnand %p6391_p1, %p6685_p13 }
  0x32   : > { %p6394_p6 = pneg %p6393_p4 }
  0x34   : > { %p6399_p3 = pnand %p6397_p10, %p6394_p6 }
  0x36   : > { %6402 = shalt.err (!%p6399_p3)
}
  0x37   : > { %s6403_s29 = scalar_lea.vmem %s6673_s6, 16  ;;  %s6410_s5 = scalar_lea.vmem %s6673_s6, 32 }
  0x38   : > { %p6404_p5 = scmp.ne.s32.totalorder %s6673_s6, %s6403_s29  ;;  %p6411_p12 = scmp.lt.s32.totalorder %s6673_s6, %s6673_s6 }
  0x39   : > { %p6412_p0 = scmp.lt.s32.totalorder %s6410_s5, %s6403_s29 }
  0x3a   : > { %p6406_p7 = pnand %p6404_p5, %p6685_p13 }
  0x3b   : > { %p6413_p1 = por %p6412_p0, %p6411_p12 }
  0x3c   : > { %p6407_p9 = pneg %p6406_p7 }
  0x3e   : > { %p6414_p4 = pnand %p6413_p1, %p6407_p9 }
  0x40   : > { %6417 = shalt.err (!%p6414_p4)
}
  0x41   : > { %6157 = dma.hbm_to_vmem [thread:$0]  (!%p6669_p11), %s8383_s2, 16, %s6673_s6, [#allocation7]  }
  0x42   : > { %s6418_s11 = scalar_lea.hbm %s8384_s3, 16 }
  0x43   : > { %p6419_p6 = scmp.ne.s32.totalorder %s8384_s3, %s6418_s11  ;;  %p6425_p5 = scmp.lt.u32.totalorder %s6418_s11, %s8384_s3 }
  0x45   : > { %p6421_p10 = pnand %p6419_p6, %p6685_p13 }
  0x47   : > { %p6422_p3 = pneg %p6421_p10 }
  0x49   : > { %p6427_p7 = pnand %p6425_p5, %p6422_p3 }
  0x4b   : > { %6430 = shalt.err (!%p6427_p7)
}
  0x4c   : > { %s6431_s28 = scalar_lea.vmem %s226_s8, 16  ;;  %s6438_s6 = scalar_lea.vmem %s226_s8, 32 }
  0x4d   : > { %p6432_p9 = scmp.ne.s32.totalorder %s226_s8, %s6431_s28  ;;  %p6439_p1 = scmp.lt.s32.totalorder %s226_s8, %s226_s8 }
  0x4e   : > { %p6440_p4 = scmp.lt.s32.totalorder %s6438_s6, %s6431_s28 }
  0x4f   : > { %p6434_p12 = pnand %p6432_p9, %p6685_p13 }
  0x50   : > { %p6441_p8 = por %p6440_p4, %p6439_p1 }
  0x51   : > { %p6435_p0 = pneg %p6434_p12 }
  0x53   : > { %p6442_p2 = pnand %p6441_p8, %p6435_p0 }
  0x55   : > { %6445 = shalt.err (!%p6442_p2)
}
  0x56   : > { %6160 = dma.hbm_to_vmem [thread:$0]  (!%p6669_p11), %s8384_s3, 16, %s226_s8, [#allocation10]  }
  0x57   : > { %s50_s14 = sadd.s32 1, %s6554_s17  ;;  %s41_s26 = sadd.s32 1, %s6562_s19 }
  0x58   : > { %p57_p2 = scmp.ne.s32.totalorder %s6554_s17, %s6550_s16  ;;  %p43_p8 = scmp.ge.s32.totalorder %s41_s26, 2 }
  0x59   : > { %p58_p13 = scmp.eq.s32.totalorder %s6566_s20, 0  ;;  %p8446_p6 = scmp.ne.s32.totalorder %s8439_s24, 0 }
  0x5a   : > { %p6172_p3 = scmp.lt.s32.totalorder %s6566_s20, 2  ;;  %s8519_s26 = smov (%p43_p8, %s41_s26), 0 }
  0x5b   : > { %p6756_p10 = por %p8446_p6, %p57_p2  ;;  %p59_p5 = por %p58_p13, %p57_p2 }
  0x5c   : > { %s236_s7 = sand.u32 1, %s6554_s17   ;;  %s45_s9 = ssub.s32 %s6562_s19, %s8519_s26 }
  0x5d   : > { %p48_p7 = scmp.eq.s32.totalorder %s45_s9, 0  ;;  %s6132_s8 = smul.u32 432, %s236_s7 }
  0x5e   : > { %s6133_s10 = smul.u32 6912, %s6562_s19  ;;  %p6767_p11 = pnand %p6172_p3, %p59_p5 }
  0x5f   : > { %s6772_s24 = scalar_select %p48_p7, %s6554_s17, %s50_s14  }
  0x60   : > { %s6777_s21 = scalar_lea.hbm %s8381_s0, %s6133_s10  ;;  %s240_s22 = scalar_lea.vmem [#allocation3], %s6132_s8 }
  0x61   : > { %s249_s28 = sshll.u32 %s240_s22, 4  ;;  %s6781_s6 = scalar_lea.sflag [#allocation4], %s236_s7  ;;  %s6779_s28 = int_to_ptr.vmem [resolvable:$true] %s249_s28 }
  0x62   : > { %s6446_s29 = scalar_lea.hbm %s6777_s21, 6912  ;;  %p6448_p12 = pneg %p6767_p11 }
  0x63   : > { %p6447_p9 = scmp.ne.s32.totalorder %s6777_s21, %s6446_s29  ;;  %s6451_s9 = scalar_lea.hbm %s8381_s0, 13824 }
  0x64   : > { %p6452_p4 = scmp.lt.u32.totalorder %s6777_s21, %s8381_s0  ;;  %p6453_p2 = scmp.lt.u32.totalorder %s6451_s9, %s6446_s29 }
  0x65   : > { %p6449_p0 = pnand %p6448_p12, %p6447_p9  ;;  %p6455_p13 = scmp.lt.u32.totalorder %s6446_s29, %s6777_s21 }
  0x66   : > { %p6454_p8 = por %p6453_p2, %p6452_p4 }
  0x67   : > { %p6450_p1 = pneg %p6449_p0 }
  0x68   : > { %p6456_p6 = por %p6455_p13, %p6454_p8 }
  0x6a   : > { %p6457_p3 = pnand %p6456_p6, %p6450_p1 }
  0x6c   : > { %6460 = shalt.err (!%p6457_p3)
}
  0x6d   : > { %s6461_s7 = scalar_lea.vmem %s6779_s28, 6912  ;;  %s6573_s8 = smov [#allocation3]  }
  0x6e   : > { %p6462_p5 = scmp.ne.s32.totalorder %s6779_s28, %s6461_s7  ;;  %s6466_s13 = sshll.u32 %s6573_s8, 4  ;;  %s6467_s13 = int_to_ptr.vmem [resolvable:$false] %s6466_s13 }
  0x6f   : > { %s6468_s22 = scalar_lea.vmem %s6467_s13, 13824  ;;  %p6469_p0 = scmp.lt.s32.totalorder %s6779_s28, %s6467_s13 }
  0x70   : > { %p6464_p7 = pnand %p6462_p5, %p6448_p12  ;;  %p6470_p4 = scmp.lt.s32.totalorder %s6468_s22, %s6461_s7 }
  0x72   : > { %p6465_p9 = pneg %p6464_p7  ;;  %p6471_p2 = por %p6470_p4, %p6469_p0 }
  0x74   : > { %p6472_p8 = pnand %p6471_p2, %p6465_p9 }
  0x76   : > { %6475 = shalt.err (!%p6472_p8)
}
  0x77   : > { %s6574_s29 = smov 128   ;;  %s6575_s5 = smov 8  }
  0x78   : > { %6164 = dma.hbm_to_vmem [thread:$0]  (!%p6767_p11), %s6777_s21, 6912, %s6779_s28, %s6781_s6, %s6574_s29, %s6574_s29, %s6575_s5  }
  0x79   : > { %p8449_p12 = scmp.ne.s32.totalorder %s8443_s27, 0 }
  0x7b   : > { %261 = sbr.rel (%p8449_p12) target bundleno = 712 (0x2c8), region = 36 }
  0x82   : > { %s6812_s14 = sand.u32 1, %s6550_s16   ;;  %p8450_p1 = scmp.ne.s32.totalorder %s8440_s25, 0 }
  0x83   : > { %s6134_s9 = smul.u32 432, %s6812_s14  ;;  %s264_s10 = scalar_lea.sflag [#allocation4], %s6812_s14 }
  0x85   : > { %s6816_s12 = scalar_lea.vmem [#allocation3], %s6134_s9 }
  0x86   : > { %6529 = dma.done.wait (%p8450_p1), %s264_s10, 6912  }
  0x87   : > { %6531 = vsyncadd (%p8450_p1), %s264_s10, 4294960384  ;;  %p8451_p11 = scmp.ne.s32.totalorder %s8438_s23, 0 }
  0x89   : > { %6533 = dma.done.wait (%p8451_p11), [#allocation7], 592  }
  0x8a   : > { %6535 = vsyncadd (%p8451_p11), [#allocation7], 4294966704 }
  0x8b   : > { %6537 = dma.done.wait (%p8451_p11), [#allocation10], 16  }
  0x8c   : > { %6539 = vsyncadd (%p8451_p11), [#allocation10], 4294967280  ;;  %vm435_vm0 = vcmask 1043456   ;;  %vm338_vm1 = vcmask 31744   ;;  %v337_v0 = vld [vmem:[#allocation6] sm:$0xf] }
  0x8d   : > { %v6831_v1 = vld [vmem:[%s6816_s12 + $0xc0] sm:$0xff]  ;;  %v6834_v2 = vld [vmem:[%s6816_s12 + $0xc8] sm:$0xff]  ;;  %6130 = vmatprep.subr.msk.mxu1 %vm435_vm0, %v337_v0  ;;  %v6840_v4 = vld [vmem:[%s6816_s12 + $0xd8] sm:$0xff]  ;;  %5680 = vmatprep.subr.msk.mxu0 %vm435_vm0, %v337_v0  ;;  %vm664_vm2 = vcmask 64512   ;;  %s4853_s23 = sshll.u32 %s6812_s14, 8  ;;  %s5382_s27 = sshll.u32 %s6558_s18, 12 }
  0x8e   : > { %5706 = vmatprep.mubr.msk.f32.mxu1 %vm338_vm1, %v6831_v1  ;;  %v730_v3 = vld [vmem:[#allocation6 + $0x4] sm:$0xf]  ;;  %6131 = vmatpush3.msk.msra.mxu1 %vm435_vm0, %v337_v0  ;;  %v306_v6 = vld [vmem:[%s6816_s12 + $0x8] sm:$0xff]  ;;  %v6861_v10 = vld [vmem:[%s6816_s12 + $0x18] sm:$0xff]  ;;  %s8105_s25 = scalar_lea.vmem [#allocation11], %s4853_s23  ;;  %s8325_s6 = scalar_lea.hbm %s8385_s4, %s5382_s27 }
  0x8f   : > { %v305_v5 = vld [vmem:[%s6816_s12] sm:$0xff]  ;;  %5707 = vmatmul.mubr.msk.f32.vlgmr.msra.gmra.mrb[0].mxu1 %vm338_vm1, %v6834_v2  ;;  %5730 = vmatprep.subr.msk.mxu1 %vm435_vm0, %v730_v3  ;;  %v1184_v7 = vld [vmem:[#allocation6 + $0x8] sm:$0xf]  ;;  %v6856_v9 = vld [vmem:[%s6816_s12 + $0xf0] sm:$0xff]  ;;  %s4715_s11 = sshll.u32 %s8105_s25, 4  ;;  %s4698_s18 = scalar_lea.sflag [#allocation5], %s6812_s14  ;;  %s8327_s11 = int_to_ptr.vmem [resolvable:$true] %s4715_s11 }
  0x90   : > { %5731 = vmatpush3.msk.msra.mxu1 %vm435_vm0, %v730_v3  ;;  %5709 = vmatprep.mubr.msk.f32.mxu1 %vm338_vm1, %v6840_v4  ;;  %v6853_v8 = vld [vmem:[%s6816_s12 + $0xe0] sm:$0xff]  ;;  %v6874_v12 = vld [vmem:[%s6816_s12 + $0xf8] sm:$0xff]  ;;  %v6879_v13 = vld [vmem:[%s6816_s12 + $0x30] sm:$0xff]  ;;  %s6476_s7 = scalar_lea.vmem %s8327_s11, 4096  ;;  %s6576_s8 = smov [#allocation11]  }
  0x91   : > { %5681 = vmatpush3.msk.msra.mxu0 %vm435_vm0, %v337_v0  ;;  %5682 = vmatprep.mubr.msk.f32.mxu0 %vm338_vm1, %v305_v5  ;;  %v6869_v11 = vld [vmem:[%s6816_s12 + $0x20] sm:$0xff]  ;;  %v6882_v14 = vld [vmem:[%s6816_s12 + $0x108] sm:$0xff]  ;;  %v6891_v15 = vld [vmem:[%s6816_s12 + $0x38] sm:$0xff]  ;;  %p6477_p13 = scmp.ne.s32.totalorder %s8327_s11, %s6476_s7  ;;  %s6480_s13 = sshll.u32 %s6576_s8, 4  ;;  %s6481_s13 = int_to_ptr.vmem [resolvable:$false] %s6480_s13 }
  0x92   : > { %5683 = vmatmul.mubr.msk.f32.vlgmr.msra.gmra.mrb[0].mxu0 %vm338_vm1, %v306_v6  ;;  %5780 = vmatprep.subr.msk.mxu0 %vm435_vm0, %v1184_v7  ;;  %v1639_v16 = vld [vmem:[#allocation6 + $0xc] sm:$0xf]  ;;  %v6896_v17 = vld [vmem:[%s6816_s12 + $0x110] sm:$0xff]  ;;  %v6903_v19 = vld [vmem:[%s6816_s12 + $0x120] sm:$0xff]  ;;  %s6482_s22 = scalar_lea.vmem %s6481_s13, 8192  ;;  %p6483_p5 = scmp.lt.s32.totalorder %s8327_s11, %s6481_s13 }
  0x93   : > { %5710 = vmatmul.mubr.msk.f32.gmra.mrb[2].mxu1 %vm338_vm1, %v6853_v8  ;;  %5781 = vmatpush3.msk.msra.mxu0 %vm435_vm0, %v1184_v7  ;;  %v6899_v18 = vld [vmem:[%s6816_s12 + $0x48] sm:$0xff]  ;;  %v2093_v20 = vld [vmem:[#allocation6 + $0x10] sm:$0xf]  ;;  %v6924_v24 = vld [vmem:[%s6816_s12 + $0x138] sm:$0xff]  ;;  %p6478_p6 = pnand %p6477_p13, %p6756_p10  ;;  %p6484_p7 = scmp.lt.s32.totalorder %s6482_s22, %s6476_s7 }
  0x94   : > { %5712 = vmatprep.mubr.msk.f32.mxu1 %vm338_vm1, %v6856_v9  ;;  %5685 = vmatprep.mubr.msk.f32.mxu0 %vm338_vm1, %v6861_v10  ;;  %v6912_v21 = vld [vmem:[%s6816_s12 + $0x50] sm:$0xff]  ;;  %v6917_v22 = vld [vmem:[%s6816_s12 + $0x128] sm:$0xff]  ;;  %v6920_v23 = vld [vmem:[%s6816_s12 + $0x60] sm:$0xff] }
  0x95   : > { %5830 = vmatprep.subr.msk.mxu1 %vm435_vm0, %v1639_v16  ;;  %5880 = vmatprep.subr.msk.mxu0 %vm435_vm0, %v2093_v20  ;;  %v6933_v25 = vld [vmem:[%s6816_s12 + $0x68] sm:$0xff]  ;;  %v6938_v26 = vld [vmem:[%s6816_s12 + $0x140] sm:$0xff]  ;;  %v6941_v27 = vld [vmem:[%s6816_s12 + $0x78] sm:$0xff]  ;;  %p6479_p3 = pneg %p6478_p6  ;;  %p6485_p9 = por %p6484_p7, %p6483_p5 }
  0x96   : > { %5686 = vmatmul.mubr.msk.f32.gmra.mrb[2].mxu0 %vm338_vm1, %v6869_v11  ;;  %v6944_v28 = vld [vmem:[%s6816_s12 + $0x150] sm:$0xff]  ;;  %v6953_v29 = vld [vmem:[%s6816_s12 + $0x80] sm:$0xff]  ;;  %v6958_v30 = vld [vmem:[%s6816_s12 + $0x158] sm:$0xff] }
  0x97   : > { %5713 = vmatmul.mubr.msk.f32.gmra.mrb[4].mxu1 %vm338_vm1, %v6874_v12  ;;  %5688 = vmatprep.mubr.msk.f32.mxu0 %vm338_vm1, %v6879_v13  ;;  %v6961_v31 = vld [vmem:[%s6816_s12 + $0x90] sm:$0xff]  ;;  %v6964_v32 = vld [vmem:[%s6816_s12 + $0x168] sm:$0xff]  ;;  %v6973_v33 = vld [vmem:[%s6816_s12 + $0x98] sm:$0xff]  ;;  %p6486_p0 = pnand %p6485_p9, %p6479_p3 }
  0x98   : > { %5715 = vmatprep.mubr.msk.f32.mxu1 %vm338_vm1, %v6882_v14  ;;  %8452 = vst [vmem:[#allocation17_spill] sm:$0xff] %v6964_v32  ;;  %v6978_v34 = vld [vmem:[%s6816_s12 + $0x170] sm:$0xff]  ;;  %v6981_v35 = vld [vmem:[%s6816_s12 + $0xa8] sm:$0xff]  ;;  %v6997_v40 = vld [vmem:[%s6816_s12 + $0x19] sm:$0xff] }
  0x99   : > { %8453 = vst [vmem:[#allocation18_spill] sm:$0xff] %v6978_v34  ;;  %v697_v36 = vld [vmem:[%s6816_s12 + $0x1] sm:$0xff]  ;;  %v6991_v37 = vld [vmem:[%s6816_s12 + $0xb0] sm:$0xff]  ;;  %v7032_v48 = vld [vmem:[%s6816_s12 + $0x39] sm:$0xff] }
  0x9a   : > { %5689 = vmatmul.mubr.msk.f32.gmra.mrb[4].mxu0 %vm338_vm1, %v6891_v15  ;;  %v698_v38 = vld [vmem:[%s6816_s12 + $0x9] sm:$0xff]  ;;  %v7001_v41 = vld [vmem:[#allocation6 + $0x14] sm:$0xf]  ;;  %v7016_v45 = vld [vmem:[%s6816_s12 + $0x1a] sm:$0xff] }
  0x9b   : > { %5716 = vmatmul.mubr.msk.f32.gmra.mrb[6].mxu1 %vm338_vm1, %v6896_v17  ;;  %5691 = vmatprep.mubr.msk.f32.mxu0 %vm338_vm1, %v6899_v18  ;;  %v1151_v39 = vld [vmem:[%s6816_s12 + $0x2] sm:$0xff]  ;;  %v1152_v42 = vld [vmem:[%s6816_s12 + $0xa] sm:$0xff]  ;;  %8454 = vst [vmem:[#allocation19_spill] sm:$0xff] %v7016_v45  ;;  %v7037_v49 = vld [vmem:[%s6816_s12 + $0x32] sm:$0xff] }
  0x9c   : > { %5718 = vmatprep.mubr.msk.f32.mxu1 %vm338_vm1, %v6903_v19  ;;  %v7010_v43 = vld [vmem:[%s6816_s12 + $0x21] sm:$0xff]  ;;  %v7013_v44 = vld [vmem:[%s6816_s12 + $0x31] sm:$0xff]  ;;  %8456 = vst [vmem:[#allocation21_spill] sm:$0xff] %v7037_v49  ;;  %v7040_v50 = vld [vmem:[%s6816_s12 + $0x49] sm:$0xff] }
  0x9d   : > { %v7021_v46 = vld [vmem:[#allocation6 + $0x18] sm:$0xf] }
  0x9e   : > { %5692 = vmatmul.mubr.msk.f32.gmra.mrb[6].mxu0 %vm338_vm1, %v6912_v21  ;;  %v7027_v47 = vld [vmem:[%s6816_s12 + $0x22] sm:$0xff]  ;;  %v7051_v51 = vld [vmem:[%s6816_s12 + $0x3a] sm:$0xff]  ;;  %v7056_v52 = vld [vmem:[%s6816_s12 + $0x51] sm:$0xff] }
  0x9f   : > { %5719 = vmatmul.mubr.msk.f32.gmra.mrb[8].mxu1 %vm338_vm1, %v6917_v22  ;;  %5694 = vmatprep.mubr.msk.f32.mxu0 %vm338_vm1, %v6920_v23  ;;  %8455 = vst [vmem:[#allocation20_spill] sm:$0xff] %v7027_v47  ;;  %8457 = vst [vmem:[#allocation22_spill] sm:$0xff] %v7051_v51  ;;  %v7059_v53 = vld [vmem:[%s6816_s12 + $0x4a] sm:$0xff]  ;;  %v7062_v54 = vld [vmem:[%s6816_s12 + $0x61] sm:$0xff] }
  0xa0   : > { %5721 = vmatprep.mubr.msk.f32.mxu1 %vm338_vm1, %v6924_v24  ;;  %8458 = vst [vmem:[#allocation23_spill] sm:$0xff] %v7059_v53  ;;  %v7071_v55 = vld [vmem:[%s6816_s12 + $0x52] sm:$0xff]  ;;  %v7076_v56 = vld [vmem:[%s6816_s12 + $0x69] sm:$0xff]  ;;  %v7096_v60 = vld [vmem:[%s6816_s12 + $0x81] sm:$0xff] }
  0xa1   : > { %8459 = vst [vmem:[#allocation24_spill] sm:$0xff] %v7071_v55  ;;  %v7079_v57 = vld [vmem:[%s6816_s12 + $0x62] sm:$0xff]  ;;  %v7082_v58 = vld [vmem:[%s6816_s12 + $0x79] sm:$0xff]  ;;  %v7091_v59 = vld [vmem:[%s6816_s12 + $0x6a] sm:$0xff] }
  0xa2   : > { %5695 = vmatmul.mubr.msk.f32.gmra.mrb[8].mxu0 %vm338_vm1, %v6933_v25  ;;  %8460 = vst [vmem:[#allocation25_spill] sm:$0xff] %v7079_v57  ;;  %8461 = vst [vmem:[#allocation26_spill] sm:$0xff] %v7091_v59  ;;  %v7099_v61 = vld [vmem:[%s6816_s12 + $0x7a] sm:$0xff]  ;;  %v7102_v62 = vld [vmem:[%s6816_s12 + $0x91] sm:$0xff] }
  0xa3   : > { %5722 = vmatmul.mubr.msk.f32.gmra.mrb[10].mxu1 %vm338_vm1, %v6938_v26  ;;  %5697 = vmatprep.mubr.msk.f32.mxu0 %vm338_vm1, %v6941_v27  ;;  %8462 = vst [vmem:[#allocation27_spill] sm:$0xff] %v7099_v61  ;;  %v7111_v63 = vld [vmem:[%s6816_s12 + $0x82] sm:$0xff]  ;;  %v7116_v0 = vld [vmem:[%s6816_s12 + $0x99] sm:$0xff]  ;;  %v7136_v7 = vld [vmem:[%s6816_s12 + $0xb1] sm:$0xff] }
  0xa4   : > { %5724 = vmatprep.mubr.msk.f32.mxu1 %vm338_vm1, %v6944_v28  ;;  %8463 = vst [vmem:[#allocation28_spill] sm:$0xff] %v7111_v63  ;;  %v7119_v3 = vld [vmem:[%s6816_s12 + $0x92] sm:$0xff]  ;;  %v7122_v5 = vld [vmem:[%s6816_s12 + $0xa9] sm:$0xff]  ;;  %v7131_v6 = vld [vmem:[%s6816_s12 + $0x9a] sm:$0xff] }
  0xa5   : > { %8464 = vst [vmem:[#allocation29_spill] sm:$0xff] %v7119_v3  ;;  %8465 = vst [vmem:[#allocation30_spill] sm:$0xff] %v7131_v6 }
  0xa6   : > { %5698 = vmatmul.mubr.msk.f32.gmra.mrb[10].mxu0 %vm338_vm1, %v6953_v29 }
  0xa7   : > { %5725 = vmatmul.mubr.msk.f32.gmra.mrb[12].mxu1 %vm338_vm1, %v6958_v30  ;;  %5700 = vmatprep.mubr.msk.f32.mxu0 %vm338_vm1, %v6961_v31 }
  0xa8   : > { %5727 = vmatprep.mubr.msk.f32.mxu1 %vm338_vm1, %v6964_v32  ;;  %v7299_v32 = vld [vmem:[%s6816_s12 + $0x16a] sm:$0xff] }
  0xaa   : > { %5701 = vmatmul.mubr.msk.f32.gmra.mrb[12].mxu0 %vm338_vm1, %v6973_v33 }
  0xab   : > { %5728 = vmatmul.mubr.msk.f32.gmra.mrb[14].mxu1 %vm338_vm1, %v6978_v34  ;;  %5703 = vmatprep.mubr.msk.f32.mxu0 %vm338_vm1, %v6981_v35  ;;  %v7282_v34 = vld [vmem:[%s6816_s12 + $0x169] sm:$0xff] }
  0xac   : > { %5732 = vmatprep.mubr.msk.f32.mxu1 %vm338_vm1, %v697_v36  ;;  %v7151_v36 = vld [vmem:[%s6816_s12 + $0xb2] sm:$0xff] }
  0xad   : > { %8467 = vst [vmem:[#allocation32_spill] sm:$0xff] %v7151_v36 }
  0xae   : > { %5704 = vmatmul.mubr.msk.f32.gmra.mrb[14].mxu0 %vm338_vm1, %v6991_v37 }
  0xaf   : > { %5733 = vmatmul.mubr.msk.f32.vlgmr.msra.gmra.mrb[16].mxu1 %vm338_vm1, %v698_v38  ;;  %5782 = vmatprep.mubr.msk.f32.mxu0 %vm338_vm1, %v1151_v39  ;;  %v7156_v38 = vld [vmem:[%s6816_s12 + $0xc9] sm:$0xff] }
  0xb0   : > { %5831 = vmatpush3.msk.msra.mxu1 %vm435_vm0, %v1639_v16  ;;  %5735 = vmatprep.mubr.msk.f32.mxu1 %vm338_vm1, %v6997_v40  ;;  %v7139_v16 = vld [vmem:[%s6816_s12 + $0xaa] sm:$0xff]  ;;  %v7159_v39 = vld [vmem:[%s6816_s12 + $0xc2] sm:$0xff] }
  0xb1   : > { %5930 = vmatprep.subr.msk.mxu1 %vm435_vm0, %v7001_v41  ;;  %8466 = vst [vmem:[#allocation31_spill] sm:$0xff] %v7139_v16  ;;  %8468 = vst [vmem:[#allocation33_spill] sm:$0xff] %v7159_v39 }
  0xb2   : > { %5783 = vmatmul.mubr.msk.f32.vlgmr.msra.gmra.mrb[16].mxu0 %vm338_vm1, %v1152_v42  ;;  %v7162_v42 = vld [vmem:[%s6816_s12 + $0xd9] sm:$0xff] }
  0xb3   : > { %5736 = vmatmul.mubr.msk.f32.gmra.mrb[18].mxu1 %vm338_vm1, %v7010_v43  ;;  %5881 = vmatpush3.msk.msra.mxu0 %vm435_vm0, %v2093_v20  ;;  %v7142_v20 = vld [vmem:[%s6816_s12 + $0xc1] sm:$0xff] }
  0xb4   : > { %5738 = vmatprep.mubr.msk.f32.mxu1 %vm338_vm1, %v7013_v44  ;;  %5785 = vmatprep.mubr.msk.f32.mxu0 %vm338_vm1, %v7016_v45  ;;  %v7279_v45 = vld [vmem:[%s6816_s12 + $0x152] sm:$0xff] }
  0xb5   : > { %5980 = vmatprep.subr.msk.mxu0 %vm435_vm0, %v7021_v46  ;;  %8480 = vst [vmem:[#allocation45_spill] sm:$0xff] %v7279_v45 }
  0xb6   : > { %5786 = vmatmul.mubr.msk.f32.gmra.mrb[18].mxu0 %vm338_vm1, %v7027_v47  ;;  %v7262_v47 = vld [vmem:[%s6816_s12 + $0x151] sm:$0xff] }
  0xb7   : > { %5739 = vmatmul.mubr.msk.f32.gmra.mrb[20].mxu1 %vm338_vm1, %v7032_v48  ;;  %5788 = vmatprep.mubr.msk.f32.mxu0 %vm338_vm1, %v7037_v49  ;;  %v7259_v49 = vld [vmem:[%s6816_s12 + $0x13a] sm:$0xff] }
  0xb8   : > { %5741 = vmatprep.mubr.msk.f32.mxu1 %vm338_vm1, %v7040_v50  ;;  %8478 = vst [vmem:[#allocation43_spill] sm:$0xff] %v7259_v49 }
  0xba   : > { %5789 = vmatmul.mubr.msk.f32.gmra.mrb[20].mxu0 %vm338_vm1, %v7051_v51  ;;  %v7242_v51 = vld [vmem:[%s6816_s12 + $0x139] sm:$0xff] }
  0xbb   : > { %5742 = vmatmul.mubr.msk.f32.gmra.mrb[22].mxu1 %vm338_vm1, %v7056_v52  ;;  %5791 = vmatprep.mubr.msk.f32.mxu0 %vm338_vm1, %v7059_v53  ;;  %v7239_v53 = vld [vmem:[%s6816_s12 + $0x122] sm:$0xff] }
  0xbc   : > { %5744 = vmatprep.mubr.msk.f32.mxu1 %vm338_vm1, %v7062_v54  ;;  %8476 = vst [vmem:[#allocation41_spill] sm:$0xff] %v7239_v53 }
  0xbe   : > { %5792 = vmatmul.mubr.msk.f32.gmra.mrb[22].mxu0 %vm338_vm1, %v7071_v55  ;;  %v7222_v55 = vld [vmem:[%s6816_s12 + $0x121] sm:$0xff] }
  0xbf   : > { %5745 = vmatmul.mubr.msk.f32.gmra.mrb[24].mxu1 %vm338_vm1, %v7076_v56  ;;  %5794 = vmatprep.mubr.msk.f32.mxu0 %vm338_vm1, %v7079_v57  ;;  %v7219_v57 = vld [vmem:[%s6816_s12 + $0x10a] sm:$0xff] }
  0xc0   : > { %5747 = vmatprep.mubr.msk.f32.mxu1 %vm338_vm1, %v7082_v58  ;;  %8474 = vst [vmem:[#allocation39_spill] sm:$0xff] %v7219_v57 }
  0xc2   : > { %5795 = vmatmul.mubr.msk.f32.gmra.mrb[24].mxu0 %vm338_vm1, %v7091_v59  ;;  %v7202_v59 = vld [vmem:[%s6816_s12 + $0x109] sm:$0xff] }
  0xc3   : > { %5748 = vmatmul.mubr.msk.f32.gmra.mrb[26].mxu1 %vm338_vm1, %v7096_v60  ;;  %5797 = vmatprep.mubr.msk.f32.mxu0 %vm338_vm1, %v7099_v61  ;;  %v7199_v61 = vld [vmem:[%s6816_s12 + $0xf2] sm:$0xff] }
  0xc4   : > { %5750 = vmatprep.mubr.msk.f32.mxu1 %vm338_vm1, %v7102_v62  ;;  %8472 = vst [vmem:[#allocation37_spill] sm:$0xff] %v7199_v61 }
  0xc6   : > { %5798 = vmatmul.mubr.msk.f32.gmra.mrb[26].mxu0 %vm338_vm1, %v7111_v63  ;;  %v7182_v63 = vld [vmem:[%s6816_s12 + $0xf1] sm:$0xff] }
  0xc7   : > { %5751 = vmatmul.mubr.msk.f32.gmra.mrb[28].mxu1 %vm338_vm1, %v7116_v0  ;;  %5800 = vmatprep.mubr.msk.f32.mxu0 %vm338_vm1, %v7119_v3  ;;  %v7179_v3 = vld [vmem:[%s6816_s12 + $0xda] sm:$0xff] }
  0xc8   : > { %5753 = vmatprep.mubr.msk.f32.mxu1 %vm338_vm1, %v7122_v5  ;;  %8470 = vst [vmem:[#allocation35_spill] sm:$0xff] %v7179_v3 }
  0xca   : > { %5801 = vmatmul.mubr.msk.f32.gmra.mrb[28].mxu0 %vm338_vm1, %v7131_v6  ;;  %v7176_v6 = vld [vmem:[%s6816_s12 + $0xe1] sm:$0xff] }
  0xcb   : > { %5754 = vmatmul.mubr.msk.f32.gmra.mrb[30].mxu1 %vm338_vm1, %v7136_v7  ;;  %5803 = vmatprep.mubr.msk.f32.mxu0 %vm338_vm1, %v7139_v16  ;;  %v7171_v16 = vld [vmem:[%s6816_s12 + $0xca] sm:$0xff] }
  0xcc   : > { %5756 = vmatprep.mubr.msk.f32.mxu1 %vm338_vm1, %v7142_v20  ;;  %8469 = vst [vmem:[#allocation34_spill] sm:$0xff] %v7171_v16 }
  0xce   : > { %5804 = vmatmul.mubr.msk.f32.gmra.mrb[30].mxu0 %vm338_vm1, %v7151_v36  ;;  %v7196_v36 = vld [vmem:[%s6816_s12 + $0xf9] sm:$0xff] }
  0xcf   : > { %5757 = vmatmul.mubr.msk.f32.gmra.mrb[32].mxu1 %vm338_vm1, %v7156_v38  ;;  %5806 = vmatprep.mubr.msk.f32.mxu0 %vm338_vm1, %v7159_v39  ;;  %v7191_v39 = vld [vmem:[%s6816_s12 + $0xe2] sm:$0xff] }
  0xd0   : > { %5759 = vmatprep.mubr.msk.f32.mxu1 %vm338_vm1, %v7162_v42  ;;  %8471 = vst [vmem:[#allocation36_spill] sm:$0xff] %v7191_v39 }
  0xd2   : > { %5807 = vmatmul.mubr.msk.f32.gmra.mrb[32].mxu0 %vm338_vm1, %v7171_v16  ;;  %v7216_v16 = vld [vmem:[%s6816_s12 + $0x111] sm:$0xff] }
  0xd3   : > { %5760 = vmatmul.mubr.msk.f32.gmra.mrb[34].mxu1 %vm338_vm1, %v7176_v6  ;;  %5809 = vmatprep.mubr.msk.f32.mxu0 %vm338_vm1, %v7179_v3  ;;  %v7211_v3 = vld [vmem:[%s6816_s12 + $0xfa] sm:$0xff] }
  0xd4   : > { %5762 = vmatprep.mubr.msk.f32.mxu1 %vm338_vm1, %v7182_v63  ;;  %8473 = vst [vmem:[#allocation38_spill] sm:$0xff] %v7211_v3 }
  0xd6   : > { %5810 = vmatmul.mubr.msk.f32.gmra.mrb[34].mxu0 %vm338_vm1, %v7191_v39  ;;  %v7236_v39 = vld [vmem:[%s6816_s12 + $0x129] sm:$0xff] }
  0xd7   : > { %5763 = vmatmul.mubr.msk.f32.gmra.mrb[36].mxu1 %vm338_vm1, %v7196_v36  ;;  %5812 = vmatprep.mubr.msk.f32.mxu0 %vm338_vm1, %v7199_v61  ;;  %v7231_v61 = vld [vmem:[%s6816_s12 + $0x112] sm:$0xff] }
  0xd8   : > { %5765 = vmatprep.mubr.msk.f32.mxu1 %vm338_vm1, %v7202_v59  ;;  %8475 = vst [vmem:[#allocation40_spill] sm:$0xff] %v7231_v61 }
  0xda   : > { %5813 = vmatmul.mubr.msk.f32.gmra.mrb[36].mxu0 %vm338_vm1, %v7211_v3  ;;  %v7256_v3 = vld [vmem:[%s6816_s12 + $0x141] sm:$0xff] }
  0xdb   : > { %5766 = vmatmul.mubr.msk.f32.gmra.mrb[38].mxu1 %vm338_vm1, %v7216_v16  ;;  %5815 = vmatprep.mubr.msk.f32.mxu0 %vm338_vm1, %v7219_v57  ;;  %v7251_v57 = vld [vmem:[%s6816_s12 + $0x12a] sm:$0xff] }
  0xdc   : > { %5768 = vmatprep.mubr.msk.f32.mxu1 %vm338_vm1, %v7222_v55  ;;  %8477 = vst [vmem:[#allocation42_spill] sm:$0xff] %v7251_v57 }
  0xde   : > { %5816 = vmatmul.mubr.msk.f32.gmra.mrb[38].mxu0 %vm338_vm1, %v7231_v61  ;;  %v7276_v61 = vld [vmem:[%s6816_s12 + $0x159] sm:$0xff] }
  0xdf   : > { %5769 = vmatmul.mubr.msk.f32.gmra.mrb[40].mxu1 %vm338_vm1, %v7236_v39  ;;  %5818 = vmatprep.mubr.msk.f32.mxu0 %vm338_vm1, %v7239_v53  ;;  %v7271_v53 = vld [vmem:[%s6816_s12 + $0x142] sm:$0xff] }
  0xe0   : > { %5771 = vmatprep.mubr.msk.f32.mxu1 %vm338_vm1, %v7242_v51  ;;  %8479 = vst [vmem:[#allocation44_spill] sm:$0xff] %v7271_v53 }
  0xe2   : > { %5819 = vmatmul.mubr.msk.f32.gmra.mrb[40].mxu0 %vm338_vm1, %v7251_v57  ;;  %v7296_v57 = vld [vmem:[%s6816_s12 + $0x171] sm:$0xff] }
  0xe3   : > { %5772 = vmatmul.mubr.msk.f32.gmra.mrb[42].mxu1 %vm338_vm1, %v7256_v3  ;;  %5821 = vmatprep.mubr.msk.f32.mxu0 %vm338_vm1, %v7259_v49  ;;  %v7291_v49 = vld [vmem:[%s6816_s12 + $0x15a] sm:$0xff] }
  0xe4   : > { %5774 = vmatprep.mubr.msk.f32.mxu1 %vm338_vm1, %v7262_v47 }
  0xe6   : > { %5822 = vmatmul.mubr.msk.f32.gmra.mrb[42].mxu0 %vm338_vm1, %v7271_v53  ;;  %v7308_v53 = vld [vmem:[%s6816_s12 + $0x172] sm:$0xff] }
  0xe7   : > { %5775 = vmatmul.mubr.msk.f32.gmra.mrb[44].mxu1 %vm338_vm1, %v7276_v61  ;;  %5824 = vmatprep.mubr.msk.f32.mxu0 %vm338_vm1, %v7279_v45  ;;  %v7314_v45 = vld [vmem:[#allocation6 + $0x1c] sm:$0xf] }
  0xe8   : > { %5777 = vmatprep.mubr.msk.f32.mxu1 %vm338_vm1, %v7282_v34 }
  0xea   : > { %5825 = vmatmul.mubr.msk.f32.gmra.mrb[44].mxu0 %vm338_vm1, %v7291_v49 }
  0xeb   : > { %5778 = vmatmul.mubr.msk.f32.gmra.mrb[46].mxu1 %vm338_vm1, %v7296_v57  ;;  %5827 = vmatprep.mubr.msk.f32.mxu0 %vm338_vm1, %v7299_v32 }
  0xec   : > { %5832 = vmatprep.mubr.msk.f32.mxu1 %vm338_vm1, %v6861_v10  ;;  %v7328_v10 = vld [vmem:[#allocation6 + $0x20] sm:$0xf] }
  0xee   : > { %5828 = vmatmul.mubr.msk.f32.gmra.mrb[46].mxu0 %vm338_vm1, %v7308_v53 }
  0xef   : > { %5833 = vmatmul.mubr.msk.f32.vlgmr.msra.gmra.mrb[48].mxu1 %vm338_vm1, %v6869_v11  ;;  %5882 = vmatprep.mubr.msk.f32.mxu0 %vm338_vm1, %v6997_v40  ;;  %v8481_v11 = vld [vmem:[#allocation17_spill] sm:$0xff]  ;;  %v7437_v40 = vld [vmem:[%s6816_s12 + $0x180] sm:$0xff] }
  0xf0   : > { %5931 = vmatpush3.msk.msra.mxu1 %vm435_vm0, %v7001_v41  ;;  %5835 = vmatprep.mubr.msk.f32.mxu1 %vm338_vm1, %v6879_v13  ;;  %v8482_v41 = vld [vmem:[#allocation18_spill] sm:$0xff] }
  0xf1   : > { %6030 = vmatprep.subr.msk.mxu1 %vm435_vm0, %v7314_v45 }
  0xf2   : > { %5883 = vmatmul.mubr.msk.f32.vlgmr.msra.gmra.mrb[48].mxu0 %vm338_vm1, %v7010_v43  ;;  %v7448_v43 = vld [vmem:[%s6816_s12 + $0x188] sm:$0xff] }
  0xf3   : > { %5836 = vmatmul.mubr.msk.f32.gmra.mrb[50].mxu1 %vm338_vm1, %v6891_v15  ;;  %5981 = vmatpush3.msk.msra.mxu0 %vm435_vm0, %v7021_v46  ;;  %v7451_v46 = vld [vmem:[%s6816_s12 + $0x181] sm:$0xff] }
  0xf4   : > { %5838 = vmatprep.mubr.msk.f32.mxu1 %vm338_vm1, %v6899_v18  ;;  %5885 = vmatprep.mubr.msk.f32.mxu0 %vm338_vm1, %v7013_v44 }
  0xf5   : > { %6080 = vmatprep.subr.msk.mxu0 %vm435_vm0, %v7328_v10 }
  0xf6   : > { %5886 = vmatmul.mubr.msk.f32.gmra.mrb[50].mxu0 %vm338_vm1, %v7032_v48 }
  0xf7   : > { %5839 = vmatmul.mubr.msk.f32.gmra.mrb[52].mxu1 %vm338_vm1, %v6912_v21  ;;  %5888 = vmatprep.mubr.msk.f32.mxu0 %vm338_vm1, %v7040_v50 }
  0xf8   : > { %5841 = vmatprep.mubr.msk.f32.mxu1 %vm338_vm1, %v6920_v23 }
  0xfa   : > { %5889 = vmatmul.mubr.msk.f32.gmra.mrb[52].mxu0 %vm338_vm1, %v7056_v52 }
  0xfb   : > { %5842 = vmatmul.mubr.msk.f32.gmra.mrb[54].mxu1 %vm338_vm1, %v6933_v25  ;;  %5891 = vmatprep.mubr.msk.f32.mxu0 %vm338_vm1, %v7062_v54 }
  0xfc   : > { %5844 = vmatprep.mubr.msk.f32.mxu1 %vm338_vm1, %v6941_v27 }
  0xfe   : > { %5892 = vmatmul.mubr.msk.f32.gmra.mrb[54].mxu0 %vm338_vm1, %v7076_v56 }
  0xff   : > { %5845 = vmatmul.mubr.msk.f32.gmra.mrb[56].mxu1 %vm338_vm1, %v6953_v29  ;;  %5894 = vmatprep.mubr.msk.f32.mxu0 %vm338_vm1, %v7082_v58 }
 0x100   : > { %5847 = vmatprep.mubr.msk.f32.mxu1 %vm338_vm1, %v6961_v31 }
 0x102   : > { %5895 = vmatmul.mubr.msk.f32.gmra.mrb[56].mxu0 %vm338_vm1, %v7096_v60 }
 0x103   : > { %5848 = vmatmul.mubr.msk.f32.gmra.mrb[58].mxu1 %vm338_vm1, %v6973_v33  ;;  %5897 = vmatprep.mubr.msk.f32.mxu0 %vm338_vm1, %v7102_v62 }
 0x104   : > { %5850 = vmatprep.mubr.msk.f32.mxu1 %vm338_vm1, %v6981_v35 }
 0x106   : > { %5898 = vmatmul.mubr.msk.f32.gmra.mrb[58].mxu0 %vm338_vm1, %v7116_v0 }
 0x107   : > { %5851 = vmatmul.mubr.msk.f32.gmra.mrb[60].mxu1 %vm338_vm1, %v6991_v37  ;;  %5900 = vmatprep.mubr.msk.f32.mxu0 %vm338_vm1, %v7122_v5 }
 0x108   : > { %5853 = vmatprep.mubr.msk.f32.mxu1 %vm338_vm1, %v6831_v1 }
 0x10a   : > { %5901 = vmatmul.mubr.msk.f32.gmra.mrb[60].mxu0 %vm338_vm1, %v7136_v7 }
 0x10b   : > { %5854 = vmatmul.mubr.msk.f32.gmra.mrb[62].mxu1 %vm338_vm1, %v6834_v2  ;;  %5903 = vmatprep.mubr.msk.f32.mxu0 %vm338_vm1, %v7142_v20 }
 0x10c   : > { %5856 = vmatprep.mubr.msk.f32.mxu1 %vm338_vm1, %v6840_v4 }
 0x10e   : > { %5904 = vmatmul.mubr.msk.f32.gmra.mrb[62].mxu0 %vm338_vm1, %v7156_v38 }
 0x10f   : > { %5857 = vmatmul.mubr.msk.f32.gmra.mrb[64].mxu1 %vm338_vm1, %v6853_v8  ;;  %5906 = vmatprep.mubr.msk.f32.mxu0 %vm338_vm1, %v7162_v42 }
 0x110   : > { %5859 = vmatprep.mubr.msk.f32.mxu1 %vm338_vm1, %v6856_v9 }
 0x112   : > { %5907 = vmatmul.mubr.msk.f32.gmra.mrb[64].mxu0 %vm338_vm1, %v7176_v6 }
 0x113   : > { %5860 = vmatmul.mubr.msk.f32.gmra.mrb[66].mxu1 %vm338_vm1, %v6874_v12  ;;  %5909 = vmatprep.mubr.msk.f32.mxu0 %vm338_vm1, %v7182_v63 }
 0x114   : > { %5862 = vmatprep.mubr.msk.f32.mxu1 %vm338_vm1, %v6882_v14 }
 0x116   : > { %5910 = vmatmul.mubr.msk.f32.gmra.mrb[66].mxu0 %vm338_vm1, %v7196_v36 }
 0x117   : > { %5863 = vmatmul.mubr.msk.f32.gmra.mrb[68].mxu1 %vm338_vm1, %v6896_v17  ;;  %5912 = vmatprep.mubr.msk.f32.mxu0 %vm338_vm1, %v7202_v59 }
 0x118   : > { %5865 = vmatprep.mubr.msk.f32.mxu1 %vm338_vm1, %v6903_v19 }
 0x11a   : > { %5913 = vmatmul.mubr.msk.f32.gmra.mrb[68].mxu0 %vm338_vm1, %v7216_v16 }
 0x11b   : > { %5866 = vmatmul.mubr.msk.f32.gmra.mrb[70].mxu1 %vm338_vm1, %v6917_v22  ;;  %5915 = vmatprep.mubr.msk.f32.mxu0 %vm338_vm1, %v7222_v55  ;;  %v8485_v55 = vld [vmem:[#allocation21_spill] sm:$0xff] }
 0x11c   : > { %5868 = vmatprep.mubr.msk.f32.mxu1 %vm338_vm1, %v6924_v24 }
 0x11e   : > { %5916 = vmatmul.mubr.msk.f32.gmra.mrb[70].mxu0 %vm338_vm1, %v7236_v39  ;;  %v5178_v39 = vld [vmem:[%s6816_s12 + $0x198] sm:$0xff] }
 0x11f   : > { %5869 = vmatmul.mubr.msk.f32.gmra.mrb[72].mxu1 %vm338_vm1, %v6938_v26  ;;  %5918 = vmatprep.mubr.msk.f32.mxu0 %vm338_vm1, %v7242_v51  ;;  %v8483_v51 = vld [vmem:[#allocation19_spill] sm:$0xff] }
 0x120   : > { %5871 = vmatprep.mubr.msk.f32.mxu1 %vm338_vm1, %v6944_v28 }
 0x122   : > { %5919 = vmatmul.mubr.msk.f32.gmra.mrb[72].mxu0 %vm338_vm1, %v7256_v3 }
 0x123   : > { %5872 = vmatmul.mubr.msk.f32.gmra.mrb[74].mxu1 %vm338_vm1, %v6958_v30  ;;  %5921 = vmatprep.mubr.msk.f32.mxu0 %vm338_vm1, %v7262_v47  ;;  %v7460_v47 = vld [vmem:[%s6816_s12 + $0x189] sm:$0xff] }
 0x124   : > { %5874 = vmatprep.mubr.msk.f32.mxu1 %vm338_vm1, %v8481_v11 }
 0x126   : > { %5922 = vmatmul.mubr.msk.f32.gmra.mrb[74].mxu0 %vm338_vm1, %v7276_v61  ;;  %v8487_v61 = vld [vmem:[#allocation23_spill] sm:$0xff] }
 0x127   : > { %5875 = vmatmul.mubr.msk.f32.gmra.mrb[76].mxu1 %vm338_vm1, %v8482_v41  ;;  %5924 = vmatprep.mubr.msk.f32.mxu0 %vm338_vm1, %v7282_v34  ;;  %v8484_v34 = vld [vmem:[#allocation20_spill] sm:$0xff] }
 0x128   : > { %5877 = vmatprep.mubr.msk.f32.mxu1 %vm338_vm1, %v7437_v40 }
 0x12a   : > { %5925 = vmatmul.mubr.msk.f32.gmra.mrb[76].mxu0 %vm338_vm1, %v7296_v57  ;;  %v8486_v57 = vld [vmem:[#allocation22_spill] sm:$0xff] }
 0x12b   : > { %5878 = vmatmul.mubr.msk.f32.gmra.mrb[78].mxu1 %vm338_vm1, %v7448_v43  ;;  %5927 = vmatprep.mubr.msk.f32.mxu0 %vm338_vm1, %v7451_v46 }
 0x12c   : > { %5932 = vmatprep.mubr.msk.f32.mxu1 %vm338_vm1, %v8483_v51 }
 0x12e   : > { %5928 = vmatmul.mubr.msk.f32.gmra.mrb[78].mxu0 %vm338_vm1, %v7460_v47 }
 0x12f   : > { %5933 = vmatmul.mubr.msk.f32.vlgmr.msra.gmra.mrb[80].mxu1 %vm338_vm1, %v8484_v34  ;;  %5982 = vmatprep.mubr.msk.f32.mxu0 %vm338_vm1, %v6879_v13  ;;  %v8488_v13 = vld [vmem:[#allocation24_spill] sm:$0xff] }
 0x130   : > { %6031 = vmatpush3.msk.msra.mxu1 %vm435_vm0, %v7314_v45  ;;  %5935 = vmatprep.mubr.msk.f32.mxu1 %vm338_vm1, %v8485_v55  ;;  %v8490_v45 = vld [vmem:[#allocation26_spill] sm:$0xff] }
 0x132   : > { %5983 = vmatmul.mubr.msk.f32.vlgmr.msra.gmra.mrb[80].mxu0 %vm338_vm1, %v6891_v15  ;;  %v8489_v15 = vld [vmem:[#allocation25_spill] sm:$0xff] }
 0x133   : > { %5936 = vmatmul.mubr.msk.f32.gmra.mrb[82].mxu1 %vm338_vm1, %v8486_v57  ;;  %6081 = vmatpush3.msk.msra.mxu0 %vm435_vm0, %v7328_v10 }
 0x134   : > { %5938 = vmatprep.mubr.msk.f32.mxu1 %vm338_vm1, %v8487_v61  ;;  %5985 = vmatprep.mubr.msk.f32.mxu0 %vm338_vm1, %v6899_v18  ;;  %v8491_v18 = vld [vmem:[#allocation27_spill] sm:$0xff] }
 0x136   : > { %5986 = vmatmul.mubr.msk.f32.gmra.mrb[82].mxu0 %vm338_vm1, %v6912_v21  ;;  %v8492_v21 = vld [vmem:[#allocation28_spill] sm:$0xff] }
 0x137   : > { %5939 = vmatmul.mubr.msk.f32.gmra.mrb[84].mxu1 %vm338_vm1, %v8488_v13  ;;  %5988 = vmatprep.mubr.msk.f32.mxu0 %vm338_vm1, %v6920_v23  ;;  %v8493_v23 = vld [vmem:[#allocation29_spill] sm:$0xff] }
 0x138   : > { %5941 = vmatprep.mubr.msk.f32.mxu1 %vm338_vm1, %v8489_v15 }
 0x13a   : > { %5989 = vmatmul.mubr.msk.f32.gmra.mrb[84].mxu0 %vm338_vm1, %v6933_v25  ;;  %v8494_v25 = vld [vmem:[#allocation30_spill] sm:$0xff] }
 0x13b   : > { %5942 = vmatmul.mubr.msk.f32.gmra.mrb[86].mxu1 %vm338_vm1, %v8490_v45  ;;  %5991 = vmatprep.mubr.msk.f32.mxu0 %vm338_vm1, %v6941_v27  ;;  %v8495_v27 = vld [vmem:[#allocation31_spill] sm:$0xff] }
 0x13c   : > { %5944 = vmatprep.mubr.msk.f32.mxu1 %vm338_vm1, %v8491_v18 }
 0x13e   : > { %5992 = vmatmul.mubr.msk.f32.gmra.mrb[86].mxu0 %vm338_vm1, %v6953_v29  ;;  %v8496_v29 = vld [vmem:[#allocation32_spill] sm:$0xff] }
 0x13f   : > { %5945 = vmatmul.mubr.msk.f32.gmra.mrb[88].mxu1 %vm338_vm1, %v8492_v21  ;;  %5994 = vmatprep.mubr.msk.f32.mxu0 %vm338_vm1, %v6961_v31  ;;  %v8497_v31 = vld [vmem:[#allocation33_spill] sm:$0xff] }
 0x140   : > { %5947 = vmatprep.mubr.msk.f32.mxu1 %vm338_vm1, %v8493_v23 }
 0x142   : > { %5995 = vmatmul.mubr.msk.f32.gmra.mrb[88].mxu0 %vm338_vm1, %v6973_v33  ;;  %v8498_v33 = vld [vmem:[#allocation34_spill] sm:$0xff] }
 0x143   : > { %5948 = vmatmul.mubr.msk.f32.gmra.mrb[90].mxu1 %vm338_vm1, %v8494_v25  ;;  %5997 = vmatprep.mubr.msk.f32.mxu0 %vm338_vm1, %v6981_v35  ;;  %v8499_v35 = vld [vmem:[#allocation35_spill] sm:$0xff] }
 0x144   : > { %5950 = vmatprep.mubr.msk.f32.mxu1 %vm338_vm1, %v8495_v27 }
 0x146   : > { %5998 = vmatmul.mubr.msk.f32.gmra.mrb[90].mxu0 %vm338_vm1, %v6991_v37  ;;  %v8500_v37 = vld [vmem:[#allocation36_spill] sm:$0xff] }
 0x147   : > { %5951 = vmatmul.mubr.msk.f32.gmra.mrb[92].mxu1 %vm338_vm1, %v8496_v29  ;;  %6000 = vmatprep.mubr.msk.f32.mxu0 %vm338_vm1, %v6831_v1  ;;  %v8501_v1 = vld [vmem:[#allocation37_spill] sm:$0xff] }
 0x148   : > { %5953 = vmatprep.mubr.msk.f32.mxu1 %vm338_vm1, %v8497_v31 }
 0x14a   : > { %6001 = vmatmul.mubr.msk.f32.gmra.mrb[92].mxu0 %vm338_vm1, %v6834_v2  ;;  %v8502_v2 = vld [vmem:[#allocation38_spill] sm:$0xff] }
 0x14b   : > { %5954 = vmatmul.mubr.msk.f32.gmra.mrb[94].mxu1 %vm338_vm1, %v8498_v33  ;;  %6003 = vmatprep.mubr.msk.f32.mxu0 %vm338_vm1, %v6840_v4  ;;  %v8503_v4 = vld [vmem:[#allocation39_spill] sm:$0xff] }
 0x14c   : > { %5956 = vmatprep.mubr.msk.f32.mxu1 %vm338_vm1, %v8499_v35 }
 0x14e   : > { %6004 = vmatmul.mubr.msk.f32.gmra.mrb[94].mxu0 %vm338_vm1, %v6853_v8  ;;  %v8504_v8 = vld [vmem:[#allocation40_spill] sm:$0xff] }
 0x14f   : > { %5957 = vmatmul.mubr.msk.f32.gmra.mrb[96].mxu1 %vm338_vm1, %v8500_v37  ;;  %6006 = vmatprep.mubr.msk.f32.mxu0 %vm338_vm1, %v6856_v9  ;;  %v8505_v9 = vld [vmem:[#allocation41_spill] sm:$0xff] }
 0x150   : > { %5959 = vmatprep.mubr.msk.f32.mxu1 %vm338_vm1, %v8501_v1 }
 0x152   : > { %6007 = vmatmul.mubr.msk.f32.gmra.mrb[96].mxu0 %vm338_vm1, %v6874_v12  ;;  %v8506_v12 = vld [vmem:[#allocation42_spill] sm:$0xff] }
 0x153   : > { %5960 = vmatmul.mubr.msk.f32.gmra.mrb[98].mxu1 %vm338_vm1, %v8502_v2  ;;  %6009 = vmatprep.mubr.msk.f32.mxu0 %vm338_vm1, %v6882_v14  ;;  %v8507_v14 = vld [vmem:[#allocation43_spill] sm:$0xff] }
 0x154   : > { %5962 = vmatprep.mubr.msk.f32.mxu1 %vm338_vm1, %v8503_v4 }
 0x156   : > { %6010 = vmatmul.mubr.msk.f32.gmra.mrb[98].mxu0 %vm338_vm1, %v6896_v17  ;;  %v8508_v17 = vld [vmem:[#allocation44_spill] sm:$0xff] }
 0x157   : > { %5963 = vmatmul.mubr.msk.f32.gmra.mrb[100].mxu1 %vm338_vm1, %v8504_v8  ;;  %6012 = vmatprep.mubr.msk.f32.mxu0 %vm338_vm1, %v6903_v19  ;;  %v8509_v19 = vld [vmem:[#allocation45_spill] sm:$0xff] }
 0x158   : > { %5965 = vmatprep.mubr.msk.f32.mxu1 %vm338_vm1, %v8505_v9 }
 0x15a   : > { %6013 = vmatmul.mubr.msk.f32.gmra.mrb[100].mxu0 %vm338_vm1, %v6917_v22 }
 0x15b   : > { %5966 = vmatmul.mubr.msk.f32.gmra.mrb[102].mxu1 %vm338_vm1, %v8506_v12  ;;  %6015 = vmatprep.mubr.msk.f32.mxu0 %vm338_vm1, %v6924_v24 }
 0x15c   : > { %5968 = vmatprep.mubr.msk.f32.mxu1 %vm338_vm1, %v8507_v14 }
 0x15e   : > { %6016 = vmatmul.mubr.msk.f32.gmra.mrb[102].mxu0 %vm338_vm1, %v6938_v26  ;;  %v7583_v26 = vld [vmem:[%s6816_s12 + $0x182] sm:$0xff] }
 0x15f   : > { %5969 = vmatmul.mubr.msk.f32.gmra.mrb[104].mxu1 %vm338_vm1, %v8508_v17  ;;  %6018 = vmatprep.mubr.msk.f32.mxu0 %vm338_vm1, %v6944_v28 }
 0x160   : > { %5971 = vmatprep.mubr.msk.f32.mxu1 %vm338_vm1, %v8509_v19 }
 0x162   : > { %v5708_v22 = vpop.f32.mrb[0].mxu1  ;;  %6019 = vmatmul.mubr.msk.f32.gmra.mrb[104].mxu0 %vm338_vm1, %v6958_v30 }
 0x163   : > { %682 = vst.msk [vmem:[#allocation2 + $0x88] sm:$0xff] %vm664_vm2, %v5708_v22  ;;  %v585_v24 = vpop.f32.mrb[1].mxu1  ;;  %5972 = vmatmul.mubr.msk.f32.gmra.mrb[106].mxu1 %vm338_vm1, %v7291_v49  ;;  %6021 = vmatprep.mubr.msk.f32.mxu0 %vm338_vm1, %v8481_v11 }
 0x164   : > { %681 = vst.msk [vmem:[#allocation2 + $0x80] sm:$0xff] %vm664_vm2, %v585_v24  ;;  %5974 = vmatprep.mubr.msk.f32.mxu1 %vm338_vm1, %v7299_v32  ;;  %v7598_v32 = vld [vmem:[%s6816_s12 + $0x18a] sm:$0xff] }
 0x165   : > { %v5684_v28 = vpop.f32.mrb[0].mxu0 }
 0x166   : > { %v5711_v30 = vpop.f32.mrb[2].mxu1  ;;  %666 = vst.msk [vmem:[#allocation2 + $0x8] sm:$0xff] %vm664_vm2, %v5684_v28  ;;  %v505_v3 = vpop.f32.mrb[1].mxu0  ;;  %6022 = vmatmul.mubr.msk.f32.gmra.mrb[106].mxu0 %vm338_vm1, %v8482_v41 }
 0x167   : > { %684 = vst.msk [vmem:[#allocation2 + $0x98] sm:$0xff] %vm664_vm2, %v5711_v30  ;;  %v595_v49 = vpop.f32.mrb[3].mxu1  ;;  %5975 = vmatmul.mubr.msk.f32.gmra.mrb[108].mxu1 %vm338_vm1, %v7308_v53  ;;  %665 = vst.msk [vmem:[#allocation2] sm:$0xff] %vm664_vm2, %v505_v3  ;;  %6024 = vmatprep.mubr.msk.f32.mxu0 %vm338_vm1, %v7437_v40  ;;  %v5179_v40 = vld [vmem:[%s6816_s12 + $0x1a0] sm:$0xff] }
 0x168   : > { %683 = vst.msk [vmem:[#allocation2 + $0x90] sm:$0xff] %vm664_vm2, %v595_v49  ;;  %5977 = vmatprep.mubr.msk.f32.mxu1 %vm338_vm1, %v7583_v26  ;;  %v5294_v49 = vld [vmem:[%s6816_s12 + $0xf2] sm:$0xff] }
 0x169   : > { %v5687_v10 = vpop.f32.mrb[2].mxu0 }
 0x16a   : > { %v5714_v11 = vpop.f32.mrb[4].mxu1  ;;  %668 = vst.msk [vmem:[#allocation2 + $0x18] sm:$0xff] %vm664_vm2, %v5687_v10  ;;  %v515_v41 = vpop.f32.mrb[3].mxu0  ;;  %6025 = vmatmul.mubr.msk.f32.gmra.mrb[108].mxu0 %vm338_vm1, %v7448_v43 }
 0x16b   : > { %686 = vst.msk [vmem:[#allocation2 + $0xa8] sm:$0xff] %vm664_vm2, %v5714_v11  ;;  %v605_v53 = vpop.f32.mrb[5].mxu1  ;;  %5978 = vmatmul.mubr.msk.f32.gmra.mrb[110].mxu1 %vm338_vm1, %v7598_v32  ;;  %667 = vst.msk [vmem:[#allocation2 + $0x10] sm:$0xff] %vm664_vm2, %v515_v41  ;;  %6027 = vmatprep.mubr.msk.f32.mxu0 %vm338_vm1, %v5178_v39 }
 0x16c   : > { %685 = vst.msk [vmem:[#allocation2 + $0xa0] sm:$0xff] %vm664_vm2, %v605_v53  ;;  %6032 = vmatprep.mubr.msk.f32.mxu1 %vm338_vm1, %v7013_v44 }
 0x16d   : > { %v5690_v51 = vpop.f32.mrb[4].mxu0  ;;  %v1056_v8 = vld [vmem:[#allocation2 + $0x8] sm:$0xff] }
 0x16e   : > { %v5717_v34 = vpop.f32.mrb[6].mxu1  ;;  %670 = vst.msk [vmem:[#allocation2 + $0x28] sm:$0xff] %vm664_vm2, %v5690_v51  ;;  %v525_v43 = vpop.f32.mrb[5].mxu0  ;;  %6028 = vmatmul.mubr.msk.f32.gmra.mrb[110].mxu0 %vm338_vm1, %v5179_v40  ;;  %v1055_v12 = vld [vmem:[#allocation2] sm:$0xff] }
 0x16f   : > { %688 = vst.msk [vmem:[#allocation2 + $0xb8] sm:$0xff] %vm664_vm2, %v5717_v34  ;;  %v615_v1 = vpop.f32.mrb[7].mxu1  ;;  %6033 = vmatmul.mubr.msk.f32.vlgmr.msra.gmra.mrb[112].mxu1 %vm338_vm1, %v7032_v48  ;;  %669 = vst.msk [vmem:[#allocation2 + $0x20] sm:$0xff] %vm664_vm2, %v525_v43  ;;  %6082 = vmatprep.mubr.msk.f32.mxu0 %vm338_vm1, %v8485_v55  ;;  %v5295_v51 = vld [vmem:[%s6816_s12 + $0xfa] sm:$0xff] }
 0x170   : > { %687 = vst.msk [vmem:[#allocation2 + $0xb0] sm:$0xff] %vm664_vm2, %v615_v1  ;;  %6035 = vmatprep.mubr.msk.f32.mxu1 %vm338_vm1, %v7040_v50 }
 0x171   : > { %v5693_v44 = vpop.f32.mrb[6].mxu0  ;;  %v1058_v14 = vld [vmem:[#allocation2 + $0x18] sm:$0xff] }
 0x172   : > { %v5720_v2 = vpop.f32.mrb[8].mxu1  ;;  %672 = vst.msk [vmem:[#allocation2 + $0x38] sm:$0xff] %vm664_vm2, %v5693_v44  ;;  %v535_v4 = vpop.f32.mrb[7].mxu0  ;;  %6083 = vmatmul.mubr.msk.f32.vlgmr.msra.gmra.mrb[112].mxu0 %vm338_vm1, %v8486_v57  ;;  %v1057_v22 = vld [vmem:[#allocation2 + $0x10] sm:$0xff] }
 0x173   : > { %690 = vst.msk [vmem:[#allocation2 + $0xc8] sm:$0xff] %vm664_vm2, %v5720_v2  ;;  %v625_v48 = vpop.f32.mrb[9].mxu1  ;;  %6036 = vmatmul.mubr.msk.f32.gmra.mrb[114].mxu1 %vm338_vm1, %v7056_v52  ;;  %671 = vst.msk [vmem:[#allocation2 + $0x30] sm:$0xff] %vm664_vm2, %v535_v4  ;;  %6085 = vmatprep.mubr.msk.f32.mxu0 %vm338_vm1, %v8487_v61  ;;  %v5233_v2 = vld [vmem:[%s6816_s12 + $0x121] sm:$0xff] }
 0x174   : > { %689 = vst.msk [vmem:[#allocation2 + $0xc0] sm:$0xff] %vm664_vm2, %v625_v48  ;;  %6038 = vmatprep.mubr.msk.f32.mxu1 %vm338_vm1, %v7062_v54 }
 0x175   : > { %v5696_v50 = vpop.f32.mrb[8].mxu0  ;;  %v1060_v24 = vld [vmem:[#allocation2 + $0x28] sm:$0xff] }
 0x176   : > { %v5723_v55 = vpop.f32.mrb[10].mxu1  ;;  %674 = vst.msk [vmem:[#allocation2 + $0x48] sm:$0xff] %vm664_vm2, %v5696_v50  ;;  %v545_v57 = vpop.f32.mrb[9].mxu0  ;;  %6086 = vmatmul.mubr.msk.f32.gmra.mrb[114].mxu0 %vm338_vm1, %v8488_v13  ;;  %v1059_v3 = vld [vmem:[#allocation2 + $0x20] sm:$0xff] }
 0x177   : > { %692 = vst.msk [vmem:[#allocation2 + $0xd8] sm:$0xff] %vm664_vm2, %v5723_v55  ;;  %v635_v52 = vpop.f32.mrb[11].mxu1  ;;  %6039 = vmatmul.mubr.msk.f32.gmra.mrb[116].mxu1 %vm338_vm1, %v7076_v56  ;;  %673 = vst.msk [vmem:[#allocation2 + $0x40] sm:$0xff] %vm664_vm2, %v545_v57  ;;  %6088 = vmatprep.mubr.msk.f32.mxu0 %vm338_vm1, %v8489_v15 }
 0x178   : > { %691 = vst.msk [vmem:[#allocation2 + $0xd0] sm:$0xff] %vm664_vm2, %v635_v52  ;;  %6041 = vmatprep.mubr.msk.f32.mxu1 %vm338_vm1, %v7082_v58 }
 0x179   : > { %v5699_v54 = vpop.f32.mrb[10].mxu0  ;;  %v1062_v41 = vld [vmem:[#allocation2 + $0x38] sm:$0xff] }
 0x17a   : > { %v5726_v61 = vpop.f32.mrb[12].mxu1  ;;  %676 = vst.msk [vmem:[#allocation2 + $0x58] sm:$0xff] %vm664_vm2, %v5699_v54  ;;  %v555_v13 = vpop.f32.mrb[11].mxu0  ;;  %6089 = vmatmul.mubr.msk.f32.gmra.mrb[116].mxu0 %vm338_vm1, %v8490_v45  ;;  %v1061_v40 = vld [vmem:[#allocation2 + $0x30] sm:$0xff] }
 0x17b   : > { %694 = vst.msk [vmem:[#allocation2 + $0xe8] sm:$0xff] %vm664_vm2, %v5726_v61  ;;  %v645_v56 = vpop.f32.mrb[13].mxu1  ;;  %6042 = vmatmul.mubr.msk.f32.gmra.mrb[118].mxu1 %vm338_vm1, %v7096_v60  ;;  %675 = vst.msk [vmem:[#allocation2 + $0x50] sm:$0xff] %vm664_vm2, %v555_v13  ;;  %6091 = vmatprep.mubr.msk.f32.mxu0 %vm338_vm1, %v8491_v18  ;;  %v5297_v54 = vld [vmem:[%s6816_s12 + $0x112] sm:$0xff] }
 0x17c   : > { %693 = vst.msk [vmem:[#allocation2 + $0xe0] sm:$0xff] %vm664_vm2, %v645_v56  ;;  %6044 = vmatprep.mubr.msk.f32.mxu1 %vm338_vm1, %v7102_v62  ;;  %v5234_v56 = vld [vmem:[%s6816_s12 + $0x129] sm:$0xff] }
 0x17d   : > { %v5702_v58 = vpop.f32.mrb[12].mxu0  ;;  %v1064_v50 = vld [vmem:[#allocation2 + $0x48] sm:$0xff] }
 0x17e   : > { %v5729_v15 = vpop.f32.mrb[14].mxu1  ;;  %678 = vst.msk [vmem:[#allocation2 + $0x68] sm:$0xff] %vm664_vm2, %v5702_v58  ;;  %v565_v45 = vpop.f32.mrb[13].mxu0  ;;  %6092 = vmatmul.mubr.msk.f32.gmra.mrb[118].mxu0 %vm338_vm1, %v8492_v21  ;;  %v1063_v52 = vld [vmem:[#allocation2 + $0x40] sm:$0xff] }
 0x17f   : > { %696 = vst.msk [vmem:[#allocation2 + $0xf8] sm:$0xff] %vm664_vm2, %v5729_v15  ;;  %v655_v60 = vpop.f32.mrb[15].mxu1  ;;  %6045 = vmatmul.mubr.msk.f32.gmra.mrb[120].mxu1 %vm338_vm1, %v7116_v0  ;;  %677 = vst.msk [vmem:[#allocation2 + $0x60] sm:$0xff] %vm664_vm2, %v565_v45  ;;  %6094 = vmatprep.mubr.msk.f32.mxu0 %vm338_vm1, %v8493_v23  ;;  %v5298_v58 = vld [vmem:[%s6816_s12 + $0x122] sm:$0xff] }
 0x180   : > { %695 = vst.msk [vmem:[#allocation2 + $0xf0] sm:$0xff] %vm664_vm2, %v655_v60  ;;  %6047 = vmatprep.mubr.msk.f32.mxu1 %vm338_vm1, %v7122_v5  ;;  %v5235_v60 = vld [vmem:[%s6816_s12 + $0x139] sm:$0xff] }
 0x181   : > { %v5705_v62 = vpop.f32.mrb[14].mxu0 }
 0x182   : > { %v5734_v18 = vpop.f32.mrb[16].mxu1  ;;  %680 = vst.msk [vmem:[#allocation2 + $0x78] sm:$0xff] %vm664_vm2, %v5705_v62  ;;  %v575_v21 = vpop.f32.mrb[15].mxu0  ;;  %6095 = vmatmul.mubr.msk.f32.gmra.mrb[120].mxu0 %vm338_vm1, %v8494_v25 }
 0x183   : > { %v1088_v0 = vadd.f32 %v5734_v18, %v1056_v8  ;;  %v896_v9 = vpop.f32.mrb[17].mxu1  ;;  %6048 = vmatmul.mubr.msk.f32.gmra.mrb[122].mxu1 %vm338_vm1, %v7136_v7  ;;  %679 = vst.msk [vmem:[#allocation2 + $0x70] sm:$0xff] %vm664_vm2, %v575_v21  ;;  %6097 = vmatprep.mubr.msk.f32.mxu0 %vm338_vm1, %v8495_v27  ;;  %v1066_v8 = vld [vmem:[#allocation2 + $0x58] sm:$0xff] }
 0x184   : > { %v1087_v5 = vadd.f32 %v1055_v12, %v896_v9  ;;  %6050 = vmatprep.mubr.msk.f32.mxu1 %vm338_vm1, %v7142_v20  ;;  %v1065_v12 = vld [vmem:[#allocation2 + $0x50] sm:$0xff] }
 0x185   : > { %1120 = vst.msk [vmem:[#allocation2 + $0x8] sm:$0xff] %vm664_vm2, %v1088_v0  ;;  %v5784_v23 = vpop.f32.mrb[16].mxu0 }
 0x186   : > { %1119 = vst.msk [vmem:[#allocation2] sm:$0xff] %vm664_vm2, %v1087_v5  ;;  %v5737_v25 = vpop.f32.mrb[18].mxu1  ;;  %v1350_v17 = vpop.f32.mrb[17].mxu0  ;;  %6098 = vmatmul.mubr.msk.f32.gmra.mrb[122].mxu0 %vm338_vm1, %v8496_v29  ;;  %v5299_v5 = vld [vmem:[%s6816_s12 + $0x12a] sm:$0xff] }
 0x187   : > { %v1090_v7 = vadd.f32 %v5737_v25, %v1058_v14  ;;  %v906_v19 = vpop.f32.mrb[19].mxu1  ;;  %6051 = vmatmul.mubr.msk.f32.gmra.mrb[124].mxu1 %vm338_vm1, %v7156_v38  ;;  %6100 = vmatprep.mubr.msk.f32.mxu0 %vm338_vm1, %v8497_v31  ;;  %v5236_v14 = vld [vmem:[%s6816_s12 + $0x141] sm:$0xff] }
 0x188   : > { %v1089_v20 = vadd.f32 %v1057_v22, %v906_v19  ;;  %6053 = vmatprep.mubr.msk.f32.mxu1 %vm338_vm1, %v7162_v42  ;;  %v5237_v22 = vld [vmem:[%s6816_s12 + $0x151] sm:$0xff] }
 0x189   : > { %1122 = vst.msk [vmem:[#allocation2 + $0x18] sm:$0xff] %vm664_vm2, %v1090_v7  ;;  %v5787_v27 = vpop.f32.mrb[18].mxu0 }
 0x18a   : > { %1121 = vst.msk [vmem:[#allocation2 + $0x10] sm:$0xff] %vm664_vm2, %v1089_v20  ;;  %v5740_v29 = vpop.f32.mrb[20].mxu1  ;;  %v1360_v28 = vpop.f32.mrb[19].mxu0  ;;  %6101 = vmatmul.mubr.msk.f32.gmra.mrb[124].mxu0 %vm338_vm1, %v8498_v33 }
 0x18b   : > { %v1092_v38 = vadd.f32 %v5740_v29, %v1060_v24  ;;  %v916_v30 = vpop.f32.mrb[21].mxu1  ;;  %6054 = vmatmul.mubr.msk.f32.gmra.mrb[126].mxu1 %vm338_vm1, %v7176_v6  ;;  %6103 = vmatprep.mubr.msk.f32.mxu0 %vm338_vm1, %v8499_v35  ;;  %v1068_v24 = vld [vmem:[#allocation2 + $0x68] sm:$0xff] }
 0x18c   : > { %v1091_v42 = vadd.f32 %v1059_v3, %v916_v30  ;;  %v1510_v31 = vld [vmem:[#allocation2 + $0x8] sm:$0xff]  ;;  %6056 = vmatprep.mubr.msk.f32.mxu1 %vm338_vm1, %v7182_v63  ;;  %v1067_v3 = vld [vmem:[#allocation2 + $0x60] sm:$0xff] }
 0x18d   : > { %1124 = vst.msk [vmem:[#allocation2 + $0x28] sm:$0xff] %vm664_vm2, %v1092_v38  ;;  %v1542_v39 = vadd.f32 %v5784_v23, %v1510_v31  ;;  %v1509_v33 = vld [vmem:[#allocation2] sm:$0xff]  ;;  %v5790_v10 = vpop.f32.mrb[20].mxu0 }
 0x18e   : > { %1123 = vst.msk [vmem:[#allocation2 + $0x20] sm:$0xff] %vm664_vm2, %v1091_v42  ;;  %v1541_v11 = vadd.f32 %v1509_v33, %v1350_v17  ;;  %v5743_v6 = vpop.f32.mrb[22].mxu1  ;;  %v1370_v53 = vpop.f32.mrb[21].mxu0  ;;  %6104 = vmatmul.mubr.msk.f32.gmra.mrb[126].mxu0 %vm338_vm1, %v8500_v37  ;;  %v5296_v37 = vld [vmem:[%s6816_s12 + $0x10a] sm:$0xff]  ;;  %v5300_v17 = vld [vmem:[%s6816_s12 + $0x13a] sm:$0xff]  ;;  %v5301_v42 = vld [vmem:[%s6816_s12 + $0x142] sm:$0xff] }
 0x18f   : > { %1574 = vst.msk [vmem:[#allocation2 + $0x8] sm:$0xff] %vm664_vm2, %v1542_v39  ;;  %v1094_v63 = vadd.f32 %v5743_v6, %v1062_v41  ;;  %v926_v35 = vpop.f32.mrb[23].mxu1  ;;  %6057 = vmatmul.mubr.msk.f32.gmra.mrb[128].mxu1 %vm338_vm1, %v7196_v36  ;;  %6106 = vmatprep.mubr.msk.f32.mxu0 %vm338_vm1, %v5294_v49  ;;  %v5238_v39 = vld [vmem:[%s6816_s12 + $0x159] sm:$0xff]  ;;  %v5239_v6 = vld [vmem:[%s6816_s12 + $0x169] sm:$0xff] }
 0x190   : > { %1573 = vst.msk [vmem:[#allocation2] sm:$0xff] %vm664_vm2, %v1541_v11  ;;  %v1093_v34 = vadd.f32 %v1061_v40, %v926_v35  ;;  %v1512_v43 = vld [vmem:[#allocation2 + $0x18] sm:$0xff]  ;;  %6059 = vmatprep.mubr.msk.f32.mxu1 %vm338_vm1, %v7202_v59 }
 0x191   : > { %1126 = vst.msk [vmem:[#allocation2 + $0x38] sm:$0xff] %vm664_vm2, %v1094_v63  ;;  %v1544_v1 = vadd.f32 %v5787_v27, %v1512_v43  ;;  %v1511_v44 = vld [vmem:[#allocation2 + $0x10] sm:$0xff]  ;;  %v5793_v4 = vpop.f32.mrb[22].mxu0  ;;  %v1070_v35 = vld [vmem:[#allocation2 + $0x78] sm:$0xff] }
 0x192   : > { %1125 = vst.msk [vmem:[#allocation2 + $0x30] sm:$0xff] %vm664_vm2, %v1093_v34  ;;  %v1543_v36 = vadd.f32 %v1511_v44, %v1360_v28  ;;  %v5746_v48 = vpop.f32.mrb[24].mxu1  ;;  %v1380_v55 = vpop.f32.mrb[23].mxu0  ;;  %6107 = vmatmul.mubr.msk.f32.gmra.mrb[128].mxu0 %vm338_vm1, %v5295_v51  ;;  %v5302_v33 = vld [vmem:[%s6816_s12 + $0x152] sm:$0xff] }
 0x193   : > { %1576 = vst.msk [vmem:[#allocation2 + $0x18] sm:$0xff] %vm664_vm2, %v1544_v1  ;;  %v1096_v59 = vadd.f32 %v5746_v48, %v1064_v50  ;;  %v936_v57 = vpop.f32.mrb[25].mxu1  ;;  %6060 = vmatmul.mubr.msk.f32.gmra.mrb[130].mxu1 %vm338_vm1, %v7216_v16  ;;  %6109 = vmatprep.mubr.msk.f32.mxu0 %vm338_vm1, %v5296_v37  ;;  %v1069_v43 = vld [vmem:[#allocation2 + $0x70] sm:$0xff] }
 0x194   : > { %1575 = vst.msk [vmem:[#allocation2 + $0x10] sm:$0xff] %vm664_vm2, %v1543_v36  ;;  %v1095_v61 = vadd.f32 %v1063_v52, %v936_v57  ;;  %v1514_v13 = vld [vmem:[#allocation2 + $0x28] sm:$0xff]  ;;  %6062 = vmatprep.mubr.msk.f32.mxu1 %vm338_vm1, %v5233_v2 }
 0x195   : > { %1128 = vst.msk [vmem:[#allocation2 + $0x48] sm:$0xff] %vm664_vm2, %v1096_v59  ;;  %v1546_v15 = vadd.f32 %v5790_v10, %v1514_v13  ;;  %v1513_v45 = vld [vmem:[#allocation2 + $0x20] sm:$0xff]  ;;  %v5796_v62 = vpop.f32.mrb[24].mxu0  ;;  %v1072_v57 = vld [vmem:[#allocation2 + $0x88] sm:$0xff] }
 0x196   : > { %1127 = vst.msk [vmem:[#allocation2 + $0x40] sm:$0xff] %vm664_vm2, %v1095_v61  ;;  %v1545_v16 = vadd.f32 %v1513_v45, %v1370_v53  ;;  %v5749_v18 = vpop.f32.mrb[26].mxu1  ;;  %v1390_v21 = vpop.f32.mrb[25].mxu0  ;;  %6110 = vmatmul.mubr.msk.f32.gmra.mrb[130].mxu0 %vm338_vm1, %v5297_v54  ;;  %v5303_v37 = vld [vmem:[%s6816_s12 + $0x15a] sm:$0xff]  ;;  %v5240_v2 = vld [vmem:[%s6816_s12 + $0x171] sm:$0xff] }
 0x197   : > { %1578 = vst.msk [vmem:[#allocation2 + $0x28] sm:$0xff] %vm664_vm2, %v1546_v15  ;;  %v1098_v0 = vadd.f32 %v5749_v18, %v1066_v8  ;;  %v946_v9 = vpop.f32.mrb[27].mxu1  ;;  %6063 = vmatmul.mubr.msk.f32.gmra.mrb[132].mxu1 %vm338_vm1, %v5234_v56  ;;  %6112 = vmatprep.mubr.msk.f32.mxu0 %vm338_vm1, %v5298_v58  ;;  %v1071_v13 = vld [vmem:[#allocation2 + $0x80] sm:$0xff] }
 0x198   : > { %1577 = vst.msk [vmem:[#allocation2 + $0x20] sm:$0xff] %vm664_vm2, %v1545_v16  ;;  %v1097_v23 = vadd.f32 %v1065_v12, %v946_v9  ;;  %v1516_v25 = vld [vmem:[#allocation2 + $0x38] sm:$0xff]  ;;  %6065 = vmatprep.mubr.msk.f32.mxu1 %vm338_vm1, %v5235_v60  ;;  %v1073_v12 = vld [vmem:[#allocation2 + $0x90] sm:$0xff] }
 0x199   : > { %1130 = vst.msk [vmem:[#allocation2 + $0x58] sm:$0xff] %vm664_vm2, %v1098_v0  ;;  %v1548_v7 = vadd.f32 %v5793_v4, %v1516_v25  ;;  %v1515_v19 = vld [vmem:[#allocation2 + $0x30] sm:$0xff]  ;;  %v5799_v20 = vpop.f32.mrb[26].mxu0 }
 0x19a   : > { %1129 = vst.msk [vmem:[#allocation2 + $0x50] sm:$0xff] %vm664_vm2, %v1097_v23  ;;  %v1547_v27 = vadd.f32 %v1515_v19, %v1380_v55  ;;  %v5752_v29 = vpop.f32.mrb[28].mxu1  ;;  %v1400_v28 = vpop.f32.mrb[27].mxu0  ;;  %6113 = vmatmul.mubr.msk.f32.gmra.mrb[132].mxu0 %vm338_vm1, %v5299_v5  ;;  %v5304_v4 = vld [vmem:[%s6816_s12 + $0x16a] sm:$0xff]  ;;  %v5305_v56 = vld [vmem:[%s6816_s12 + $0x172] sm:$0xff]  ;;  %v5244_v25 = vld [vmem:[%s6816_s12 + $0x1a1] sm:$0xff] }
 0x19b   : > { %1580 = vst.msk [vmem:[#allocation2 + $0x38] sm:$0xff] %vm664_vm2, %v1548_v7  ;;  %v1100_v38 = vadd.f32 %v5752_v29, %v1068_v24  ;;  %v956_v30 = vpop.f32.mrb[29].mxu1  ;;  %6066 = vmatmul.mubr.msk.f32.gmra.mrb[134].mxu1 %vm338_vm1, %v5236_v14  ;;  %6115 = vmatprep.mubr.msk.f32.mxu0 %vm338_vm1, %v5300_v17  ;;  %v5308_v14 = vld [vmem:[%s6816_s12 + $0x19a] sm:$0xff] }
 0x19c   : > { %1579 = vst.msk [vmem:[#allocation2 + $0x30] sm:$0xff] %vm664_vm2, %v1547_v27  ;;  %v1099_v31 = vadd.f32 %v1067_v3, %v956_v30  ;;  %v1518_v49 = vld [vmem:[#allocation2 + $0x48] sm:$0xff]  ;;  %6068 = vmatprep.mubr.msk.f32.mxu1 %vm338_vm1, %v5237_v22  ;;  %v1075_v24 = vld [vmem:[#allocation2 + $0xa0] sm:$0xff] }
 0x19d   : > { %1132 = vst.msk [vmem:[#allocation2 + $0x68] sm:$0xff] %vm664_vm2, %v1100_v38  ;;  %v1550_v10 = vadd.f32 %v5796_v62, %v1518_v49  ;;  %v1517_v11 = vld [vmem:[#allocation2 + $0x40] sm:$0xff]  ;;  %v5802_v41 = vpop.f32.mrb[28].mxu0 }
 0x19e   : > { %1131 = vst.msk [vmem:[#allocation2 + $0x60] sm:$0xff] %vm664_vm2, %v1099_v31  ;;  %v1549_v53 = vadd.f32 %v1517_v11, %v1390_v21  ;;  %v5755_v63 = vpop.f32.mrb[30].mxu1  ;;  %v1410_v40 = vpop.f32.mrb[29].mxu0  ;;  %6116 = vmatmul.mubr.msk.f32.gmra.mrb[134].mxu0 %vm338_vm1, %v5301_v42  ;;  %v5243_v62 = vld [vmem:[%s6816_s12 + $0x199] sm:$0xff] }
 0x19f   : > { %1582 = vst.msk [vmem:[#allocation2 + $0x48] sm:$0xff] %vm664_vm2, %v1550_v10  ;;  %v1102_v51 = vadd.f32 %v5755_v63, %v1070_v35  ;;  %v966_v34 = vpop.f32.mrb[31].mxu1  ;;  %6069 = vmatmul.mubr.msk.f32.gmra.mrb[136].mxu1 %vm338_vm1, %v5238_v39  ;;  %6118 = vmatprep.mubr.msk.f32.mxu0 %vm338_vm1, %v5302_v33  ;;  %v1074_v21 = vld [vmem:[#allocation2 + $0x98] sm:$0xff] }
 0x1a0   : > { %1581 = vst.msk [vmem:[#allocation2 + $0x40] sm:$0xff] %vm664_vm2, %v1549_v53  ;;  %v1101_v1 = vadd.f32 %v1069_v43, %v966_v34  ;;  %v1520_v44 = vld [vmem:[#allocation2 + $0x58] sm:$0xff]  ;;  %6071 = vmatprep.mubr.msk.f32.mxu1 %vm338_vm1, %v5239_v6  ;;  %v1077_v6 = vld [vmem:[#allocation2 + $0xb0] sm:$0xff]  ;;  %v1080_v43 = vld [vmem:[#allocation2 + $0xc8] sm:$0xff] }
 0x1a1   : > { %1134 = vst.msk [vmem:[#allocation2 + $0x78] sm:$0xff] %vm664_vm2, %v1102_v51  ;;  %v1552_v36 = vadd.f32 %v5799_v20, %v1520_v44  ;;  %v1519_v48 = vld [vmem:[#allocation2 + $0x50] sm:$0xff]  ;;  %v5805_v50 = vpop.f32.mrb[30].mxu0  ;;  %v1076_v20 = vld [vmem:[#allocation2 + $0xa8] sm:$0xff]  ;;  %v1078_v39 = vld [vmem:[#allocation2 + $0xb8] sm:$0xff] }
 0x1a2   : > { %1133 = vst.msk [vmem:[#allocation2 + $0x70] sm:$0xff] %vm664_vm2, %v1101_v1  ;;  %v1551_v55 = vadd.f32 %v1519_v48, %v1400_v28  ;;  %v5758_v59 = vpop.f32.mrb[32].mxu1  ;;  %v1420_v52 = vpop.f32.mrb[31].mxu0  ;;  %6119 = vmatmul.mubr.msk.f32.gmra.mrb[136].mxu0 %vm338_vm1, %v5303_v37  ;;  %v5309_v28 = vld [vmem:[%s6816_s12 + $0x1a2] sm:$0xff] }
 0x1a3   : > { %1584 = vst.msk [vmem:[#allocation2 + $0x58] sm:$0xff] %vm664_vm2, %v1552_v36  ;;  %v1104_v54 = vadd.f32 %v5758_v59, %v1072_v57  ;;  %v976_v61 = vpop.f32.mrb[33].mxu1  ;;  %6072 = vmatmul.mubr.msk.f32.gmra.mrb[138].mxu1 %vm338_vm1, %v5240_v2  ;;  %6121 = vmatprep.mubr.msk.f32.mxu0 %vm338_vm1, %v5304_v4  ;;  %v1079_v2 = vld [vmem:[#allocation2 + $0xc0] sm:$0xff] }
 0x1a4   : > { %1583 = vst.msk [vmem:[#allocation2 + $0x50] sm:$0xff] %vm664_vm2, %v1551_v55  ;;  %v1103_v58 = vadd.f32 %v1071_v13, %v976_v61  ;;  %v1522_v15 = vld [vmem:[#allocation2 + $0x68] sm:$0xff]  ;;  %6074 = vmatprep.mubr.msk.f32.mxu1 %vm338_vm1, %v7451_v46 }
 0x1a5   : > { %1136 = vst.msk [vmem:[#allocation2 + $0x88] sm:$0xff] %vm664_vm2, %v1104_v54  ;;  %v1554_v45 = vadd.f32 %v5802_v41, %v1522_v15  ;;  %v1521_v60 = vld [vmem:[#allocation2 + $0x60] sm:$0xff]  ;;  %v5808_v16 = vpop.f32.mrb[32].mxu0 }
 0x1a6   : > { %1135 = vst.msk [vmem:[#allocation2 + $0x80] sm:$0xff] %vm664_vm2, %v1103_v58  ;;  %v1553_v18 = vadd.f32 %v1521_v60, %v1410_v40  ;;  %v5761_v8 = vpop.f32.mrb[34].mxu1  ;;  %v1430_v0 = vpop.f32.mrb[33].mxu0  ;;  %6122 = vmatmul.mubr.msk.f32.gmra.mrb[138].mxu0 %vm338_vm1, %v5305_v56  ;;  %v1081_v56 = vld [vmem:[#allocation2 + $0xd0] sm:$0xff] }
 0x1a7   : > { %1586 = vst.msk [vmem:[#allocation2 + $0x68] sm:$0xff] %vm664_vm2, %v1554_v45  ;;  %v1106_v9 = vadd.f32 %v5761_v8, %v1074_v21  ;;  %v986_v46 = vpop.f32.mrb[35].mxu1  ;;  %6075 = vmatmul.mubr.msk.f32.gmra.mrb[140].mxu1 %vm338_vm1, %v7460_v47  ;;  %6124 = vmatprep.mubr.msk.f32.mxu0 %vm338_vm1, %v7583_v26  ;;  %v1084_v8 = vld [vmem:[#allocation2 + $0xe8] sm:$0xff] }
 0x1a8   : > { %1585 = vst.msk [vmem:[#allocation2 + $0x60] sm:$0xff] %vm664_vm2, %v1553_v18  ;;  %v1105_v5 = vadd.f32 %v1073_v12, %v986_v46  ;;  %v1524_v23 = vld [vmem:[#allocation2 + $0x78] sm:$0xff]  ;;  %6077 = vmatprep.mubr.msk.f32.mxu1 %vm338_vm1, %v5243_v62  ;;  %v1083_v46 = vld [vmem:[#allocation2 + $0xe0] sm:$0xff] }
 0x1a9   : > { %1138 = vst.msk [vmem:[#allocation2 + $0x98] sm:$0xff] %vm664_vm2, %v1106_v9  ;;  %v1556_v17 = vadd.f32 %v5805_v50, %v1524_v23  ;;  %v1523_v7 = vld [vmem:[#allocation2 + $0x70] sm:$0xff]  ;;  %v5811_v19 = vpop.f32.mrb[34].mxu0 }
 0x1aa   : > { %1137 = vst.msk [vmem:[#allocation2 + $0x90] sm:$0xff] %vm664_vm2, %v1105_v5  ;;  %v1555_v47 = vadd.f32 %v1523_v7, %v1420_v52  ;;  %v5764_v22 = vpop.f32.mrb[36].mxu1  ;;  %v1440_v26 = vpop.f32.mrb[35].mxu0  ;;  %6125 = vmatmul.mubr.msk.f32.gmra.mrb[140].mxu0 %vm338_vm1, %v7598_v32  ;;  %v1082_v52 = vld [vmem:[#allocation2 + $0xd8] sm:$0xff] }
 0x1ab   : > { %1588 = vst.msk [vmem:[#allocation2 + $0x78] sm:$0xff] %vm664_vm2, %v1556_v17  ;;  %v1108_v27 = vadd.f32 %v5764_v22, %v1076_v20  ;;  %v996_v29 = vpop.f32.mrb[37].mxu1  ;;  %6078 = vmatmul.mubr.msk.f32.gmra.mrb[142].mxu1 %vm338_vm1, %v5244_v25  ;;  %6127 = vmatprep.mubr.msk.f32.mxu0 %vm338_vm1, %v5308_v14 }
 0x1ac   : > { %1587 = vst.msk [vmem:[#allocation2 + $0x70] sm:$0xff] %vm664_vm2, %v1555_v47  ;;  %v1107_v38 = vadd.f32 %v1075_v24, %v996_v29  ;;  %v1526_v30 = vld [vmem:[#allocation2 + $0x88] sm:$0xff] }
 0x1ad   : > { %1140 = vst.msk [vmem:[#allocation2 + $0xa8] sm:$0xff] %vm664_vm2, %v1108_v27  ;;  %v1558_v3 = vadd.f32 %v5808_v16, %v1526_v30  ;;  %v1525_v42 = vld [vmem:[#allocation2 + $0x80] sm:$0xff]  ;;  %v5814_v31 = vpop.f32.mrb[36].mxu0 }
 0x1ae   : > { %1139 = vst.msk [vmem:[#allocation2 + $0xa0] sm:$0xff] %vm664_vm2, %v1107_v38  ;;  %v1557_v32 = vadd.f32 %v1525_v42, %v1430_v0  ;;  %v5767_v49 = vpop.f32.mrb[38].mxu1  ;;  %v1450_v33 = vpop.f32.mrb[37].mxu0  ;;  %6128 = vmatmul.mubr.msk.f32.gmra.mrb[142].mxu0 %vm338_vm1, %v5309_v28  ;;  %v1965_v42 = vld [vmem:[#allocation2 + $0x8] sm:$0xff] }
 0x1af   : > { %1590 = vst.msk [vmem:[#allocation2 + $0x88] sm:$0xff] %vm664_vm2, %v1558_v3  ;;  %v1110_v10 = vadd.f32 %v5767_v49, %v1078_v39  ;;  %v1006_v11 = vpop.f32.mrb[39].mxu1  ;;  %v1964_v39 = vld [vmem:[#allocation2] sm:$0xff] }
 0x1b0   : > { %1589 = vst.msk [vmem:[#allocation2 + $0x80] sm:$0xff] %vm664_vm2, %v1557_v32  ;;  %v1109_v41 = vadd.f32 %v1077_v6, %v1006_v11  ;;  %v1528_v53 = vld [vmem:[#allocation2 + $0x98] sm:$0xff] }
 0x1b1   : > { %1142 = vst.msk [vmem:[#allocation2 + $0xb8] sm:$0xff] %vm664_vm2, %v1110_v10  ;;  %v1560_v63 = vadd.f32 %v5811_v19, %v1528_v53  ;;  %v1527_v35 = vld [vmem:[#allocation2 + $0x90] sm:$0xff]  ;;  %v5817_v40 = vpop.f32.mrb[38].mxu0  ;;  %v1086_v19 = vld [vmem:[#allocation2 + $0xf8] sm:$0xff] }
 0x1b2   : > { %1141 = vst.msk [vmem:[#allocation2 + $0xb0] sm:$0xff] %vm664_vm2, %v1109_v41  ;;  %v1559_v51 = vadd.f32 %v1527_v35, %v1440_v26  ;;  %v5770_v34 = vpop.f32.mrb[40].mxu1  ;;  %v1460_v37 = vpop.f32.mrb[39].mxu0  ;;  %v1085_v26 = vld [vmem:[#allocation2 + $0xf0] sm:$0xff]  ;;  %v1967_v35 = vld [vmem:[#allocation2 + $0x18] sm:$0xff] }
 0x1b3   : > { %1592 = vst.msk [vmem:[#allocation2 + $0x98] sm:$0xff] %vm664_vm2, %v1560_v63  ;;  %v1112_v1 = vadd.f32 %v5770_v34, %v1080_v43  ;;  %v1016_v44 = vpop.f32.mrb[41].mxu1  ;;  %v1966_v43 = vld [vmem:[#allocation2 + $0x10] sm:$0xff] }
 0x1b4   : > { %1591 = vst.msk [vmem:[#allocation2 + $0x90] sm:$0xff] %vm664_vm2, %v1559_v51  ;;  %v1111_v4 = vadd.f32 %v1079_v2, %v1016_v44  ;;  %v1530_v36 = vld [vmem:[#allocation2 + $0xa8] sm:$0xff] }
 0x1b5   : > { %1144 = vst.msk [vmem:[#allocation2 + $0xc8] sm:$0xff] %vm664_vm2, %v1112_v1  ;;  %v1562_v48 = vadd.f32 %v5814_v31, %v1530_v36  ;;  %v1529_v50 = vld [vmem:[#allocation2 + $0xa0] sm:$0xff]  ;;  %v5820_v55 = vpop.f32.mrb[40].mxu0 }
 0x1b6   : > { %1143 = vst.msk [vmem:[#allocation2 + $0xc0] sm:$0xff] %vm664_vm2, %v1111_v4  ;;  %v1561_v59 = vadd.f32 %v1529_v50, %v1450_v33  ;;  %v5773_v57 = vpop.f32.mrb[42].mxu1  ;;  %v1470_v54 = vpop.f32.mrb[41].mxu0  ;;  %v1969_v50 = vld [vmem:[#allocation2 + $0x28] sm:$0xff] }
 0x1b7   : > { %1594 = vst.msk [vmem:[#allocation2 + $0xa8] sm:$0xff] %vm664_vm2, %v1562_v48  ;;  %v1114_v61 = vadd.f32 %v5773_v57, %v1082_v52  ;;  %v1026_v13 = vpop.f32.mrb[43].mxu1  ;;  %v1968_v52 = vld [vmem:[#allocation2 + $0x20] sm:$0xff] }
 0x1b8   : > { %1593 = vst.msk [vmem:[#allocation2 + $0xa0] sm:$0xff] %vm664_vm2, %v1561_v59  ;;  %v1113_v58 = vadd.f32 %v1081_v56, %v1026_v13  ;;  %v1532_v15 = vld [vmem:[#allocation2 + $0xb8] sm:$0xff] }
 0x1b9   : > { %1146 = vst.msk [vmem:[#allocation2 + $0xd8] sm:$0xff] %vm664_vm2, %v1114_v61  ;;  %v1564_v45 = vadd.f32 %v5817_v40, %v1532_v15  ;;  %v1531_v60 = vld [vmem:[#allocation2 + $0xb0] sm:$0xff]  ;;  %v5823_v62 = vpop.f32.mrb[42].mxu0 }
 0x1ba   : > { %1145 = vst.msk [vmem:[#allocation2 + $0xd0] sm:$0xff] %vm664_vm2, %v1113_v58  ;;  %v1563_v16 = vadd.f32 %v1531_v60, %v1460_v37  ;;  %v5776_v18 = vpop.f32.mrb[44].mxu1  ;;  %v1480_v21 = vpop.f32.mrb[43].mxu0  ;;  %v1971_v60 = vld [vmem:[#allocation2 + $0x38] sm:$0xff] }
 0x1bb   : > { %1596 = vst.msk [vmem:[#allocation2 + $0xb8] sm:$0xff] %vm664_vm2, %v1564_v45  ;;  %v1116_v0 = vadd.f32 %v5776_v18, %v1084_v8  ;;  %v1036_v9 = vpop.f32.mrb[45].mxu1  ;;  %v1970_v8 = vld [vmem:[#allocation2 + $0x30] sm:$0xff] }
 0x1bc   : > { %1595 = vst.msk [vmem:[#allocation2 + $0xb0] sm:$0xff] %vm664_vm2, %v1563_v16  ;;  %v1115_v12 = vadd.f32 %v1083_v46, %v1036_v9  ;;  %v1534_v5 = vld [vmem:[#allocation2 + $0xc8] sm:$0xff] }
 0x1bd   : > { %1148 = vst.msk [vmem:[#allocation2 + $0xe8] sm:$0xff] %vm664_vm2, %v1116_v0  ;;  %v1566_v23 = vadd.f32 %v5820_v55, %v1534_v5  ;;  %v1533_v25 = vld [vmem:[#allocation2 + $0xc0] sm:$0xff]  ;;  %v5826_v14 = vpop.f32.mrb[44].mxu0 }
 0x1be   : > { %1147 = vst.msk [vmem:[#allocation2 + $0xe0] sm:$0xff] %vm664_vm2, %v1115_v12  ;;  %v1565_v17 = vadd.f32 %v1533_v25, %v1470_v54  ;;  %v5779_v7 = vpop.f32.mrb[46].mxu1  ;;  %v1490_v47 = vpop.f32.mrb[45].mxu0  ;;  %v1973_v25 = vld [vmem:[#allocation2 + $0x48] sm:$0xff] }
 0x1bf   : > { %1598 = vst.msk [vmem:[#allocation2 + $0xc8] sm:$0xff] %vm664_vm2, %v1566_v23  ;;  %v1118_v22 = vadd.f32 %v5779_v7, %v1086_v19  ;;  %v1046_v20 = vpop.f32.mrb[47].mxu1  ;;  %v1972_v19 = vld [vmem:[#allocation2 + $0x40] sm:$0xff] }
 0x1c0   : > { %1597 = vst.msk [vmem:[#allocation2 + $0xc0] sm:$0xff] %vm664_vm2, %v1565_v17  ;;  %v1117_v27 = vadd.f32 %v1085_v26, %v1046_v20  ;;  %v1536_v29 = vld [vmem:[#allocation2 + $0xd8] sm:$0xff] }
 0x1c1   : > { %1150 = vst.msk [vmem:[#allocation2 + $0xf8] sm:$0xff] %vm664_vm2, %v1118_v22  ;;  %v1568_v24 = vadd.f32 %v5823_v62, %v1536_v29  ;;  %v1535_v28 = vld [vmem:[#allocation2 + $0xd0] sm:$0xff]  ;;  %v5829_v38 = vpop.f32.mrb[46].mxu0 }
 0x1c2   : > { %1149 = vst.msk [vmem:[#allocation2 + $0xf0] sm:$0xff] %vm664_vm2, %v1117_v27  ;;  %v1567_v30 = vadd.f32 %v1535_v28, %v1480_v21  ;;  %v5834_v3 = vpop.f32.mrb[48].mxu1  ;;  %v1500_v31 = vpop.f32.mrb[47].mxu0  ;;  %v1975_v28 = vld [vmem:[#allocation2 + $0x58] sm:$0xff] }
 0x1c3   : > { %1600 = vst.msk [vmem:[#allocation2 + $0xd8] sm:$0xff] %vm664_vm2, %v1568_v24  ;;  %v1997_v32 = vadd.f32 %v5834_v3, %v1965_v42  ;;  %v1805_v49 = vpop.f32.mrb[49].mxu1  ;;  %v1974_v42 = vld [vmem:[#allocation2 + $0x50] sm:$0xff] }
 0x1c4   : > { %1599 = vst.msk [vmem:[#allocation2 + $0xd0] sm:$0xff] %vm664_vm2, %v1567_v30  ;;  %v1996_v33 = vadd.f32 %v1964_v39, %v1805_v49  ;;  %v1538_v10 = vld [vmem:[#allocation2 + $0xe8] sm:$0xff] }
 0x1c5   : > { %2029 = vst.msk [vmem:[#allocation2 + $0x8] sm:$0xff] %vm664_vm2, %v1997_v32  ;;  %v1570_v11 = vadd.f32 %v5826_v14, %v1538_v10  ;;  %v1537_v6 = vld [vmem:[#allocation2 + $0xe0] sm:$0xff]  ;;  %v5884_v41 = vpop.f32.mrb[48].mxu0 }
 0x1c6   : > { %2028 = vst.msk [vmem:[#allocation2] sm:$0xff] %vm664_vm2, %v1996_v33  ;;  %v1569_v53 = vadd.f32 %v1537_v6, %v1490_v47  ;;  %v5837_v63 = vpop.f32.mrb[50].mxu1  ;;  %v2259_v40 = vpop.f32.mrb[49].mxu0  ;;  %v1977_v6 = vld [vmem:[#allocation2 + $0x68] sm:$0xff] }
 0x1c7   : > { %1602 = vst.msk [vmem:[#allocation2 + $0xe8] sm:$0xff] %vm664_vm2, %v1570_v11  ;;  %v1999_v51 = vadd.f32 %v5837_v63, %v1967_v35  ;;  %v1815_v34 = vpop.f32.mrb[51].mxu1  ;;  %v1976_v35 = vld [vmem:[#allocation2 + $0x60] sm:$0xff] }
 0x1c8   : > { %1601 = vst.msk [vmem:[#allocation2 + $0xe0] sm:$0xff] %vm664_vm2, %v1569_v53  ;;  %v1998_v37 = vadd.f32 %v1966_v43, %v1815_v34  ;;  %v1540_v1 = vld [vmem:[#allocation2 + $0xf8] sm:$0xff] }
 0x1c9   : > { %2031 = vst.msk [vmem:[#allocation2 + $0x18] sm:$0xff] %vm664_vm2, %v1999_v51  ;;  %v1572_v44 = vadd.f32 %v5829_v38, %v1540_v1  ;;  %v1539_v2 = vld [vmem:[#allocation2 + $0xf0] sm:$0xff]  ;;  %v5887_v4 = vpop.f32.mrb[50].mxu0 }
 0x1ca   : > { %2030 = vst.msk [vmem:[#allocation2 + $0x10] sm:$0xff] %vm664_vm2, %v1998_v37  ;;  %v1571_v36 = vadd.f32 %v1539_v2, %v1500_v31  ;;  %v5840_v48 = vpop.f32.mrb[52].mxu1  ;;  %v2269_v55 = vpop.f32.mrb[51].mxu0  ;;  %v1979_v2 = vld [vmem:[#allocation2 + $0x78] sm:$0xff] }
 0x1cb   : > { %1604 = vst.msk [vmem:[#allocation2 + $0xf8] sm:$0xff] %vm664_vm2, %v1572_v44  ;;  %v2001_v59 = vadd.f32 %v5840_v48, %v1969_v50  ;;  %v1825_v57 = vpop.f32.mrb[53].mxu1  ;;  %v1978_v50 = vld [vmem:[#allocation2 + $0x70] sm:$0xff] }
 0x1cc   : > { %1603 = vst.msk [vmem:[#allocation2 + $0xf0] sm:$0xff] %vm664_vm2, %v1571_v36  ;;  %v2000_v54 = vadd.f32 %v1968_v52, %v1825_v57  ;;  %v2419_v61 = vld [vmem:[#allocation2 + $0x8] sm:$0xff] }
 0x1cd   : > { %2033 = vst.msk [vmem:[#allocation2 + $0x28] sm:$0xff] %vm664_vm2, %v2001_v59  ;;  %v2451_v13 = vadd.f32 %v5884_v41, %v2419_v61  ;;  %v2418_v56 = vld [vmem:[#allocation2] sm:$0xff]  ;;  %v5890_v58 = vpop.f32.mrb[52].mxu0 }
 0x1ce   : > { %2032 = vst.msk [vmem:[#allocation2 + $0x20] sm:$0xff] %vm664_vm2, %v2000_v54  ;;  %v2450_v15 = vadd.f32 %v2418_v56, %v2259_v40  ;;  %v5843_v45 = vpop.f32.mrb[54].mxu1  ;;  %v2279_v62 = vpop.f32.mrb[53].mxu0  ;;  %v1981_v56 = vld [vmem:[#allocation2 + $0x88] sm:$0xff] }
 0x1cf   : > { %2483 = vst.msk [vmem:[#allocation2 + $0x8] sm:$0xff] %vm664_vm2, %v2451_v13  ;;  %v2003_v16 = vadd.f32 %v5843_v45, %v1971_v60  ;;  %v1835_v18 = vpop.f32.mrb[55].mxu1  ;;  %v1980_v60 = vld [vmem:[#allocation2 + $0x80] sm:$0xff] }
 0x1d0   : > { %2482 = vst.msk [vmem:[#allocation2] sm:$0xff] %vm664_vm2, %v2450_v15  ;;  %v2002_v21 = vadd.f32 %v1970_v8, %v1835_v18  ;;  %v2421_v0 = vld [vmem:[#allocation2 + $0x18] sm:$0xff] }
 0x1d1   : > { %2035 = vst.msk [vmem:[#allocation2 + $0x38] sm:$0xff] %vm664_vm2, %v2003_v16  ;;  %v2453_v9 = vadd.f32 %v5887_v4, %v2421_v0  ;;  %v2420_v46 = vld [vmem:[#allocation2 + $0x10] sm:$0xff]  ;;  %v5893_v12 = vpop.f32.mrb[54].mxu0 }
 0x1d2   : > { %2034 = vst.msk [vmem:[#allocation2 + $0x30] sm:$0xff] %vm664_vm2, %v2002_v21  ;;  %v2452_v5 = vadd.f32 %v2420_v46, %v2269_v55  ;;  %v5846_v23 = vpop.f32.mrb[56].mxu1  ;;  %v2289_v14 = vpop.f32.mrb[55].mxu0  ;;  %v1983_v46 = vld [vmem:[#allocation2 + $0x98] sm:$0xff] }
 0x1d3   : > { %2485 = vst.msk [vmem:[#allocation2 + $0x18] sm:$0xff] %vm664_vm2, %v2453_v9  ;;  %v2005_v17 = vadd.f32 %v5846_v23, %v1973_v25  ;;  %v1845_v7 = vpop.f32.mrb[57].mxu1  ;;  %v1982_v25 = vld [vmem:[#allocation2 + $0x90] sm:$0xff] }
 0x1d4   : > { %2484 = vst.msk [vmem:[#allocation2 + $0x10] sm:$0xff] %vm664_vm2, %v2452_v5  ;;  %v2004_v47 = vadd.f32 %v1972_v19, %v1845_v7  ;;  %v2423_v22 = vld [vmem:[#allocation2 + $0x28] sm:$0xff] }
 0x1d5   : > { %2037 = vst.msk [vmem:[#allocation2 + $0x48] sm:$0xff] %vm664_vm2, %v2005_v17  ;;  %v2455_v20 = vadd.f32 %v5890_v58, %v2423_v22  ;;  %v2422_v26 = vld [vmem:[#allocation2 + $0x20] sm:$0xff]  ;;  %v5896_v27 = vpop.f32.mrb[56].mxu0 }
 0x1d6   : > { %2036 = vst.msk [vmem:[#allocation2 + $0x40] sm:$0xff] %vm664_vm2, %v2004_v47  ;;  %v2454_v29 = vadd.f32 %v2422_v26, %v2279_v62  ;;  %v5849_v24 = vpop.f32.mrb[58].mxu1  ;;  %v2299_v38 = vpop.f32.mrb[57].mxu0  ;;  %v1985_v26 = vld [vmem:[#allocation2 + $0xa8] sm:$0xff] }
 0x1d7   : > { %2487 = vst.msk [vmem:[#allocation2 + $0x28] sm:$0xff] %vm664_vm2, %v2455_v20  ;;  %v2007_v30 = vadd.f32 %v5849_v24, %v1975_v28  ;;  %v1855_v3 = vpop.f32.mrb[59].mxu1  ;;  %v1984_v28 = vld [vmem:[#allocation2 + $0xa0] sm:$0xff] }
 0x1d8   : > { %2486 = vst.msk [vmem:[#allocation2 + $0x20] sm:$0xff] %vm664_vm2, %v2454_v29  ;;  %v2006_v31 = vadd.f32 %v1974_v42, %v1855_v3  ;;  %v2425_v32 = vld [vmem:[#allocation2 + $0x38] sm:$0xff] }
 0x1d9   : > { %2039 = vst.msk [vmem:[#allocation2 + $0x58] sm:$0xff] %vm664_vm2, %v2007_v30  ;;  %v2457_v49 = vadd.f32 %v5893_v12, %v2425_v32  ;;  %v2424_v39 = vld [vmem:[#allocation2 + $0x30] sm:$0xff]  ;;  %v5899_v33 = vpop.f32.mrb[58].mxu0 }
 0x1da   : > { %2038 = vst.msk [vmem:[#allocation2 + $0x50] sm:$0xff] %vm664_vm2, %v2006_v31  ;;  %v2456_v10 = vadd.f32 %v2424_v39, %v2289_v14  ;;  %v5852_v11 = vpop.f32.mrb[60].mxu1  ;;  %v2309_v41 = vpop.f32.mrb[59].mxu0  ;;  %v1987_v39 = vld [vmem:[#allocation2 + $0xb8] sm:$0xff] }
 0x1db   : > { %2489 = vst.msk [vmem:[#allocation2 + $0x38] sm:$0xff] %vm664_vm2, %v2457_v49  ;;  %v2009_v53 = vadd.f32 %v5852_v11, %v1977_v6  ;;  %v1865_v63 = vpop.f32.mrb[61].mxu1  ;;  %v1986_v6 = vld [vmem:[#allocation2 + $0xb0] sm:$0xff] }
 0x1dc   : > { %2488 = vst.msk [vmem:[#allocation2 + $0x30] sm:$0xff] %vm664_vm2, %v2456_v10  ;;  %v2008_v40 = vadd.f32 %v1976_v35, %v1865_v63  ;;  %v2427_v51 = vld [vmem:[#allocation2 + $0x48] sm:$0xff] }
 0x1dd   : > { %2041 = vst.msk [vmem:[#allocation2 + $0x68] sm:$0xff] %vm664_vm2, %v2009_v53  ;;  %v2459_v34 = vadd.f32 %v5896_v27, %v2427_v51  ;;  %v2426_v43 = vld [vmem:[#allocation2 + $0x40] sm:$0xff]  ;;  %v5902_v37 = vpop.f32.mrb[60].mxu0 }
 0x1de   : > { %2040 = vst.msk [vmem:[#allocation2 + $0x60] sm:$0xff] %vm664_vm2, %v2008_v40  ;;  %v2458_v1 = vadd.f32 %v2426_v43, %v2299_v38  ;;  %v5855_v44 = vpop.f32.mrb[62].mxu1  ;;  %v2319_v4 = vpop.f32.mrb[61].mxu0  ;;  %v1989_v43 = vld [vmem:[#allocation2 + $0xc8] sm:$0xff] }
 0x1df   : > { %2491 = vst.msk [vmem:[#allocation2 + $0x48] sm:$0xff] %vm664_vm2, %v2459_v34  ;;  %v2011_v36 = vadd.f32 %v5855_v44, %v1979_v2  ;;  %v1875_v48 = vpop.f32.mrb[63].mxu1  ;;  %v1988_v2 = vld [vmem:[#allocation2 + $0xc0] sm:$0xff] }
 0x1e0   : > { %2490 = vst.msk [vmem:[#allocation2 + $0x40] sm:$0xff] %vm664_vm2, %v2458_v1  ;;  %v2010_v55 = vadd.f32 %v1978_v50, %v1875_v48  ;;  %v2429_v59 = vld [vmem:[#allocation2 + $0x58] sm:$0xff] }
 0x1e1   : > { %2043 = vst.msk [vmem:[#allocation2 + $0x78] sm:$0xff] %vm664_vm2, %v2011_v36  ;;  %v2461_v57 = vadd.f32 %v5899_v33, %v2429_v59  ;;  %v2428_v52 = vld [vmem:[#allocation2 + $0x50] sm:$0xff]  ;;  %v5905_v54 = vpop.f32.mrb[62].mxu0 }
 0x1e2   : > { %2042 = vst.msk [vmem:[#allocation2 + $0x70] sm:$0xff] %vm664_vm2, %v2010_v55  ;;  %v2460_v61 = vadd.f32 %v2428_v52, %v2309_v41  ;;  %v5858_v13 = vpop.f32.mrb[64].mxu1  ;;  %v2329_v58 = vpop.f32.mrb[63].mxu0  ;;  %v1991_v52 = vld [vmem:[#allocation2 + $0xd8] sm:$0xff] }
 0x1e3   : > { %2493 = vst.msk [vmem:[#allocation2 + $0x58] sm:$0xff] %vm664_vm2, %v2461_v57  ;;  %v2013_v15 = vadd.f32 %v5858_v13, %v1981_v56  ;;  %v1885_v45 = vpop.f32.mrb[65].mxu1  ;;  %v1990_v56 = vld [vmem:[#allocation2 + $0xd0] sm:$0xff] }
 0x1e4   : > { %2492 = vst.msk [vmem:[#allocation2 + $0x50] sm:$0xff] %vm664_vm2, %v2460_v61  ;;  %v2012_v62 = vadd.f32 %v1980_v60, %v1885_v45  ;;  %v2431_v16 = vld [vmem:[#allocation2 + $0x68] sm:$0xff] }
 0x1e5   : > { %2045 = vst.msk [vmem:[#allocation2 + $0x88] sm:$0xff] %vm664_vm2, %v2013_v15  ;;  %v2463_v18 = vadd.f32 %v5902_v37, %v2431_v16  ;;  %v2430_v8 = vld [vmem:[#allocation2 + $0x60] sm:$0xff]  ;;  %v5908_v21 = vpop.f32.mrb[64].mxu0 }
 0x1e6   : > { %2044 = vst.msk [vmem:[#allocation2 + $0x80] sm:$0xff] %vm664_vm2, %v2012_v62  ;;  %v2462_v0 = vadd.f32 %v2430_v8, %v2319_v4  ;;  %v5861_v9 = vpop.f32.mrb[66].mxu1  ;;  %v2339_v12 = vpop.f32.mrb[65].mxu0  ;;  %v1993_v8 = vld [vmem:[#allocation2 + $0xe8] sm:$0xff] }
 0x1e7   : > { %2495 = vst.msk [vmem:[#allocation2 + $0x68] sm:$0xff] %vm664_vm2, %v2463_v18  ;;  %v2015_v5 = vadd.f32 %v5861_v9, %v1983_v46  ;;  %v1895_v23 = vpop.f32.mrb[67].mxu1  ;;  %v1992_v46 = vld [vmem:[#allocation2 + $0xe0] sm:$0xff] }
 0x1e8   : > { %2494 = vst.msk [vmem:[#allocation2 + $0x60] sm:$0xff] %vm664_vm2, %v2462_v0  ;;  %v2014_v14 = vadd.f32 %v1982_v25, %v1895_v23  ;;  %v2433_v17 = vld [vmem:[#allocation2 + $0x78] sm:$0xff] }
 0x1e9   : > { %2047 = vst.msk [vmem:[#allocation2 + $0x98] sm:$0xff] %vm664_vm2, %v2015_v5  ;;  %v2465_v7 = vadd.f32 %v5905_v54, %v2433_v17  ;;  %v2432_v19 = vld [vmem:[#allocation2 + $0x70] sm:$0xff]  ;;  %v5911_v47 = vpop.f32.mrb[66].mxu0 }
 0x1ea   : > { %2046 = vst.msk [vmem:[#allocation2 + $0x90] sm:$0xff] %vm664_vm2, %v2014_v14  ;;  %v2464_v22 = vadd.f32 %v2432_v19, %v2329_v58  ;;  %v5864_v20 = vpop.f32.mrb[68].mxu1  ;;  %v2349_v27 = vpop.f32.mrb[67].mxu0  ;;  %v1995_v19 = vld [vmem:[#allocation2 + $0xf8] sm:$0xff] }
 0x1eb   : > { %2497 = vst.msk [vmem:[#allocation2 + $0x78] sm:$0xff] %vm664_vm2, %v2465_v7  ;;  %v2017_v29 = vadd.f32 %v5864_v20, %v1985_v26  ;;  %v1905_v24 = vpop.f32.mrb[69].mxu1  ;;  %v1994_v26 = vld [vmem:[#allocation2 + $0xf0] sm:$0xff] }
 0x1ec   : > { %2496 = vst.msk [vmem:[#allocation2 + $0x70] sm:$0xff] %vm664_vm2, %v2464_v22  ;;  %v2016_v38 = vadd.f32 %v1984_v28, %v1905_v24  ;;  %v2435_v30 = vld [vmem:[#allocation2 + $0x88] sm:$0xff] }
 0x1ed   : > { %2049 = vst.msk [vmem:[#allocation2 + $0xa8] sm:$0xff] %vm664_vm2, %v2017_v29  ;;  %v2467_v3 = vadd.f32 %v5908_v21, %v2435_v30  ;;  %v2434_v42 = vld [vmem:[#allocation2 + $0x80] sm:$0xff]  ;;  %v5914_v31 = vpop.f32.mrb[68].mxu0 }
 0x1ee   : > { %2048 = vst.msk [vmem:[#allocation2 + $0xa0] sm:$0xff] %vm664_vm2, %v2016_v38  ;;  %v2466_v32 = vadd.f32 %v2434_v42, %v2339_v12  ;;  %v5867_v49 = vpop.f32.mrb[70].mxu1  ;;  %v2359_v33 = vpop.f32.mrb[69].mxu0  ;;  %v2873_v42 = vld [vmem:[#allocation2 + $0x8] sm:$0xff] }
 0x1ef   : > { %2499 = vst.msk [vmem:[#allocation2 + $0x88] sm:$0xff] %vm664_vm2, %v2467_v3  ;;  %v2019_v10 = vadd.f32 %v5867_v49, %v1987_v39  ;;  %v1915_v11 = vpop.f32.mrb[71].mxu1  ;;  %v2872_v39 = vld [vmem:[#allocation2] sm:$0xff] }
 0x1f0   : > { %2498 = vst.msk [vmem:[#allocation2 + $0x80] sm:$0xff] %vm664_vm2, %v2466_v32  ;;  %v2018_v41 = vadd.f32 %v1986_v6, %v1915_v11  ;;  %v2437_v53 = vld [vmem:[#allocation2 + $0x98] sm:$0xff] }
 0x1f1   : > { %2051 = vst.msk [vmem:[#allocation2 + $0xb8] sm:$0xff] %vm664_vm2, %v2019_v10  ;;  %v2469_v63 = vadd.f32 %v5911_v47, %v2437_v53  ;;  %v2436_v35 = vld [vmem:[#allocation2 + $0x90] sm:$0xff]  ;;  %v5917_v40 = vpop.f32.mrb[70].mxu0 }
 0x1f2   : > { %2050 = vst.msk [vmem:[#allocation2 + $0xb0] sm:$0xff] %vm664_vm2, %v2018_v41  ;;  %v2468_v51 = vadd.f32 %v2436_v35, %v2349_v27  ;;  %v5870_v34 = vpop.f32.mrb[72].mxu1  ;;  %v2369_v37 = vpop.f32.mrb[71].mxu0  ;;  %v2875_v35 = vld [vmem:[#allocation2 + $0x18] sm:$0xff] }
 0x1f3   : > { %2501 = vst.msk [vmem:[#allocation2 + $0x98] sm:$0xff] %vm664_vm2, %v2469_v63  ;;  %v2021_v1 = vadd.f32 %v5870_v34, %v1989_v43  ;;  %v1925_v44 = vpop.f32.mrb[73].mxu1  ;;  %v2874_v43 = vld [vmem:[#allocation2 + $0x10] sm:$0xff] }
 0x1f4   : > { %2500 = vst.msk [vmem:[#allocation2 + $0x90] sm:$0xff] %vm664_vm2, %v2468_v51  ;;  %v2020_v4 = vadd.f32 %v1988_v2, %v1925_v44  ;;  %v2439_v36 = vld [vmem:[#allocation2 + $0xa8] sm:$0xff] }
 0x1f5   : > { %2053 = vst.msk [vmem:[#allocation2 + $0xc8] sm:$0xff] %vm664_vm2, %v2021_v1  ;;  %v2471_v48 = vadd.f32 %v5914_v31, %v2439_v36  ;;  %v2438_v50 = vld [vmem:[#allocation2 + $0xa0] sm:$0xff]  ;;  %v5920_v55 = vpop.f32.mrb[72].mxu0 }
 0x1f6   : > { %2052 = vst.msk [vmem:[#allocation2 + $0xc0] sm:$0xff] %vm664_vm2, %v2020_v4  ;;  %v2470_v59 = vadd.f32 %v2438_v50, %v2359_v33  ;;  %v5873_v57 = vpop.f32.mrb[74].mxu1  ;;  %v2379_v54 = vpop.f32.mrb[73].mxu0  ;;  %v2877_v50 = vld [vmem:[#allocation2 + $0x28] sm:$0xff] }
 0x1f7   : > { %2503 = vst.msk [vmem:[#allocation2 + $0xa8] sm:$0xff] %vm664_vm2, %v2471_v48  ;;  %v2023_v61 = vadd.f32 %v5873_v57, %v1991_v52  ;;  %v1935_v13 = vpop.f32.mrb[75].mxu1  ;;  %v2876_v52 = vld [vmem:[#allocation2 + $0x20] sm:$0xff] }
 0x1f8   : > { %2502 = vst.msk [vmem:[#allocation2 + $0xa0] sm:$0xff] %vm664_vm2, %v2470_v59  ;;  %v2022_v58 = vadd.f32 %v1990_v56, %v1935_v13  ;;  %v2441_v15 = vld [vmem:[#allocation2 + $0xb8] sm:$0xff] }
 0x1f9   : > { %2055 = vst.msk [vmem:[#allocation2 + $0xd8] sm:$0xff] %vm664_vm2, %v2023_v61  ;;  %v2473_v45 = vadd.f32 %v5917_v40, %v2441_v15  ;;  %v2440_v60 = vld [vmem:[#allocation2 + $0xb0] sm:$0xff]  ;;  %v5923_v62 = vpop.f32.mrb[74].mxu0 }
 0x1fa   : > { %2054 = vst.msk [vmem:[#allocation2 + $0xd0] sm:$0xff] %vm664_vm2, %v2022_v58  ;;  %v2472_v16 = vadd.f32 %v2440_v60, %v2369_v37  ;;  %v5876_v18 = vpop.f32.mrb[76].mxu1  ;;  %v2389_v21 = vpop.f32.mrb[75].mxu0  ;;  %v2879_v60 = vld [vmem:[#allocation2 + $0x38] sm:$0xff] }
 0x1fb   : > { %2505 = vst.msk [vmem:[#allocation2 + $0xb8] sm:$0xff] %vm664_vm2, %v2473_v45  ;;  %v2025_v0 = vadd.f32 %v5876_v18, %v1993_v8  ;;  %v1945_v9 = vpop.f32.mrb[77].mxu1  ;;  %v2878_v8 = vld [vmem:[#allocation2 + $0x30] sm:$0xff] }
 0x1fc   : > { %2504 = vst.msk [vmem:[#allocation2 + $0xb0] sm:$0xff] %vm664_vm2, %v2472_v16  ;;  %v2024_v12 = vadd.f32 %v1992_v46, %v1945_v9  ;;  %v2443_v5 = vld [vmem:[#allocation2 + $0xc8] sm:$0xff] }
 0x1fd   : > { %2057 = vst.msk [vmem:[#allocation2 + $0xe8] sm:$0xff] %vm664_vm2, %v2025_v0  ;;  %v2475_v23 = vadd.f32 %v5920_v55, %v2443_v5  ;;  %v2442_v25 = vld [vmem:[#allocation2 + $0xc0] sm:$0xff]  ;;  %v5926_v14 = vpop.f32.mrb[76].mxu0 }
 0x1fe   : > { %2056 = vst.msk [vmem:[#allocation2 + $0xe0] sm:$0xff] %vm664_vm2, %v2024_v12  ;;  %v2474_v17 = vadd.f32 %v2442_v25, %v2379_v54  ;;  %v5879_v7 = vpop.f32.mrb[78].mxu1  ;;  %v2399_v47 = vpop.f32.mrb[77].mxu0  ;;  %v2881_v25 = vld [vmem:[#allocation2 + $0x48] sm:$0xff] }
 0x1ff   : > { %2507 = vst.msk [vmem:[#allocation2 + $0xc8] sm:$0xff] %vm664_vm2, %v2475_v23  ;;  %v2027_v22 = vadd.f32 %v5879_v7, %v1995_v19  ;;  %v1955_v20 = vpop.f32.mrb[79].mxu1  ;;  %v2880_v19 = vld [vmem:[#allocation2 + $0x40] sm:$0xff] }
 0x200   : > { %2506 = vst.msk [vmem:[#allocation2 + $0xc0] sm:$0xff] %vm664_vm2, %v2474_v17  ;;  %v2026_v27 = vadd.f32 %v1994_v26, %v1955_v20  ;;  %v2445_v29 = vld [vmem:[#allocation2 + $0xd8] sm:$0xff] }
 0x201   : > { %2059 = vst.msk [vmem:[#allocation2 + $0xf8] sm:$0xff] %vm664_vm2, %v2027_v22  ;;  %v2477_v24 = vadd.f32 %v5923_v62, %v2445_v29  ;;  %v2444_v28 = vld [vmem:[#allocation2 + $0xd0] sm:$0xff]  ;;  %v5929_v38 = vpop.f32.mrb[78].mxu0 }
 0x202   : > { %2058 = vst.msk [vmem:[#allocation2 + $0xf0] sm:$0xff] %vm664_vm2, %v2026_v27  ;;  %v2476_v30 = vadd.f32 %v2444_v28, %v2389_v21  ;;  %v5934_v3 = vpop.f32.mrb[80].mxu1  ;;  %v2409_v31 = vpop.f32.mrb[79].mxu0  ;;  %v2883_v28 = vld [vmem:[#allocation2 + $0x58] sm:$0xff] }
 0x203   : > { %2509 = vst.msk [vmem:[#allocation2 + $0xd8] sm:$0xff] %vm664_vm2, %v2477_v24  ;;  %v2905_v32 = vadd.f32 %v5934_v3, %v2873_v42  ;;  %v2713_v49 = vpop.f32.mrb[81].mxu1  ;;  %v2882_v42 = vld [vmem:[#allocation2 + $0x50] sm:$0xff] }
 0x204   : > { %2508 = vst.msk [vmem:[#allocation2 + $0xd0] sm:$0xff] %vm664_vm2, %v2476_v30  ;;  %v2904_v33 = vadd.f32 %v2872_v39, %v2713_v49  ;;  %v2447_v10 = vld [vmem:[#allocation2 + $0xe8] sm:$0xff] }
 0x205   : > { %2937 = vst.msk [vmem:[#allocation2 + $0x8] sm:$0xff] %vm664_vm2, %v2905_v32  ;;  %v2479_v11 = vadd.f32 %v5926_v14, %v2447_v10  ;;  %v2446_v6 = vld [vmem:[#allocation2 + $0xe0] sm:$0xff]  ;;  %v5984_v41 = vpop.f32.mrb[80].mxu0 }
 0x206   : > { %2936 = vst.msk [vmem:[#allocation2] sm:$0xff] %vm664_vm2, %v2904_v33  ;;  %v2478_v53 = vadd.f32 %v2446_v6, %v2399_v47  ;;  %v5937_v63 = vpop.f32.mrb[82].mxu1  ;;  %v3168_v40 = vpop.f32.mrb[81].mxu0  ;;  %v2885_v6 = vld [vmem:[#allocation2 + $0x68] sm:$0xff] }
 0x207   : > { %2511 = vst.msk [vmem:[#allocation2 + $0xe8] sm:$0xff] %vm664_vm2, %v2479_v11  ;;  %v2907_v51 = vadd.f32 %v5937_v63, %v2875_v35  ;;  %v2723_v34 = vpop.f32.mrb[83].mxu1  ;;  %v2884_v35 = vld [vmem:[#allocation2 + $0x60] sm:$0xff] }
 0x208   : > { %2510 = vst.msk [vmem:[#allocation2 + $0xe0] sm:$0xff] %vm664_vm2, %v2478_v53  ;;  %v2906_v37 = vadd.f32 %v2874_v43, %v2723_v34  ;;  %v2449_v1 = vld [vmem:[#allocation2 + $0xf8] sm:$0xff] }
 0x209   : > { %2939 = vst.msk [vmem:[#allocation2 + $0x18] sm:$0xff] %vm664_vm2, %v2907_v51  ;;  %v2481_v44 = vadd.f32 %v5929_v38, %v2449_v1  ;;  %v2448_v2 = vld [vmem:[#allocation2 + $0xf0] sm:$0xff]  ;;  %v5987_v4 = vpop.f32.mrb[82].mxu0 }
 0x20a   : > { %2938 = vst.msk [vmem:[#allocation2 + $0x10] sm:$0xff] %vm664_vm2, %v2906_v37  ;;  %v2480_v36 = vadd.f32 %v2448_v2, %v2409_v31  ;;  %v5940_v48 = vpop.f32.mrb[84].mxu1  ;;  %v3178_v55 = vpop.f32.mrb[83].mxu0  ;;  %v2887_v2 = vld [vmem:[#allocation2 + $0x78] sm:$0xff] }
 0x20b   : > { %2513 = vst.msk [vmem:[#allocation2 + $0xf8] sm:$0xff] %vm664_vm2, %v2481_v44  ;;  %v2909_v59 = vadd.f32 %v5940_v48, %v2877_v50  ;;  %v2733_v57 = vpop.f32.mrb[85].mxu1  ;;  %v2886_v50 = vld [vmem:[#allocation2 + $0x70] sm:$0xff] }
 0x20c   : > { %2512 = vst.msk [vmem:[#allocation2 + $0xf0] sm:$0xff] %vm664_vm2, %v2480_v36  ;;  %v2908_v54 = vadd.f32 %v2876_v52, %v2733_v57  ;;  %v3328_v61 = vld [vmem:[#allocation2 + $0x8] sm:$0xff] }
 0x20d   : > { %2941 = vst.msk [vmem:[#allocation2 + $0x28] sm:$0xff] %vm664_vm2, %v2909_v59  ;;  %v3360_v13 = vadd.f32 %v5984_v41, %v3328_v61  ;;  %v3327_v56 = vld [vmem:[#allocation2] sm:$0xff]  ;;  %v5990_v58 = vpop.f32.mrb[84].mxu0 }
 0x20e   : > { %2940 = vst.msk [vmem:[#allocation2 + $0x20] sm:$0xff] %vm664_vm2, %v2908_v54  ;;  %v3359_v15 = vadd.f32 %v3327_v56, %v3168_v40  ;;  %v5943_v45 = vpop.f32.mrb[86].mxu1  ;;  %v3188_v62 = vpop.f32.mrb[85].mxu0  ;;  %v2889_v56 = vld [vmem:[#allocation2 + $0x88] sm:$0xff] }
 0x20f   : > { %3392 = vst.msk [vmem:[#allocation2 + $0x8] sm:$0xff] %vm664_vm2, %v3360_v13  ;;  %v2911_v16 = vadd.f32 %v5943_v45, %v2879_v60  ;;  %v2743_v18 = vpop.f32.mrb[87].mxu1  ;;  %v2888_v60 = vld [vmem:[#allocation2 + $0x80] sm:$0xff] }
 0x210   : > { %3391 = vst.msk [vmem:[#allocation2] sm:$0xff] %vm664_vm2, %v3359_v15  ;;  %v2910_v21 = vadd.f32 %v2878_v8, %v2743_v18  ;;  %v3330_v0 = vld [vmem:[#allocation2 + $0x18] sm:$0xff] }
 0x211   : > { %2943 = vst.msk [vmem:[#allocation2 + $0x38] sm:$0xff] %vm664_vm2, %v2911_v16  ;;  %v3362_v9 = vadd.f32 %v5987_v4, %v3330_v0  ;;  %v3329_v46 = vld [vmem:[#allocation2 + $0x10] sm:$0xff]  ;;  %v5993_v12 = vpop.f32.mrb[86].mxu0 }
 0x212   : > { %2942 = vst.msk [vmem:[#allocation2 + $0x30] sm:$0xff] %vm664_vm2, %v2910_v21  ;;  %v3361_v5 = vadd.f32 %v3329_v46, %v3178_v55  ;;  %v5946_v23 = vpop.f32.mrb[88].mxu1  ;;  %v3198_v14 = vpop.f32.mrb[87].mxu0  ;;  %v2891_v46 = vld [vmem:[#allocation2 + $0x98] sm:$0xff] }
 0x213   : > { %3394 = vst.msk [vmem:[#allocation2 + $0x18] sm:$0xff] %vm664_vm2, %v3362_v9  ;;  %v2913_v17 = vadd.f32 %v5946_v23, %v2881_v25  ;;  %v2753_v7 = vpop.f32.mrb[89].mxu1  ;;  %v2890_v25 = vld [vmem:[#allocation2 + $0x90] sm:$0xff] }
 0x214   : > { %3393 = vst.msk [vmem:[#allocation2 + $0x10] sm:$0xff] %vm664_vm2, %v3361_v5  ;;  %v2912_v47 = vadd.f32 %v2880_v19, %v2753_v7  ;;  %v3332_v22 = vld [vmem:[#allocation2 + $0x28] sm:$0xff] }
 0x215   : > { %2945 = vst.msk [vmem:[#allocation2 + $0x48] sm:$0xff] %vm664_vm2, %v2913_v17  ;;  %v3364_v20 = vadd.f32 %v5990_v58, %v3332_v22  ;;  %v3331_v26 = vld [vmem:[#allocation2 + $0x20] sm:$0xff]  ;;  %v5996_v27 = vpop.f32.mrb[88].mxu0 }
 0x216   : > { %2944 = vst.msk [vmem:[#allocation2 + $0x40] sm:$0xff] %vm664_vm2, %v2912_v47  ;;  %v3363_v29 = vadd.f32 %v3331_v26, %v3188_v62  ;;  %v5949_v24 = vpop.f32.mrb[90].mxu1  ;;  %v3208_v38 = vpop.f32.mrb[89].mxu0  ;;  %v2893_v26 = vld [vmem:[#allocation2 + $0xa8] sm:$0xff] }
 0x217   : > { %3396 = vst.msk [vmem:[#allocation2 + $0x28] sm:$0xff] %vm664_vm2, %v3364_v20  ;;  %v2915_v30 = vadd.f32 %v5949_v24, %v2883_v28  ;;  %v2763_v3 = vpop.f32.mrb[91].mxu1  ;;  %v2892_v28 = vld [vmem:[#allocation2 + $0xa0] sm:$0xff] }
 0x218   : > { %3395 = vst.msk [vmem:[#allocation2 + $0x20] sm:$0xff] %vm664_vm2, %v3363_v29  ;;  %v2914_v31 = vadd.f32 %v2882_v42, %v2763_v3  ;;  %v3334_v32 = vld [vmem:[#allocation2 + $0x38] sm:$0xff] }
 0x219   : > { %2947 = vst.msk [vmem:[#allocation2 + $0x58] sm:$0xff] %vm664_vm2, %v2915_v30  ;;  %v3366_v49 = vadd.f32 %v5993_v12, %v3334_v32  ;;  %v3333_v39 = vld [vmem:[#allocation2 + $0x30] sm:$0xff]  ;;  %v5999_v33 = vpop.f32.mrb[90].mxu0 }
 0x21a   : > { %2946 = vst.msk [vmem:[#allocation2 + $0x50] sm:$0xff] %vm664_vm2, %v2914_v31  ;;  %v3365_v10 = vadd.f32 %v3333_v39, %v3198_v14  ;;  %v5952_v11 = vpop.f32.mrb[92].mxu1  ;;  %v3218_v41 = vpop.f32.mrb[91].mxu0  ;;  %v2895_v39 = vld [vmem:[#allocation2 + $0xb8] sm:$0xff] }
 0x21b   : > { %3398 = vst.msk [vmem:[#allocation2 + $0x38] sm:$0xff] %vm664_vm2, %v3366_v49  ;;  %v2917_v53 = vadd.f32 %v5952_v11, %v2885_v6  ;;  %v2773_v63 = vpop.f32.mrb[93].mxu1  ;;  %v2894_v6 = vld [vmem:[#allocation2 + $0xb0] sm:$0xff] }
 0x21c   : > { %3397 = vst.msk [vmem:[#allocation2 + $0x30] sm:$0xff] %vm664_vm2, %v3365_v10  ;;  %v2916_v40 = vadd.f32 %v2884_v35, %v2773_v63  ;;  %v3336_v51 = vld [vmem:[#allocation2 + $0x48] sm:$0xff] }
 0x21d   : > { %2949 = vst.msk [vmem:[#allocation2 + $0x68] sm:$0xff] %vm664_vm2, %v2917_v53  ;;  %v3368_v34 = vadd.f32 %v5996_v27, %v3336_v51  ;;  %v3335_v43 = vld [vmem:[#allocation2 + $0x40] sm:$0xff]  ;;  %v6002_v37 = vpop.f32.mrb[92].mxu0 }
 0x21e   : > { %2948 = vst.msk [vmem:[#allocation2 + $0x60] sm:$0xff] %vm664_vm2, %v2916_v40  ;;  %v3367_v1 = vadd.f32 %v3335_v43, %v3208_v38  ;;  %v5955_v44 = vpop.f32.mrb[94].mxu1  ;;  %v3228_v4 = vpop.f32.mrb[93].mxu0  ;;  %v2897_v43 = vld [vmem:[#allocation2 + $0xc8] sm:$0xff] }
 0x21f   : > { %3400 = vst.msk [vmem:[#allocation2 + $0x48] sm:$0xff] %vm664_vm2, %v3368_v34  ;;  %v2919_v36 = vadd.f32 %v5955_v44, %v2887_v2  ;;  %v2783_v48 = vpop.f32.mrb[95].mxu1  ;;  %v2896_v2 = vld [vmem:[#allocation2 + $0xc0] sm:$0xff] }
 0x220   : > { %3399 = vst.msk [vmem:[#allocation2 + $0x40] sm:$0xff] %vm664_vm2, %v3367_v1  ;;  %v2918_v55 = vadd.f32 %v2886_v50, %v2783_v48  ;;  %v3338_v59 = vld [vmem:[#allocation2 + $0x58] sm:$0xff] }
 0x221   : > { %2951 = vst.msk [vmem:[#allocation2 + $0x78] sm:$0xff] %vm664_vm2, %v2919_v36  ;;  %v3370_v57 = vadd.f32 %v5999_v33, %v3338_v59  ;;  %v3337_v52 = vld [vmem:[#allocation2 + $0x50] sm:$0xff]  ;;  %v6005_v54 = vpop.f32.mrb[94].mxu0 }
 0x222   : > { %2950 = vst.msk [vmem:[#allocation2 + $0x70] sm:$0xff] %vm664_vm2, %v2918_v55  ;;  %v3369_v61 = vadd.f32 %v3337_v52, %v3218_v41  ;;  %v5958_v13 = vpop.f32.mrb[96].mxu1  ;;  %v3238_v58 = vpop.f32.mrb[95].mxu0  ;;  %v2899_v52 = vld [vmem:[#allocation2 + $0xd8] sm:$0xff] }
 0x223   : > { %3402 = vst.msk [vmem:[#allocation2 + $0x58] sm:$0xff] %vm664_vm2, %v3370_v57  ;;  %v2921_v15 = vadd.f32 %v5958_v13, %v2889_v56  ;;  %v2793_v45 = vpop.f32.mrb[97].mxu1  ;;  %v2898_v56 = vld [vmem:[#allocation2 + $0xd0] sm:$0xff] }
 0x224   : > { %3401 = vst.msk [vmem:[#allocation2 + $0x50] sm:$0xff] %vm664_vm2, %v3369_v61  ;;  %v2920_v62 = vadd.f32 %v2888_v60, %v2793_v45  ;;  %v3340_v16 = vld [vmem:[#allocation2 + $0x68] sm:$0xff] }
 0x225   : > { %2953 = vst.msk [vmem:[#allocation2 + $0x88] sm:$0xff] %vm664_vm2, %v2921_v15  ;;  %v3372_v18 = vadd.f32 %v6002_v37, %v3340_v16  ;;  %v3339_v8 = vld [vmem:[#allocation2 + $0x60] sm:$0xff]  ;;  %v6008_v21 = vpop.f32.mrb[96].mxu0 }
 0x226   : > { %2952 = vst.msk [vmem:[#allocation2 + $0x80] sm:$0xff] %vm664_vm2, %v2920_v62  ;;  %v3371_v0 = vadd.f32 %v3339_v8, %v3228_v4  ;;  %v5961_v9 = vpop.f32.mrb[98].mxu1  ;;  %v3248_v12 = vpop.f32.mrb[97].mxu0  ;;  %v2901_v8 = vld [vmem:[#allocation2 + $0xe8] sm:$0xff] }
 0x227   : > { %3404 = vst.msk [vmem:[#allocation2 + $0x68] sm:$0xff] %vm664_vm2, %v3372_v18  ;;  %v2923_v5 = vadd.f32 %v5961_v9, %v2891_v46  ;;  %v2803_v23 = vpop.f32.mrb[99].mxu1  ;;  %v2900_v46 = vld [vmem:[#allocation2 + $0xe0] sm:$0xff] }
 0x228   : > { %3403 = vst.msk [vmem:[#allocation2 + $0x60] sm:$0xff] %vm664_vm2, %v3371_v0  ;;  %v2922_v14 = vadd.f32 %v2890_v25, %v2803_v23  ;;  %v3342_v17 = vld [vmem:[#allocation2 + $0x78] sm:$0xff] }
 0x229   : > { %2955 = vst.msk [vmem:[#allocation2 + $0x98] sm:$0xff] %vm664_vm2, %v2923_v5  ;;  %v3374_v7 = vadd.f32 %v6005_v54, %v3342_v17  ;;  %v3341_v19 = vld [vmem:[#allocation2 + $0x70] sm:$0xff]  ;;  %v6011_v47 = vpop.f32.mrb[98].mxu0 }
 0x22a   : > { %2954 = vst.msk [vmem:[#allocation2 + $0x90] sm:$0xff] %vm664_vm2, %v2922_v14  ;;  %v3373_v22 = vadd.f32 %v3341_v19, %v3238_v58  ;;  %v5964_v20 = vpop.f32.mrb[100].mxu1  ;;  %v3258_v27 = vpop.f32.mrb[99].mxu0  ;;  %v2903_v19 = vld [vmem:[#allocation2 + $0xf8] sm:$0xff] }
 0x22b   : > { %3406 = vst.msk [vmem:[#allocation2 + $0x78] sm:$0xff] %vm664_vm2, %v3374_v7  ;;  %v2925_v29 = vadd.f32 %v5964_v20, %v2893_v26  ;;  %v2813_v24 = vpop.f32.mrb[101].mxu1  ;;  %v2902_v26 = vld [vmem:[#allocation2 + $0xf0] sm:$0xff] }
 0x22c   : > { %3405 = vst.msk [vmem:[#allocation2 + $0x70] sm:$0xff] %vm664_vm2, %v3373_v22  ;;  %v2924_v38 = vadd.f32 %v2892_v28, %v2813_v24  ;;  %v3344_v30 = vld [vmem:[#allocation2 + $0x88] sm:$0xff] }
 0x22d   : > { %2957 = vst.msk [vmem:[#allocation2 + $0xa8] sm:$0xff] %vm664_vm2, %v2925_v29  ;;  %v3376_v3 = vadd.f32 %v6008_v21, %v3344_v30  ;;  %v3343_v42 = vld [vmem:[#allocation2 + $0x80] sm:$0xff]  ;;  %v6014_v31 = vpop.f32.mrb[100].mxu0 }
 0x22e   : > { %2956 = vst.msk [vmem:[#allocation2 + $0xa0] sm:$0xff] %vm664_vm2, %v2924_v38  ;;  %v3375_v32 = vadd.f32 %v3343_v42, %v3248_v12  ;;  %v5967_v49 = vpop.f32.mrb[102].mxu1  ;;  %v3268_v33 = vpop.f32.mrb[101].mxu0  ;;  %v3782_v42 = vld [vmem:[#allocation2 + $0x8] sm:$0xff] }
 0x22f   : > { %3408 = vst.msk [vmem:[#allocation2 + $0x88] sm:$0xff] %vm664_vm2, %v3376_v3  ;;  %v2927_v10 = vadd.f32 %v5967_v49, %v2895_v39  ;;  %v2823_v11 = vpop.f32.mrb[103].mxu1  ;;  %v3781_v39 = vld [vmem:[#allocation2] sm:$0xff] }
 0x230   : > { %3407 = vst.msk [vmem:[#allocation2 + $0x80] sm:$0xff] %vm664_vm2, %v3375_v32  ;;  %v2926_v41 = vadd.f32 %v2894_v6, %v2823_v11  ;;  %v3346_v53 = vld [vmem:[#allocation2 + $0x98] sm:$0xff] }
 0x231   : > { %2959 = vst.msk [vmem:[#allocation2 + $0xb8] sm:$0xff] %vm664_vm2, %v2927_v10  ;;  %v3378_v63 = vadd.f32 %v6011_v47, %v3346_v53  ;;  %v3345_v35 = vld [vmem:[#allocation2 + $0x90] sm:$0xff]  ;;  %v6017_v40 = vpop.f32.mrb[102].mxu0 }
 0x232   : > { %2958 = vst.msk [vmem:[#allocation2 + $0xb0] sm:$0xff] %vm664_vm2, %v2926_v41  ;;  %v3377_v51 = vadd.f32 %v3345_v35, %v3258_v27  ;;  %v5970_v34 = vpop.f32.mrb[104].mxu1  ;;  %v3278_v37 = vpop.f32.mrb[103].mxu0  ;;  %v3784_v35 = vld [vmem:[#allocation2 + $0x18] sm:$0xff] }
 0x233   : > { %3410 = vst.msk [vmem:[#allocation2 + $0x98] sm:$0xff] %vm664_vm2, %v3378_v63  ;;  %v2929_v1 = vadd.f32 %v5970_v34, %v2897_v43  ;;  %v2833_v44 = vpop.f32.mrb[105].mxu1  ;;  %v3783_v43 = vld [vmem:[#allocation2 + $0x10] sm:$0xff] }
 0x234   : > { %3409 = vst.msk [vmem:[#allocation2 + $0x90] sm:$0xff] %vm664_vm2, %v3377_v51  ;;  %v2928_v4 = vadd.f32 %v2896_v2, %v2833_v44  ;;  %v3348_v36 = vld [vmem:[#allocation2 + $0xa8] sm:$0xff] }
 0x235   : > { %2961 = vst.msk [vmem:[#allocation2 + $0xc8] sm:$0xff] %vm664_vm2, %v2929_v1  ;;  %v3380_v48 = vadd.f32 %v6014_v31, %v3348_v36  ;;  %v3347_v50 = vld [vmem:[#allocation2 + $0xa0] sm:$0xff]  ;;  %v6020_v55 = vpop.f32.mrb[104].mxu0 }
 0x236   : > { %2960 = vst.msk [vmem:[#allocation2 + $0xc0] sm:$0xff] %vm664_vm2, %v2928_v4  ;;  %v3379_v59 = vadd.f32 %v3347_v50, %v3268_v33  ;;  %v5973_v57 = vpop.f32.mrb[106].mxu1  ;;  %v3288_v54 = vpop.f32.mrb[105].mxu0  ;;  %v3786_v50 = vld [vmem:[#allocation2 + $0x28] sm:$0xff] }
 0x237   : > { %3412 = vst.msk [vmem:[#allocation2 + $0xa8] sm:$0xff] %vm664_vm2, %v3380_v48  ;;  %v2931_v61 = vadd.f32 %v5973_v57, %v2899_v52  ;;  %v2843_v13 = vpop.f32.mrb[107].mxu1  ;;  %v3785_v52 = vld [vmem:[#allocation2 + $0x20] sm:$0xff] }
 0x238   : > { %3411 = vst.msk [vmem:[#allocation2 + $0xa0] sm:$0xff] %vm664_vm2, %v3379_v59  ;;  %v2930_v58 = vadd.f32 %v2898_v56, %v2843_v13  ;;  %v3350_v15 = vld [vmem:[#allocation2 + $0xb8] sm:$0xff] }
 0x239   : > { %2963 = vst.msk [vmem:[#allocation2 + $0xd8] sm:$0xff] %vm664_vm2, %v2931_v61  ;;  %v3382_v45 = vadd.f32 %v6017_v40, %v3350_v15  ;;  %v3349_v60 = vld [vmem:[#allocation2 + $0xb0] sm:$0xff]  ;;  %v6023_v62 = vpop.f32.mrb[106].mxu0 }
 0x23a   : > { %2962 = vst.msk [vmem:[#allocation2 + $0xd0] sm:$0xff] %vm664_vm2, %v2930_v58  ;;  %v3381_v16 = vadd.f32 %v3349_v60, %v3278_v37  ;;  %v5976_v18 = vpop.f32.mrb[108].mxu1  ;;  %v3298_v21 = vpop.f32.mrb[107].mxu0  ;;  %v3788_v60 = vld [vmem:[#allocation2 + $0x38] sm:$0xff] }
 0x23b   : > { %3414 = vst.msk [vmem:[#allocation2 + $0xb8] sm:$0xff] %vm664_vm2, %v3382_v45  ;;  %v2933_v0 = vadd.f32 %v5976_v18, %v2901_v8  ;;  %v2853_v9 = vpop.f32.mrb[109].mxu1  ;;  %v3787_v8 = vld [vmem:[#allocation2 + $0x30] sm:$0xff] }
 0x23c   : > { %3413 = vst.msk [vmem:[#allocation2 + $0xb0] sm:$0xff] %vm664_vm2, %v3381_v16  ;;  %v2932_v12 = vadd.f32 %v2900_v46, %v2853_v9  ;;  %v3352_v5 = vld [vmem:[#allocation2 + $0xc8] sm:$0xff] }
 0x23d   : > { %2965 = vst.msk [vmem:[#allocation2 + $0xe8] sm:$0xff] %vm664_vm2, %v2933_v0  ;;  %v3384_v23 = vadd.f32 %v6020_v55, %v3352_v5  ;;  %v3351_v25 = vld [vmem:[#allocation2 + $0xc0] sm:$0xff]  ;;  %v6026_v14 = vpop.f32.mrb[108].mxu0 }
 0x23e   : > { %2964 = vst.msk [vmem:[#allocation2 + $0xe0] sm:$0xff] %vm664_vm2, %v2932_v12  ;;  %v3383_v17 = vadd.f32 %v3351_v25, %v3288_v54  ;;  %v5979_v7 = vpop.f32.mrb[110].mxu1  ;;  %v3308_v47 = vpop.f32.mrb[109].mxu0  ;;  %v3790_v25 = vld [vmem:[#allocation2 + $0x48] sm:$0xff] }
 0x23f   : > { %3416 = vst.msk [vmem:[#allocation2 + $0xc8] sm:$0xff] %vm664_vm2, %v3384_v23  ;;  %v2935_v22 = vadd.f32 %v5979_v7, %v2903_v19  ;;  %v2863_v20 = vpop.f32.mrb[111].mxu1  ;;  %v3789_v19 = vld [vmem:[#allocation2 + $0x40] sm:$0xff] }
 0x240   : > { %3415 = vst.msk [vmem:[#allocation2 + $0xc0] sm:$0xff] %vm664_vm2, %v3383_v17  ;;  %v2934_v27 = vadd.f32 %v2902_v26, %v2863_v20  ;;  %v3354_v29 = vld [vmem:[#allocation2 + $0xd8] sm:$0xff] }
 0x241   : > { %2967 = vst.msk [vmem:[#allocation2 + $0xf8] sm:$0xff] %vm664_vm2, %v2935_v22  ;;  %v3386_v24 = vadd.f32 %v6023_v62, %v3354_v29  ;;  %v3353_v28 = vld [vmem:[#allocation2 + $0xd0] sm:$0xff]  ;;  %v6029_v38 = vpop.f32.mrb[110].mxu0 }
 0x242   : > { %2966 = vst.msk [vmem:[#allocation2 + $0xf0] sm:$0xff] %vm664_vm2, %v2934_v27  ;;  %v3385_v30 = vadd.f32 %v3353_v28, %v3298_v21  ;;  %v6034_v3 = vpop.f32.mrb[112].mxu1  ;;  %v3318_v31 = vpop.f32.mrb[111].mxu0  ;;  %v7969_v28 = vld [vmem:[#allocation9] ss:$0 sm:$0xff] }
 0x243   : > { %3418 = vst.msk [vmem:[#allocation2 + $0xd8] sm:$0xff] %vm664_vm2, %v3386_v24  ;;  %v3814_v32 = vadd.f32 %v6034_v3, %v3782_v42  ;;  %v3622_v49 = vpop.f32.mrb[113].mxu1  ;;  %v3792_v3 = vld [vmem:[#allocation2 + $0x58] sm:$0xff] }
 0x244   : > { %3417 = vst.msk [vmem:[#allocation2 + $0xd0] sm:$0xff] %vm664_vm2, %v3385_v30  ;;  %v3813_v33 = vadd.f32 %v3781_v39, %v3622_v49  ;;  %v3356_v10 = vld [vmem:[#allocation2 + $0xe8] sm:$0xff] }
 0x245   : > { %3846 = vst.msk [vmem:[#allocation2 + $0x8] sm:$0xff] %vm664_vm2, %v3814_v32  ;;  %v3388_v11 = vadd.f32 %v6026_v14, %v3356_v10  ;;  %v3355_v6 = vld [vmem:[#allocation2 + $0xe0] sm:$0xff]  ;;  %v6084_v41 = vpop.f32.mrb[112].mxu0 }
 0x246   : > { %3845 = vst.msk [vmem:[#allocation2] sm:$0xff] %vm664_vm2, %v3813_v33  ;;  %v3387_v53 = vadd.f32 %v3355_v6, %v3308_v47  ;;  %v6037_v63 = vpop.f32.mrb[114].mxu1  ;;  %v4076_v40 = vpop.f32.mrb[113].mxu0  ;;  %v7965_v47 = vld [vmem:[#allocation8] ss:$0 sm:$0xff]  ;;  %v3791_v33 = vld [vmem:[#allocation2 + $0x50] sm:$0xff] }
 0x247   : > { %3420 = vst.msk [vmem:[#allocation2 + $0xe8] sm:$0xff] %vm664_vm2, %v3388_v11  ;;  %v3816_v51 = vadd.f32 %v6037_v63, %v3784_v35  ;;  %v3632_v34 = vpop.f32.mrb[115].mxu1 }
 0x248   : > { %3419 = vst.msk [vmem:[#allocation2 + $0xe0] sm:$0xff] %vm664_vm2, %v3387_v53  ;;  %v3815_v37 = vadd.f32 %v3783_v43, %v3632_v34  ;;  %v3358_v1 = vld [vmem:[#allocation2 + $0xf8] sm:$0xff] }
 0x249   : > { %3848 = vst.msk [vmem:[#allocation2 + $0x18] sm:$0xff] %vm664_vm2, %v3816_v51  ;;  %v3390_v44 = vadd.f32 %v6029_v38, %v3358_v1  ;;  %v3357_v2 = vld [vmem:[#allocation2 + $0xf0] sm:$0xff]  ;;  %v6087_v4 = vpop.f32.mrb[114].mxu0 }
 0x24a   : > { %3847 = vst.msk [vmem:[#allocation2 + $0x10] sm:$0xff] %vm664_vm2, %v3815_v37  ;;  %v3389_v36 = vadd.f32 %v3357_v2, %v3318_v31  ;;  %v6040_v48 = vpop.f32.mrb[116].mxu1  ;;  %v4086_v55 = vpop.f32.mrb[115].mxu0  ;;  %v3794_v37 = vld [vmem:[#allocation2 + $0x68] sm:$0xff] }
 0x24b   : > { %3422 = vst.msk [vmem:[#allocation2 + $0xf8] sm:$0xff] %vm664_vm2, %v3390_v44  ;;  %v3818_v59 = vadd.f32 %v6040_v48, %v3786_v50  ;;  %v3642_v57 = vpop.f32.mrb[117].mxu1  ;;  %v3793_v50 = vld [vmem:[#allocation2 + $0x60] sm:$0xff] }
 0x24c   : > { %3421 = vst.msk [vmem:[#allocation2 + $0xf0] sm:$0xff] %vm664_vm2, %v3389_v36  ;;  %v3817_v54 = vadd.f32 %v3785_v52, %v3642_v57  ;;  %v4236_v61 = vld [vmem:[#allocation2 + $0x8] sm:$0xff] }
 0x24d   : > { %3850 = vst.msk [vmem:[#allocation2 + $0x28] sm:$0xff] %vm664_vm2, %v3818_v59  ;;  %v4268_v13 = vadd.f32 %v6084_v41, %v4236_v61  ;;  %v4235_v56 = vld [vmem:[#allocation2] sm:$0xff]  ;;  %v6090_v58 = vpop.f32.mrb[116].mxu0 }
 0x24e   : > { %3849 = vst.msk [vmem:[#allocation2 + $0x20] sm:$0xff] %vm664_vm2, %v3817_v54  ;;  %v4267_v15 = vadd.f32 %v4235_v56, %v4076_v40  ;;  %v6043_v45 = vpop.f32.mrb[118].mxu1  ;;  %v4096_v62 = vpop.f32.mrb[117].mxu0 }
 0x24f   : > { %4300 = vst.msk [vmem:[#allocation2 + $0x8] sm:$0xff] %vm664_vm2, %v4268_v13  ;;  %v3820_v16 = vadd.f32 %v6043_v45, %v3788_v60  ;;  %v3652_v18 = vpop.f32.mrb[119].mxu1 }
 0x250   : > { %4299 = vst.msk [vmem:[#allocation2] sm:$0xff] %vm664_vm2, %v4267_v15  ;;  %v3819_v21 = vadd.f32 %v3787_v8, %v3652_v18  ;;  %v4238_v0 = vld [vmem:[#allocation2 + $0x18] sm:$0xff] }
 0x251   : > { %3852 = vst.msk [vmem:[#allocation2 + $0x38] sm:$0xff] %vm664_vm2, %v3820_v16  ;;  %v4270_v9 = vadd.f32 %v6087_v4, %v4238_v0  ;;  %v4237_v46 = vld [vmem:[#allocation2 + $0x10] sm:$0xff]  ;;  %v6093_v12 = vpop.f32.mrb[118].mxu0 }
 0x252   : > { %3851 = vst.msk [vmem:[#allocation2 + $0x30] sm:$0xff] %vm664_vm2, %v3819_v21  ;;  %v4269_v5 = vadd.f32 %v4237_v46, %v4086_v55  ;;  %v6046_v23 = vpop.f32.mrb[120].mxu1  ;;  %v4106_v14 = vpop.f32.mrb[119].mxu0  ;;  %v3795_v46 = vld [vmem:[#allocation2 + $0x70] sm:$0xff] }
 0x253   : > { %4302 = vst.msk [vmem:[#allocation2 + $0x18] sm:$0xff] %vm664_vm2, %v4270_v9  ;;  %v3822_v17 = vadd.f32 %v6046_v23, %v3790_v25  ;;  %v3662_v7 = vpop.f32.mrb[121].mxu1 }
 0x254   : > { %4301 = vst.msk [vmem:[#allocation2 + $0x10] sm:$0xff] %vm664_vm2, %v4269_v5  ;;  %v3821_v22 = vadd.f32 %v3789_v19, %v3662_v7  ;;  %v4240_v20 = vld [vmem:[#allocation2 + $0x28] sm:$0xff] }
 0x255   : > { %3854 = vst.msk [vmem:[#allocation2 + $0x48] sm:$0xff] %vm664_vm2, %v3822_v17  ;;  %v4272_v26 = vadd.f32 %v6090_v58, %v4240_v20  ;;  %v4239_v27 = vld [vmem:[#allocation2 + $0x20] sm:$0xff]  ;;  %v6096_v29 = vpop.f32.mrb[120].mxu0 }
 0x256   : > { %v4332_v24 = vld [vmem:[#allocation2 + $0x8] sm:$0xff]  ;;  %3853 = vst.msk [vmem:[#allocation2 + $0x40] sm:$0xff] %vm664_vm2, %v3821_v22  ;;  %v4271_v38 = vadd.f32 %v4239_v27, %v4096_v62  ;;  %v6049_v30 = vpop.f32.mrb[122].mxu1  ;;  %v4116_v42 = vpop.f32.mrb[121].mxu0  ;;  %v3796_v62 = vld [vmem:[#allocation2 + $0x78] sm:$0xff] }
 0x257   : > { %v4371_v31 = vmul.f32 %v7965_v47, %v4332_v24  ;;  %v4331_v32 = vld [vmem:[#allocation2] sm:$0xff]  ;;  %4304 = vst.msk [vmem:[#allocation2 + $0x28] sm:$0xff] %vm664_vm2, %v4272_v26  ;;  %v3824_v49 = vadd.f32 %v6049_v30, %v3792_v3  ;;  %v3672_v39 = vpop.f32.mrb[123].mxu1 }
 0x258   : > { %v4370_v10 = vmul.f32 %v7965_v47, %v4331_v32  ;;  %4303 = vst.msk [vmem:[#allocation2 + $0x20] sm:$0xff] %vm664_vm2, %v4271_v38  ;;  %v3823_v11 = vadd.f32 %v3791_v33, %v3672_v39  ;;  %v4242_v6 = vld [vmem:[#allocation2 + $0x38] sm:$0xff]  ;;  %v3797_v32 = vld [vmem:[#allocation2 + $0x80] sm:$0xff] }
 0x259   : > { %v7977_v41 = vadd.f32 %v7969_v28, %v4371_v31  ;;  %3856 = vst.msk [vmem:[#allocation2 + $0x58] sm:$0xff] %vm664_vm2, %v3824_v49  ;;  %v4274_v53 = vadd.f32 %v6093_v12, %v4242_v6  ;;  %v4241_v63 = vld [vmem:[#allocation2 + $0x30] sm:$0xff]  ;;  %v6099_v35 = vpop.f32.mrb[122].mxu0 }
 0x25a   : > { %v7981_v40 = vadd.f32 %v7969_v28, %v4370_v10  ;;  %v4334_v51 = vld [vmem:[#allocation2 + $0x18] sm:$0xff]  ;;  %3855 = vst.msk [vmem:[#allocation2 + $0x50] sm:$0xff] %vm664_vm2, %v3823_v11  ;;  %v4273_v34 = vadd.f32 %v4241_v63, %v4106_v14  ;;  %v6052_v43 = vpop.f32.mrb[124].mxu1  ;;  %v4126_v1 = vpop.f32.mrb[123].mxu0 }
 0x25b   : > { %v5346_v44 = vmul.f32 -1.442695, %v7977_v41  ;;  %v4373_v2 = vmul.f32 %v7965_v47, %v4334_v51  ;;  %v4333_v4 = vld [vmem:[#allocation2 + $0x10] sm:$0xff]  ;;  %4306 = vst.msk [vmem:[#allocation2 + $0x38] sm:$0xff] %vm664_vm2, %v4274_v53  ;;  %v3826_v36 = vadd.f32 %v6052_v43, %v3794_v37  ;;  %v3682_v48 = vpop.f32.mrb[125].mxu1  ;;  %v3800_v37 = vld [vmem:[#allocation2 + $0x98] sm:$0xff] }
 0x25c   : > { %v5345_v55 = vmul.f32 -1.442695, %v7981_v40  ;;  %v4372_v59 = vmul.f32 %v7965_v47, %v4333_v4  ;;  %4305 = vst.msk [vmem:[#allocation2 + $0x30] sm:$0xff] %vm664_vm2, %v4273_v34  ;;  %v3825_v57 = vadd.f32 %v3793_v50, %v3682_v48  ;;  %v4244_v52 = vld [vmem:[#allocation2 + $0x48] sm:$0xff] }
 0x25d   : > { %6234 = vpow2.f32 %v5346_v44  ;;  %v7991_v54 = vadd.f32 %v7969_v28, %v4373_v2  ;;  %3858 = vst.msk [vmem:[#allocation2 + $0x68] sm:$0xff] %vm664_vm2, %v3826_v36  ;;  %v4276_v61 = vadd.f32 %v6096_v29, %v4244_v52  ;;  %v4243_v13 = vld [vmem:[#allocation2 + $0x40] sm:$0xff]  ;;  %v6102_v56 = vpop.f32.mrb[124].mxu0  ;;  %v3798_v29 = vld [vmem:[#allocation2 + $0x88] sm:$0xff] }
 0x25e   : > { %6236 = vpow2.f32 %v5345_v55  ;;  %v7995_v58 = vadd.f32 %v7969_v28, %v4372_v59  ;;  %v4336_v15 = vld [vmem:[#allocation2 + $0x28] sm:$0xff]  ;;  %3857 = vst.msk [vmem:[#allocation2 + $0x60] sm:$0xff] %vm664_vm2, %v3825_v57  ;;  %v4275_v45 = vadd.f32 %v4243_v13, %v4116_v42  ;;  %v6055_v60 = vpop.f32.mrb[126].mxu1  ;;  %v4136_v16 = vpop.f32.mrb[125].mxu0  ;;  %v3799_v55 = vld [vmem:[#allocation2 + $0x90] sm:$0xff] }
 0x25f   : > { %v5348_v18 = vmul.f32 -1.442695, %v7991_v54  ;;  %v4375_v8 = vmul.f32 %v7965_v47, %v4336_v15  ;;  %v4335_v21 = vld [vmem:[#allocation2 + $0x20] sm:$0xff]  ;;  %4308 = vst.msk [vmem:[#allocation2 + $0x48] sm:$0xff] %vm664_vm2, %v4276_v61  ;;  %v3828_v0 = vadd.f32 %v6055_v60, %v3796_v62  ;;  %v3692_v9 = vpop.f32.mrb[127].mxu1 }
 0x260   : > { %v5347_v12 = vmul.f32 -1.442695, %v7995_v58  ;;  %v4374_v5 = vmul.f32 %v7965_v47, %v4335_v21  ;;  %4307 = vst.msk [vmem:[#allocation2 + $0x40] sm:$0xff] %vm664_vm2, %v4275_v45  ;;  %v3827_v23 = vadd.f32 %v3795_v46, %v3692_v9  ;;  %v4246_v25 = vld [vmem:[#allocation2 + $0x58] sm:$0xff]  ;;  %v3802_v9 = vld [vmem:[#allocation2 + $0xa8] sm:$0xff] }
 0x261   : > { %6238 = vpow2.f32 %v5348_v18  ;;  %v8005_v14 = vadd.f32 %v7969_v28, %v4375_v8  ;;  %3860 = vst.msk [vmem:[#allocation2 + $0x78] sm:$0xff] %vm664_vm2, %v3828_v0  ;;  %v4278_v17 = vadd.f32 %v6099_v35, %v4246_v25  ;;  %v4245_v7 = vld [vmem:[#allocation2 + $0x50] sm:$0xff]  ;;  %v6105_v19 = vpop.f32.mrb[126].mxu0 }
 0x262   : > { %6240 = vpow2.f32 %v5347_v12  ;;  %v8009_v22 = vadd.f32 %v7969_v28, %v4374_v5  ;;  %v4338_v20 = vld [vmem:[#allocation2 + $0x38] sm:$0xff]  ;;  %3859 = vst.msk [vmem:[#allocation2 + $0x70] sm:$0xff] %vm664_vm2, %v3827_v23  ;;  %v4277_v26 = vadd.f32 %v4245_v7, %v4126_v1  ;;  %v6058_v27 = vpop.f32.mrb[128].mxu1  ;;  %v4146_v24 = vpop.f32.mrb[127].mxu0 }
 0x263   : > { %v5350_v38 = vmul.f32 -1.442695, %v8005_v14  ;;  %v4377_v30 = vmul.f32 %v7965_v47, %v4338_v20  ;;  %v4337_v3 = vld [vmem:[#allocation2 + $0x30] sm:$0xff]  ;;  %4310 = vst.msk [vmem:[#allocation2 + $0x58] sm:$0xff] %vm664_vm2, %v4278_v17  ;;  %v3830_v42 = vadd.f32 %v6058_v27, %v3798_v29  ;;  %v3702_v31 = vpop.f32.mrb[129].mxu1  ;;  %v3801_v29 = vld [vmem:[#allocation2 + $0xa0] sm:$0xff] }
 0x264   : > { %v5349_v49 = vmul.f32 -1.442695, %v8009_v22  ;;  %v4376_v39 = vmul.f32 %v7965_v47, %v4337_v3  ;;  %4309 = vst.msk [vmem:[#allocation2 + $0x50] sm:$0xff] %vm664_vm2, %v4277_v26  ;;  %v3829_v33 = vadd.f32 %v3797_v32, %v3702_v31  ;;  %v4248_v10 = vld [vmem:[#allocation2 + $0x68] sm:$0xff] }
 0x265   : > { %6242 = vpow2.f32 %v5350_v38  ;;  %v8019_v11 = vadd.f32 %v7969_v28, %v4377_v30  ;;  %3862 = vst.msk [vmem:[#allocation2 + $0x88] sm:$0xff] %vm664_vm2, %v3830_v42  ;;  %v4280_v6 = vadd.f32 %v6102_v56, %v4248_v10  ;;  %v4247_v53 = vld [vmem:[#allocation2 + $0x60] sm:$0xff]  ;;  %v8022_v63 = vpop.f32.mrb[128].mxu0 }
 0x266   : > { %6244 = vpow2.f32 %v5349_v49  ;;  %v8025_v35 = vadd.f32 %v7969_v28, %v4376_v39  ;;  %v4340_v51 = vld [vmem:[#allocation2 + $0x48] sm:$0xff]  ;;  %3861 = vst.msk [vmem:[#allocation2 + $0x80] sm:$0xff] %vm664_vm2, %v3829_v33  ;;  %v4279_v34 = vadd.f32 %v4247_v53, %v4136_v16  ;;  %v6061_v43 = vpop.f32.mrb[130].mxu1  ;;  %v4156_v1 = vpop.f32.mrb[129].mxu0 }
 0x267   : > { %v6235_v44 = vpop.eup %6234  ;;  %v5352_v2 = vmul.f32 -1.442695, %v8019_v11  ;;  %v4379_v4 = vmul.f32 %v7965_v47, %v4340_v51  ;;  %v4339_v36 = vld [vmem:[#allocation2 + $0x40] sm:$0xff]  ;;  %4312 = vst.msk [vmem:[#allocation2 + $0x68] sm:$0xff] %vm664_vm2, %v4280_v6  ;;  %v3832_v48 = vadd.f32 %v6061_v43, %v3800_v37  ;;  %v3712_v50 = vpop.f32.mrb[131].mxu1  ;;  %v3804_v6 = vld [vmem:[#allocation2 + $0xb8] sm:$0xff] }
 0x268   : > { %v6237_v59 = vpop.eup %6236  ;;  %v4538_v57 = vadd.f32 1.0, %v6235_v44  ;;  %v5351_v52 = vmul.f32 -1.442695, %v8025_v35  ;;  %v4378_v61 = vmul.f32 %v7965_v47, %v4339_v36  ;;  %4311 = vst.msk [vmem:[#allocation2 + $0x60] sm:$0xff] %vm664_vm2, %v4279_v34  ;;  %v3831_v13 = vadd.f32 %v3799_v55, %v3712_v50  ;;  %v4250_v56 = vld [vmem:[#allocation2 + $0x78] sm:$0xff] }
 0x269   : > { %v4537_v15 = vadd.f32 1.0, %v6237_v59  ;;  %6246 = vpow2.f32 %v5352_v2  ;;  %v8035_v45 = vadd.f32 %v7969_v28, %v4379_v4  ;;  %3864 = vst.msk [vmem:[#allocation2 + $0x98] sm:$0xff] %vm664_vm2, %v3832_v48  ;;  %v4282_v60 = vadd.f32 %v6105_v19, %v4250_v56  ;;  %v4249_v62 = vld [vmem:[#allocation2 + $0x70] sm:$0xff]  ;;  %v8038_v16 = vpop.f32.mrb[130].mxu0 }
 0x26a   : > { %6248 = vrcp.f32 %v4538_v57  ;;  %v8041_v18 = vadd.f32 %v7969_v28, %v4378_v61  ;;  %v4342_v8 = vld [vmem:[#allocation2 + $0x58] sm:$0xff]  ;;  %3863 = vst.msk [vmem:[#allocation2 + $0x90] sm:$0xff] %vm664_vm2, %v3831_v13  ;;  %v4281_v21 = vadd.f32 %v4249_v62, %v4146_v24  ;;  %v6064_v0 = vpop.f32.mrb[132].mxu1  ;;  %v4166_v46 = vpop.f32.mrb[131].mxu0  ;;  %v3803_v48 = vld [vmem:[#allocation2 + $0xb0] sm:$0xff] }
 0x26b   : > { %v6239_v12 = vpop.eup %6238  ;;  %6250 = vrcp.f32 %v4537_v15  ;;  %v5354_v5 = vmul.f32 -1.442695, %v8035_v45  ;;  %v4381_v23 = vmul.f32 %v7965_v47, %v4342_v8  ;;  %v4341_v25 = vld [vmem:[#allocation2 + $0x50] sm:$0xff]  ;;  %4314 = vst.msk [vmem:[#allocation2 + $0x78] sm:$0xff] %vm664_vm2, %v4282_v60  ;;  %v3834_v17 = vadd.f32 %v6064_v0, %v3802_v9  ;;  %v3722_v7 = vpop.f32.mrb[133].mxu1  ;;  %v3806_v8 = vld [vmem:[#allocation2 + $0xc8] sm:$0xff] }
 0x26c   : > { %v6241_v19 = vpop.eup %6240  ;;  %v4540_v20 = vadd.f32 1.0, %v6239_v12  ;;  %6252 = vpow2.f32 %v5351_v52  ;;  %v5353_v26 = vmul.f32 -1.442695, %v8041_v18  ;;  %v4380_v27 = vmul.f32 %v7965_v47, %v4341_v25  ;;  %4313 = vst.msk [vmem:[#allocation2 + $0x70] sm:$0xff] %vm664_vm2, %v4281_v21  ;;  %v4252_v24 = vld [vmem:[#allocation2 + $0x88] sm:$0xff] }
 0x26d   : > { %v4539_v38 = vadd.f32 1.0, %v6241_v19  ;;  %6254 = vpow2.f32 %v5354_v5  ;;  %v8051_v30 = vadd.f32 %v7969_v28, %v4381_v23  ;;  %3866 = vst.msk [vmem:[#allocation2 + $0xa8] sm:$0xff] %vm664_vm2, %v3834_v17  ;;  %v3833_v3 = vadd.f32 %v3801_v29, %v3722_v7  ;;  %v4251_v42 = vld [vmem:[#allocation2 + $0x80] sm:$0xff]  ;;  %v8054_v31 = vpop.f32.mrb[132].mxu0 }
 0x26e   : > { %6256 = vrcp.f32 %v4540_v20  ;;  %v8057_v32 = vadd.f32 %v7969_v28, %v4380_v27  ;;  %v4344_v49 = vld [vmem:[#allocation2 + $0x68] sm:$0xff]  ;;  %v4284_v39 = vadd.f32 %v8022_v63, %v4252_v24  ;;  %v4283_v33 = vadd.f32 %v4251_v42, %v4156_v1  ;;  %v6067_v10 = vpop.f32.mrb[134].mxu1  ;;  %v8060_v53 = vpop.f32.mrb[133].mxu0  ;;  %v3805_v19 = vld [vmem:[#allocation2 + $0xc0] sm:$0xff] }
 0x26f   : > { %v6243_v51 = vpop.eup %6242  ;;  %6258 = vrcp.f32 %v4539_v38  ;;  %v5356_v34 = vmul.f32 -1.442695, %v8051_v30  ;;  %v4383_v43 = vmul.f32 %v7965_v47, %v4344_v49  ;;  %v4343_v37 = vld [vmem:[#allocation2 + $0x60] sm:$0xff]  ;;  %3865 = vst.msk [vmem:[#allocation2 + $0xa0] sm:$0xff] %vm664_vm2, %v3833_v3  ;;  %v3836_v44 = vadd.f32 %v6067_v10, %v3804_v6  ;;  %v3732_v2 = vpop.f32.mrb[135].mxu1 }
 0x270   : > { %v6245_v4 = vpop.eup %6244  ;;  %v4542_v36 = vadd.f32 1.0, %v6243_v51  ;;  %6260 = vpow2.f32 %v5353_v26  ;;  %v5355_v63 = vmul.f32 -1.442695, %v8057_v32  ;;  %v4382_v1 = vmul.f32 %v7965_v47, %v4343_v37  ;;  %4316 = vst.msk [vmem:[#allocation2 + $0x88] sm:$0xff] %vm664_vm2, %v4284_v39  ;;  %4315 = vst.msk [vmem:[#allocation2 + $0x80] sm:$0xff] %vm664_vm2, %v4283_v33  ;;  %v4254_v50 = vld [vmem:[#allocation2 + $0x98] sm:$0xff] }
 0x271   : > { %v4541_v55 = vadd.f32 1.0, %v6245_v4  ;;  %6262 = vpow2.f32 %v5356_v34  ;;  %v8071_v59 = vadd.f32 %v7969_v28, %v4383_v43  ;;  %3868 = vst.msk [vmem:[#allocation2 + $0xb8] sm:$0xff] %vm664_vm2, %v3836_v44  ;;  %v3835_v57 = vadd.f32 %v3803_v48, %v3732_v2  ;;  %v4253_v52 = vld [vmem:[#allocation2 + $0x90] sm:$0xff]  ;;  %v8074_v61 = vpop.f32.mrb[134].mxu0 }
 0x272   : > { %6264 = vrcp.f32 %v4542_v36  ;;  %v8077_v13 = vadd.f32 %v7969_v28, %v4382_v1  ;;  %v4346_v56 = vld [vmem:[#allocation2 + $0x78] sm:$0xff]  ;;  %v4286_v15 = vadd.f32 %v8038_v16, %v4254_v50  ;;  %v4285_v60 = vadd.f32 %v4253_v52, %v4166_v46  ;;  %v6070_v62 = vpop.f32.mrb[136].mxu1  ;;  %v8080_v21 = vpop.f32.mrb[135].mxu0  ;;  %v3807_v48 = vld [vmem:[#allocation2 + $0xd0] sm:$0xff] }
 0x273   : > { %v6247_v0 = vpop.eup %6246  ;;  %6266 = vrcp.f32 %v4541_v55  ;;  %v5358_v9 = vmul.f32 -1.442695, %v8071_v59  ;;  %v4385_v12 = vmul.f32 %v7965_v47, %v4346_v56  ;;  %v4345_v5 = vld [vmem:[#allocation2 + $0x70] sm:$0xff]  ;;  %3867 = vst.msk [vmem:[#allocation2 + $0xb0] sm:$0xff] %vm664_vm2, %v3835_v57  ;;  %v3838_v23 = vadd.f32 %v6070_v62, %v3806_v8  ;;  %v3742_v25 = vpop.f32.mrb[137].mxu1  ;;  %v3808_v1 = vld [vmem:[#allocation2 + $0xd8] sm:$0xff] }
 0x274   : > { %v6249_v17 = vpop.eup %6248  ;;  %v4544_v7 = vadd.f32 1.0, %v6247_v0  ;;  %6268 = vpow2.f32 %v5355_v63  ;;  %v5357_v16 = vmul.f32 -1.442695, %v8077_v13  ;;  %v4384_v46 = vmul.f32 %v7965_v47, %v4345_v5  ;;  %4318 = vst.msk [vmem:[#allocation2 + $0x98] sm:$0xff] %vm664_vm2, %v4286_v15  ;;  %4317 = vst.msk [vmem:[#allocation2 + $0x90] sm:$0xff] %vm664_vm2, %v4285_v60  ;;  %v4256_v20 = vld [vmem:[#allocation2 + $0xa8] sm:$0xff] }
 0x275   : > { %v6251_v26 = vpop.eup %6250  ;;  %v4634_v27 = vmul.f32 %v6249_v17, %v7977_v41  ;;  %6270 = vpow2.f32 %v5358_v9  ;;  %v8091_v29 = vadd.f32 %v7969_v28, %v4385_v12  ;;  %3870 = vst.msk [vmem:[#allocation2 + $0xc8] sm:$0xff] %vm664_vm2, %v3838_v23  ;;  %v3837_v24 = vadd.f32 %v3805_v19, %v3742_v25  ;;  %v8094_v38 = vpop.f32.mrb[136].mxu0 }
 0x276   : > { %v6253_v3 = vpop.eup %6252  ;;  %v4633_v42 = vmul.f32 %v6251_v26, %v7981_v40  ;;  %6272 = vrcp.f32 %v4544_v7  ;;  %v8098_v49 = vadd.f32 %v7969_v28, %v4384_v46  ;;  %v4288_v39 = vadd.f32 %v8054_v31, %v4256_v20  ;;  %v4255_v33 = vld [vmem:[#allocation2 + $0xa0] sm:$0xff]  ;;  %v6073_v41 = vpop.f32.mrb[138].mxu1 }
 0x277   : > { %v8101_v10 = vpop.f32.mrb[137].mxu0  ;;  %v6255_v6 = vpop.eup %6254  ;;  %4666 = vst.msk [vmem:[%s8105_s25 + $0x8] sm:$0xff] %vm664_vm2, %v4634_v27  ;;  %v4543_v51 = vadd.f32 1.0, %v6253_v3  ;;  %6274 = vpow2.f32 %v5357_v16  ;;  %v5360_v40 = vmul.f32 -1.442695, %v8091_v29  ;;  %v4348_v34 = vld [vmem:[#allocation2 + $0x88] sm:$0xff]  ;;  %v4287_v31 = vadd.f32 %v4255_v33, %v8060_v53 }
 0x278   : > { %v4347_v43 = vld [vmem:[#allocation2 + $0x80] sm:$0xff]  ;;  %3869 = vst.msk [vmem:[#allocation2 + $0xc0] sm:$0xff] %vm664_vm2, %v3837_v24  ;;  %v3752_v37 = vpop.f32.mrb[139].mxu1  ;;  %v6257_v44 = vpop.eup %6256  ;;  %4665 = vst.msk [vmem:[%s8105_s25] sm:$0xff] %vm664_vm2, %v4633_v42  ;;  %v4546_v2 = vadd.f32 1.0, %v6255_v6  ;;  %v4387_v36 = vmul.f32 %v7965_v47, %v4348_v34  ;;  %v4258_v50 = vld [vmem:[#allocation2 + $0xb8] sm:$0xff]  ;;  %v3840_v57 = vadd.f32 %v6073_v41, %v3808_v1 }
 0x279   : > { %v5359_v4 = vmul.f32 -1.442695, %v8098_v49  ;;  %v4386_v63 = vmul.f32 %v7965_v47, %v4347_v43  ;;  %4320 = vst.msk [vmem:[#allocation2 + $0xa8] sm:$0xff] %vm664_vm2, %v4288_v39  ;;  %v6259_v55 = vpop.eup %6258  ;;  %v4636_v53 = vmul.f32 %v6257_v44, %v7991_v54  ;;  %6276 = vrcp.f32 %v4543_v51  ;;  %4319 = vst.msk [vmem:[#allocation2 + $0xa0] sm:$0xff] %vm664_vm2, %v4287_v31  ;;  %v8120_v56 = vpop.f32.mrb[138].mxu0  ;;  %v3809_v3 = vld [vmem:[#allocation2 + $0xe0] sm:$0xff] }
 0x27a   : > { %v3839_v52 = vadd.f32 %v3807_v48, %v3752_v37  ;;  %v6261_v15 = vpop.eup %6260  ;;  %v4635_v60 = vmul.f32 %v6259_v55, %v7995_v58  ;;  %6278 = vrcp.f32 %v4546_v2  ;;  %v8124_v62 = vadd.f32 %v7969_v28, %v4387_v36  ;;  %v4257_v0 = vld [vmem:[#allocation2 + $0xb0] sm:$0xff]  ;;  %v6076_v54 = vpop.f32.mrb[140].mxu1  ;;  %3872 = vst.msk [vmem:[#allocation2 + $0xd8] sm:$0xff] %vm664_vm2, %v3840_v57 }
 0x27b   : > { %v8127_v8 = vadd.f32 %v7969_v28, %v4386_v63  ;;  %v8129_v9 = vpop.f32.mrb[139].mxu0  ;;  %v6263_v12 = vpop.eup %6262  ;;  %4668 = vst.msk [vmem:[%s8105_s25 + $0x18] sm:$0xff] %vm664_vm2, %v4636_v53  ;;  %v4545_v5 = vadd.f32 1.0, %v6261_v15  ;;  %6280 = vpow2.f32 %v5360_v40  ;;  %v4350_v23 = vld [vmem:[#allocation2 + $0x98] sm:$0xff]  ;;  %v4349_v25 = vld [vmem:[#allocation2 + $0x90] sm:$0xff]  ;;  %v4290_v58 = vadd.f32 %v8074_v61, %v4258_v50 }
 0x27c   : > { %3871 = vst.msk [vmem:[#allocation2 + $0xd0] sm:$0xff] %vm664_vm2, %v3839_v52  ;;  %v4289_v17 = vadd.f32 %v4257_v0, %v8080_v21  ;;  %v3762_v7 = vpop.f32.mrb[141].mxu1  ;;  %v6265_v16 = vpop.eup %6264  ;;  %4667 = vst.msk [vmem:[%s8105_s25 + $0x10] sm:$0xff] %vm664_vm2, %v4635_v60  ;;  %v4548_v46 = vadd.f32 1.0, %v6263_v12  ;;  %6282 = vpow2.f32 %v5359_v4  ;;  %v5362_v19 = vmul.f32 -1.442695, %v8124_v62 }
 0x27d   : > { %v5361_v20 = vmul.f32 -1.442695, %v8127_v8  ;;  %v6267_v26 = vpop.eup %6266  ;;  %v4638_v27 = vmul.f32 %v6265_v16, %v8005_v14  ;;  %6284 = vrcp.f32 %v4545_v5  ;;  %v4389_v24 = vmul.f32 %v7965_v47, %v4350_v23  ;;  %4322 = vst.msk [vmem:[#allocation2 + $0xb8] sm:$0xff] %vm664_vm2, %v4290_v58  ;;  %v3810_v21 = vld [vmem:[#allocation2 + $0xe8] sm:$0xff]  ;;  %v8146_v39 = vpop.f32.mrb[140].mxu0 }
 0x27e   : > { %v4388_v61 = vmul.f32 %v7965_v47, %v4349_v25  ;;  %4321 = vst.msk [vmem:[#allocation2 + $0xb0] sm:$0xff] %vm664_vm2, %v4289_v17  ;;  %v4260_v42 = vld [vmem:[#allocation2 + $0xc8] sm:$0xff]  ;;  %v6269_v33 = vpop.eup %6268  ;;  %v4637_v41 = vmul.f32 %v6267_v26, %v8009_v22  ;;  %6286 = vrcp.f32 %v4548_v46  ;;  %v3842_v14 = vadd.f32 %v6076_v54, %v3810_v21  ;;  %v6079_v51 = vpop.f32.mrb[142].mxu1  ;;  %v3811_v54 = vld [vmem:[#allocation2 + $0xf0] sm:$0xff] }
 0x27f   : > { %v3841_v6 = vadd.f32 %v3809_v3, %v3762_v7  ;;  %v8149_v40 = vpop.f32.mrb[141].mxu0  ;;  %v6271_v34 = vpop.eup %6270  ;;  %4670 = vst.msk [vmem:[%s8105_s25 + $0x28] sm:$0xff] %vm664_vm2, %v4638_v27  ;;  %v4547_v43 = vadd.f32 1.0, %v6269_v33  ;;  %6288 = vpow2.f32 %v5362_v19  ;;  %v8154_v31 = vadd.f32 %v7969_v28, %v4389_v24  ;;  %v4259_v48 = vld [vmem:[#allocation2 + $0xc0] sm:$0xff] }
 0x280   : > { %v8157_v37 = vadd.f32 %v7969_v28, %v4388_v61  ;;  %v4352_v44 = vld [vmem:[#allocation2 + $0xa8] sm:$0xff]  ;;  %v3772_v2 = vpop.f32.mrb[143].mxu1  ;;  %v6273_v22 = vpop.eup %6272  ;;  %4669 = vst.msk [vmem:[%s8105_s25 + $0x20] sm:$0xff] %vm664_vm2, %v4637_v41  ;;  %v4550_v4 = vadd.f32 1.0, %v6271_v34  ;;  %6290 = vpow2.f32 %v5361_v20  ;;  %v4351_v63 = vld [vmem:[#allocation2 + $0xa0] sm:$0xff]  ;;  %3874 = vst.msk [vmem:[#allocation2 + $0xe8] sm:$0xff] %vm664_vm2, %v3842_v14  ;;  %v4292_v1 = vadd.f32 %v8094_v38, %v4260_v42 }
 0x281   : > { %v4391_v36 = vmul.f32 %v7965_v47, %v4352_v44  ;;  %3873 = vst.msk [vmem:[#allocation2 + $0xe0] sm:$0xff] %vm664_vm2, %v3841_v6  ;;  %v6275_v50 = vpop.eup %6274  ;;  %v4640_v55 = vmul.f32 %v6273_v22, %v8019_v11  ;;  %6292 = vrcp.f32 %v4547_v43  ;;  %v5364_v53 = vmul.f32 -1.442695, %v8154_v31  ;;  %v8168_v52 = vpop.f32.mrb[142].mxu0  ;;  %v3812_v38 = vld [vmem:[#allocation2 + $0xf8] sm:$0xff] }
 0x282   : > { %v5363_v57 = vmul.f32 -1.442695, %v8157_v37  ;;  %6294 = vrcp.f32 %v4550_v4  ;;  %v4549_v15 = vadd.f32 1.0, %v6275_v50  ;;  %v4390_v0 = vmul.f32 %v7965_v47, %v4351_v63  ;;  %4324 = vst.msk [vmem:[#allocation2 + $0xc8] sm:$0xff] %vm664_vm2, %v4292_v1  ;;  %v8175_v12 = vpop.f32.mrb[143].mxu0  ;;  %v4262_v58 = vld [vmem:[#allocation2 + $0xd8] sm:$0xff] }
 0x283   : > { %v8171_v60 = vadd.f32 %v7969_v28, %v4391_v36  ;;  %v6277_v11 = vpop.eup %6276  ;;  %4672 = vst.msk [vmem:[%s8105_s25 + $0x38] sm:$0xff] %vm664_vm2, %v4640_v55  ;;  %6296 = vpow2.f32 %v5364_v53  ;;  %v4291_v5 = vadd.f32 %v4259_v48, %v8101_v10  ;;  %v3844_v23 = vadd.f32 %v6079_v51, %v3812_v38  ;;  %v4261_v26 = vld [vmem:[#allocation2 + $0xd0] sm:$0xff] }
 0x284   : > { %v3843_v25 = vadd.f32 %v3811_v54, %v3772_v2  ;;  %v6279_v17 = vpop.eup %6278  ;;  %v4639_v7 = vmul.f32 %v6277_v11, %v8025_v35  ;;  %6298 = vrcp.f32 %v4549_v15  ;;  %v8183_v46 = vadd.f32 %v7969_v28, %v4390_v0  ;;  %v4354_v19 = vld [vmem:[#allocation2 + $0xb8] sm:$0xff] }
 0x285   : > { %v5366_v16 = vmul.f32 -1.442695, %v8171_v60  ;;  %v4353_v20 = vld [vmem:[#allocation2 + $0xb0] sm:$0xff]  ;;  %v6281_v27 = vpop.eup %6280  ;;  %v4642_v10 = vmul.f32 %v6279_v17, %v8035_v45  ;;  %6300 = vpow2.f32 %v5363_v57  ;;  %v4393_v24 = vmul.f32 %v7965_v47, %v4354_v19  ;;  %4323 = vst.msk [vmem:[#allocation2 + $0xc0] sm:$0xff] %vm664_vm2, %v4291_v5  ;;  %3876 = vst.msk [vmem:[#allocation2 + $0xf8] sm:$0xff] %vm664_vm2, %v3844_v23 }
 0x286   : > { %v4392_v61 = vmul.f32 %v7965_v47, %v4353_v20  ;;  %3875 = vst.msk [vmem:[#allocation2 + $0xf0] sm:$0xff] %vm664_vm2, %v3843_v25  ;;  %v6283_v35 = vpop.eup %6282  ;;  %4671 = vst.msk [vmem:[%s8105_s25 + $0x30] sm:$0xff] %vm664_vm2, %v4639_v7  ;;  %v4552_v21 = vadd.f32 1.0, %v6281_v27  ;;  %v5365_v3 = vmul.f32 -1.442695, %v8183_v46  ;;  %v4294_v45 = vadd.f32 %v8120_v56, %v4262_v58 }
 0x287   : > { %6302 = vpow2.f32 %v5366_v16  ;;  %v6285_v42 = vpop.eup %6284  ;;  %4674 = vst.msk [vmem:[%s8105_s25 + $0x48] sm:$0xff] %vm664_vm2, %v4642_v10  ;;  %v4551_v33 = vadd.f32 1.0, %v6283_v35  ;;  %v8198_v41 = vadd.f32 %v7969_v28, %v4393_v24  ;;  %v4293_v6 = vadd.f32 %v4261_v26, %v8129_v9  ;;  %v4264_v51 = vld [vmem:[#allocation2 + $0xe8] sm:$0xff] }
 0x288   : > { %v8201_v14 = vadd.f32 %v7969_v28, %v4392_v61  ;;  %v4263_v34 = vld [vmem:[#allocation2 + $0xe0] sm:$0xff]  ;;  %v6287_v43 = vpop.eup %6286  ;;  %v4641_v44 = vmul.f32 %v6285_v42, %v8041_v18  ;;  %6304 = vrcp.f32 %v4552_v21  ;;  %4326 = vst.msk [vmem:[#allocation2 + $0xd8] sm:$0xff] %vm664_vm2, %v4294_v45  ;;  %v4296_v56 = vadd.f32 %v8146_v39, %v4264_v51 }
 0x289   : > { %v4295_v2 = vadd.f32 %v4263_v34, %v8149_v40  ;;  %v6289_v22 = vpop.eup %6288  ;;  %v4644_v4 = vmul.f32 %v6287_v43, %v8051_v30  ;;  %6306 = vrcp.f32 %v4551_v33  ;;  %v5368_v9 = vmul.f32 -1.442695, %v8198_v41  ;;  %v4356_v36 = vld [vmem:[#allocation2 + $0xc8] sm:$0xff]  ;;  %4325 = vst.msk [vmem:[#allocation2 + $0xd0] sm:$0xff] %vm664_vm2, %v4293_v6 }
 0x28a   : > { %v6291_v63 = vpop.eup %6290  ;;  %4673 = vst.msk [vmem:[%s8105_s25 + $0x40] sm:$0xff] %vm664_vm2, %v4641_v44  ;;  %v4554_v18 = vadd.f32 1.0, %v6289_v22  ;;  %6308 = vpow2.f32 %v5365_v3  ;;  %v5367_v1 = vmul.f32 -1.442695, %v8201_v14  ;;  %v4395_v39 = vmul.f32 %v7965_v47, %v4356_v36  ;;  %4328 = vst.msk [vmem:[#allocation2 + $0xe8] sm:$0xff] %vm664_vm2, %v4296_v56 }
 0x28b   : > { %4327 = vst.msk [vmem:[#allocation2 + $0xe0] sm:$0xff] %vm664_vm2, %v4295_v2  ;;  %v6293_v30 = vpop.eup %6292  ;;  %4676 = vst.msk [vmem:[%s8105_s25 + $0x58] sm:$0xff] %vm664_vm2, %v4644_v4  ;;  %v4553_v40 = vadd.f32 1.0, %v6291_v63  ;;  %6310 = vpow2.f32 %v5368_v9 }
 0x28c   : > { %v6295_v48 = vpop.eup %6294  ;;  %v4643_v50 = vmul.f32 %v6293_v30, %v8057_v32  ;;  %6312 = vrcp.f32 %v4554_v18  ;;  %v8221_v55 = vadd.f32 %v7969_v28, %v4395_v39  ;;  %v4355_v53 = vld [vmem:[#allocation2 + $0xc0] sm:$0xff]  ;;  %v4266_v57 = vld [vmem:[#allocation2 + $0xf8] sm:$0xff] }
 0x28d   : > { %v4265_v15 = vld [vmem:[#allocation2 + $0xf0] sm:$0xff]  ;;  %v6297_v0 = vpop.eup %6296  ;;  %v4646_v38 = vmul.f32 %v6295_v48, %v8071_v59  ;;  %6314 = vrcp.f32 %v4553_v40  ;;  %v4394_v54 = vmul.f32 %v7965_v47, %v4355_v53  ;;  %v4298_v11 = vadd.f32 %v8168_v52, %v4266_v57 }
 0x28e   : > { %v6299_v5 = vpop.eup %6298  ;;  %4675 = vst.msk [vmem:[%s8105_s25 + $0x50] sm:$0xff] %vm664_vm2, %v4643_v50  ;;  %v4556_v32 = vadd.f32 1.0, %v6297_v0  ;;  %6316 = vpow2.f32 %v5367_v1  ;;  %v5370_v23 = vmul.f32 -1.442695, %v8221_v55  ;;  %v4297_v25 = vadd.f32 %v4265_v15, %v8175_v12 }
 0x28f   : > { %v6301_v58 = vpop.eup %6300  ;;  %4678 = vst.msk [vmem:[%s8105_s25 + $0x68] sm:$0xff] %vm664_vm2, %v4646_v38  ;;  %v4645_v59 = vmul.f32 %v6299_v5, %v8077_v13  ;;  %v8234_v17 = vadd.f32 %v7969_v28, %v4394_v54  ;;  %v4358_v7 = vld [vmem:[#allocation2 + $0xd8] sm:$0xff]  ;;  %4330 = vst.msk [vmem:[#allocation2 + $0xf8] sm:$0xff] %vm664_vm2, %v4298_v11 }
 0x290   : > { %6318 = vrcp.f32 %v4556_v32  ;;  %v4555_v16 = vadd.f32 1.0, %v6301_v58  ;;  %v4397_v19 = vmul.f32 %v7965_v47, %v4358_v7  ;;  %v4357_v20 = vld [vmem:[#allocation2 + $0xd0] sm:$0xff]  ;;  %4329 = vst.msk [vmem:[#allocation2 + $0xf0] sm:$0xff] %vm664_vm2, %v4297_v25 }
 0x291   : > { %v6303_v52 = vpop.eup %6302  ;;  %4677 = vst.msk [vmem:[%s8105_s25 + $0x60] sm:$0xff] %vm664_vm2, %v4645_v59  ;;  %6320 = vpow2.f32 %v5370_v23  ;;  %v5369_v13 = vmul.f32 -1.442695, %v8234_v17  ;;  %v4396_v26 = vmul.f32 %v7965_v47, %v4357_v20  ;;  %v4360_v27 = vld [vmem:[#allocation2 + $0xe8] sm:$0xff] }
 0x292   : > { %v4558_v12 = vadd.f32 1.0, %v6303_v52  ;;  %v4359_v10 = vld [vmem:[#allocation2 + $0xe0] sm:$0xff]  ;;  %v6305_v24 = vpop.eup %6304  ;;  %6322 = vrcp.f32 %v4555_v16  ;;  %v8244_v61 = vadd.f32 %v7969_v28, %v4397_v19  ;;  %v4399_v35 = vmul.f32 %v7965_v47, %v4360_v27 }
 0x293   : > { %v4398_v21 = vmul.f32 %v7965_v47, %v4359_v10  ;;  %v6307_v3 = vpop.eup %6306  ;;  %v4648_v45 = vmul.f32 %v6305_v24, %v8091_v29  ;;  %v8250_v42 = vadd.f32 %v7969_v28, %v4396_v26 }
 0x294   : > { %6324 = vrcp.f32 %v4558_v12  ;;  %v6309_v33 = vpop.eup %6308  ;;  %v4647_v6 = vmul.f32 %v6307_v3, %v8098_v49  ;;  %v5372_v51 = vmul.f32 -1.442695, %v8244_v61  ;;  %v8255_v34 = vadd.f32 %v7969_v28, %v4399_v35 }
 0x295   : > { %6326 = vpow2.f32 %v5369_v13  ;;  %v6311_v43 = vpop.eup %6310  ;;  %4680 = vst.msk [vmem:[%s8105_s25 + $0x78] sm:$0xff] %vm664_vm2, %v4648_v45  ;;  %v4557_v44 = vadd.f32 1.0, %v6309_v33  ;;  %v5371_v56 = vmul.f32 -1.442695, %v8250_v42  ;;  %v8261_v29 = vadd.f32 %v7969_v28, %v4398_v21 }
 0x296   : > { %v6313_v2 = vpop.eup %6312  ;;  %4679 = vst.msk [vmem:[%s8105_s25 + $0x70] sm:$0xff] %vm664_vm2, %v4647_v6  ;;  %v4560_v49 = vadd.f32 1.0, %v6311_v43  ;;  %6328 = vpow2.f32 %v5372_v51  ;;  %v5374_v22 = vmul.f32 -1.442695, %v8255_v34  ;;  %v4362_v4 = vld [vmem:[#allocation2 + $0xf8] sm:$0xff] }
 0x297   : > { %v6315_v9 = vpop.eup %6314  ;;  %v4650_v36 = vmul.f32 %v6313_v2, %v8124_v62  ;;  %6330 = vrcp.f32 %v4557_v44  ;;  %v4401_v63 = vmul.f32 %v7965_v47, %v4362_v4  ;;  %v4361_v18 = vld [vmem:[#allocation2 + $0xf0] sm:$0xff]  ;;  %v5373_v30 = vmul.f32 -1.442695, %v8261_v29 }
 0x298   : > { %v6317_v1 = vpop.eup %6316  ;;  %v4649_v39 = vmul.f32 %v6315_v9, %v8127_v8  ;;  %6332 = vrcp.f32 %v4560_v49  ;;  %v4400_v40 = vmul.f32 %v7965_v47, %v4361_v18 }
 0x299   : > { %4682 = vst.msk [vmem:[%s8105_s25 + $0x88] sm:$0xff] %vm664_vm2, %v4650_v36  ;;  %v4559_v48 = vadd.f32 1.0, %v6317_v1  ;;  %6334 = vpow2.f32 %v5371_v56  ;;  %v8274_v50 = vadd.f32 %v7969_v28, %v4401_v63 }
 0x29a   : > { %v6319_v62 = vpop.eup %6318  ;;  %4681 = vst.msk [vmem:[%s8105_s25 + $0x80] sm:$0xff] %vm664_vm2, %v4649_v39  ;;  %6336 = vpow2.f32 %v5374_v22  ;;  %v8279_v53 = vadd.f32 %v7969_v28, %v4400_v40 }
 0x29b   : > { %v6321_v8 = vpop.eup %6320  ;;  %v4652_v57 = vmul.f32 %v6319_v62, %v8154_v31  ;;  %6338 = vrcp.f32 %v4559_v48  ;;  %v5376_v47 = vmul.f32 -1.442695, %v8274_v50 }
 0x29c   : > { %v6323_v15 = vpop.eup %6322  ;;  %v4562_v0 = vadd.f32 1.0, %v6321_v8  ;;  %6340 = vpow2.f32 %v5373_v30  ;;  %v5375_v38 = vmul.f32 -1.442695, %v8279_v53 }
 0x29d   : > { %4684 = vst.msk [vmem:[%s8105_s25 + $0x98] sm:$0xff] %vm664_vm2, %v4652_v57  ;;  %v4651_v11 = vmul.f32 %v6323_v15, %v8157_v37  ;;  %6342 = vpow2.f32 %v5376_v47 }
 0x29e   : > { %v6325_v54 = vpop.eup %6324  ;;  %6344 = vrcp.f32 %v4562_v0 }
 0x29f   : > { %v6327_v28 = vpop.eup %6326  ;;  %v4654_v5 = vmul.f32 %v6325_v54, %v8171_v60  ;;  %4683 = vst.msk [vmem:[%s8105_s25 + $0x90] sm:$0xff] %vm664_vm2, %v4651_v11  ;;  %6346 = vpow2.f32 %v5375_v38 }
 0x2a0   : > { %v4561_v31 = vadd.f32 1.0, %v6327_v28  ;;  %v6329_v32 = vpop.eup %6328 }
 0x2a1   : > { %4686 = vst.msk [vmem:[%s8105_s25 + $0xa8] sm:$0xff] %vm664_vm2, %v4654_v5  ;;  %v6331_v23 = vpop.eup %6330  ;;  %v4564_v25 = vadd.f32 1.0, %v6329_v32 }
 0x2a2   : > { %6348 = vrcp.f32 %v4561_v31  ;;  %v6333_v58 = vpop.eup %6332  ;;  %v4653_v37 = vmul.f32 %v6331_v23, %v8183_v46 }
 0x2a3   : > { %v6335_v59 = vpop.eup %6334  ;;  %v4656_v60 = vmul.f32 %v6333_v58, %v8198_v41  ;;  %6350 = vrcp.f32 %v4564_v25 }
 0x2a4   : > { %v6337_v7 = vpop.eup %6336  ;;  %4685 = vst.msk [vmem:[%s8105_s25 + $0xa0] sm:$0xff] %vm664_vm2, %v4653_v37  ;;  %v4563_v52 = vadd.f32 1.0, %v6335_v59 }
 0x2a5   : > { %v6339_v16 = vpop.eup %6338  ;;  %4688 = vst.msk [vmem:[%s8105_s25 + $0xb8] sm:$0xff] %vm664_vm2, %v4656_v60  ;;  %v4566_v19 = vadd.f32 1.0, %v6337_v7 }
 0x2a6   : > { %v6341_v20 = vpop.eup %6340  ;;  %v4655_v12 = vmul.f32 %v6339_v16, %v8201_v14  ;;  %6352 = vrcp.f32 %v4563_v52 }
 0x2a7   : > { %v6343_v13 = vpop.eup %6342  ;;  %6354 = vrcp.f32 %v4566_v19  ;;  %v4565_v46 = vadd.f32 1.0, %v6341_v20 }
 0x2a8   : > { %v6345_v26 = vpop.eup %6344  ;;  %4687 = vst.msk [vmem:[%s8105_s25 + $0xb0] sm:$0xff] %vm664_vm2, %v4655_v12  ;;  %v4568_v41 = vadd.f32 1.0, %v6343_v13 }
 0x2a9   : > { %v6347_v27 = vpop.eup %6346  ;;  %v4658_v10 = vmul.f32 %v6345_v26, %v8221_v55  ;;  %6356 = vrcp.f32 %v4565_v46 }
 0x2aa   : > { %6358 = vrcp.f32 %v4568_v41  ;;  %v4567_v24 = vadd.f32 1.0, %v6347_v27 }
 0x2ab   : > { %4690 = vst.msk [vmem:[%s8105_s25 + $0xc8] sm:$0xff] %vm664_vm2, %v4658_v10 }
 0x2ac   : > { %v6349_v14 = vpop.eup %6348  ;;  %6360 = vrcp.f32 %v4567_v24 }
 0x2ad   : > { %v4657_v35 = vmul.f32 %v6349_v14, %v8234_v17  ;;  %v6351_v21 = vpop.eup %6350 }
 0x2ae   : > { %v4660_v3 = vmul.f32 %v6351_v21, %v8244_v61 }
 0x2af   : > { %4689 = vst.msk [vmem:[%s8105_s25 + $0xc0] sm:$0xff] %vm664_vm2, %v4657_v35 }
 0x2b0   : > { %v6353_v55 = vpop.eup %6352  ;;  %4692 = vst.msk [vmem:[%s8105_s25 + $0xd8] sm:$0xff] %vm664_vm2, %v4660_v3 }
 0x2b1   : > { %v6355_v45 = vpop.eup %6354  ;;  %v4659_v33 = vmul.f32 %v6353_v55, %v8250_v42 }
 0x2b2   : > { %v4662_v6 = vmul.f32 %v6355_v45, %v8255_v34 }
 0x2b3   : > { %v6357_v51 = vpop.eup %6356  ;;  %4691 = vst.msk [vmem:[%s8105_s25 + $0xd0] sm:$0xff] %vm664_vm2, %v4659_v33 }
 0x2b4   : > { %v6359_v17 = vpop.eup %6358  ;;  %4694 = vst.msk [vmem:[%s8105_s25 + $0xe8] sm:$0xff] %vm664_vm2, %v4662_v6  ;;  %v4661_v61 = vmul.f32 %v6357_v51, %v8261_v29 }
 0x2b5   : > { %v4664_v43 = vmul.f32 %v6359_v17, %v8274_v50 }
 0x2b6   : > { %v6361_v44 = vpop.eup %6360  ;;  %4693 = vst.msk [vmem:[%s8105_s25 + $0xe0] sm:$0xff] %vm664_vm2, %v4661_v61 }
 0x2b7   : > { %4696 = vst.msk [vmem:[%s8105_s25 + $0xf8] sm:$0xff] %vm664_vm2, %v4664_v43  ;;  %v4663_v42 = vmul.f32 %v6361_v44, %v8279_v53 }
 0x2b9   : > { %4695 = vst.msk [vmem:[%s8105_s25 + $0xf0] sm:$0xff] %vm664_vm2, %v4663_v42 }
 0x2ba   : > { %6489 = shalt.err (!%p6486_p0)
}
 0x2bb   : > { %s6490_s29 = scalar_lea.hbm %s8325_s6, 4096  ;;  %s6494_s10 = scalar_lea.hbm %s8385_s4, 8192 }
 0x2bc   : > { %p6491_p4 = scmp.ne.s32.totalorder %s8325_s6, %s6490_s29  ;;  %p6495_p12 = scmp.lt.u32.totalorder %s8325_s6, %s8385_s4 }
 0x2bd   : > { %p6496_p1 = scmp.lt.u32.totalorder %s6494_s10, %s6490_s29  ;;  %p6498_p13 = scmp.lt.u32.totalorder %s6490_s29, %s8325_s6 }
 0x2be   : > { %p6492_p2 = pnand %p6491_p4, %p6756_p10 }
 0x2bf   : > { %p6497_p11 = por %p6496_p1, %p6495_p12 }
 0x2c0   : > { %p6493_p8 = pneg %p6492_p2 }
 0x2c1   : > { %p6499_p6 = por %p6498_p13, %p6497_p11 }
 0x2c3   : > { %p6500_p3 = pnand %p6499_p6, %p6493_p8 }
 0x2c5   : > { %6503 = shalt.err (!%p6500_p3)
}
 0x2c6   : > { %s6577_s25 = smov 128   ;;  %s6578_s27 = smov 8  }
 0x2c7   : > { %6149 = dma.vmem_to_hbm [thread:$0]  (%p6756_p10), %s8327_s11, 4096, %s8325_s6, %s4698_s18, %s6577_s25, %s6577_s25, %s6578_s27  }
 0x2c8 PF: > { %s8510_s21 = sld [smem:[#allocation16_spill]]  ;;  %s4730_s28 = sand.u32 1, %s6546_s15  }
 0x2c9   : > { %p8512_p7 = scmp.ge.s32.totalorder %s6566_s20, 2  ;;  %s4731_s7 = scalar_lea.sflag [#allocation5], %s4730_s28 }
 0x2ce   : > { %p8511_p5 = scmp.ne.s32.totalorder %s8510_s21, 0 }
 0x2d0   : > { %p6166_p9 = pnand %p8512_p7, %p8511_p5 }
 0x2d2   : > { %6541 = dma.done.wait (!%p6166_p9), %s4731_s7, 4096  }
 0x2d3   : > { %6543 = vsyncadd (!%p6166_p9), %s4731_s7, 4294963200  ;;  %s22_s20 = sadd.s32 1, %s6566_s20   ;;  %s8513_s15 = smov %s6550_s16 }
 0x2d4   : > { %p19_p0 = scmp.ge.s32.totalorder %s22_s20, 4   ;;  %s8514_s16 = smov %s6554_s17 }
 0x2d5   : > { %s8515_s17 = smov %s6772_s24  ;;  %s8516_s18 = smov %s6562_s19 }
 0x2d6   : > { %s8517_s19 = smov %s8519_s26  ;;  %21 = sbr.rel (!%p19_p0) target bundleno = 8 (0x8), region = 106 }
 0x2dd   :  { %4736 = vsyncpa [#allocation4], 1 }
 0x2de   :  { %4738 = vsyncpa [#allocation4 + $0x1], 1 }
 0x2df   :  { %4739 = vsyncpa [#allocation7], 1 }
 0x2e0   :  { %4740 = vsyncpa [#allocation10], 1 }
 0x2e1   :  { %4741 = vsyncpa [#allocation5], 1 }
 0x2e2   :  { %4743 = vsyncpa [#allocation5 + $0x1], 1 }

</bundles_post_ra>
